<compile_context>
chip_gen: v6e
topology: v6e:2x2x1
jax: 0.10.0
libtpu: 0.0.40
codegen_flags: <defaults>
</compile_context>

<pallas_src>
import jax
import jax.numpy as jnp
import numpy as np
from jax import lax
from jax.experimental import pallas as pl
from jax.experimental.pallas import tpu as pltpu

RRELU_SLOPE = (1.0 / 8.0 + 1.0 / 3.0) / 2.0   # eval-mode RReLU negative slope
BN_EPS = 1e-5


def _round_up(x, m):
    return ((x + m - 1) // m) * m


def _vmem_limit_bytes():
    # Per-generation budget: v7x (64 MiB physical) -> 48 MiB, v5e/v6e (128 MiB) -> 96 MiB.
    try:
        cap = int(pltpu.get_tpu_info().vmem_capacity_bytes)
    except Exception:
        cap = 64 * 1024 * 1024
    return max(32 * 1024 * 1024, min(cap * 3 // 4, 100 * 1024 * 1024))


# ----------------------------- Pallas kernels ------------------------------ #

def _up_kernel(x_ref, w_ref, b_ref, o_ref):
    # Fused Conv1x1x1 + ConvTranspose3d(k2,s2) + BN1(up half) as a single pre-composed
    # GEMM, followed by RReLU.
    y = jnp.dot(x_ref[...], w_ref[...], preferred_element_type=jnp.float32) + b_ref[...]
    o_ref[...] = jnp.where(y >= 0.0, y, y * RRELU_SLOPE).astype(o_ref.dtype)


def _make_conv_kernel(td, hp_pad, hb, lane_in, lane_out, d_out_store, num_t,
                      has_bn, has_act, mask_d):
    # One grid step = TD output D-planes of a 3x3x3 conv.
    #  * (TD+2)-plane halo window manually DMA'd into a double-buffered VMEM scratch,
    #    next window prefetched (within the same batch item) while computing.
    #  * 9 accumulated MXU GEMMs against block-banded weights (kw shift + W-pad folded in).
    #  * epilogue: bias (+ optional BN + RReLU), H/D border masking, ONE full-tile store.
    win_len = (td + 2) * hp_pad
    slot_rows = win_len + 16          # 8-row head (for the kh-1 offset) + window + 8-row tail
    m_rows = td * hp_pad
    per_n_rows = (d_out_store + 2) * hp_pad

    def kernel(*args):
        if has_bn:
            x_hbm, w_ref, b_ref, sc_ref, sh_ref, o_ref, xwin, sem = args
        else:
            x_hbm, w_ref, b_ref, o_ref, xwin, sem = args
            sc_ref = sh_ref = None
        n = pl.program_id(0)
        t = pl.program_id(1)
        slot = lax.rem(t, 2)

        def start_copy(tt, sl):
            src_row = pl.multiple_of(n * per_n_rows + tt * td * hp_pad, 8)
            dst_row = pl.multiple_of(sl * slot_rows + 8, 8)
            pltpu.make_async_copy(
                x_hbm.at[pl.ds(src_row, win_len), :],
                xwin.at[pl.ds(dst_row, win_len), :],
                sem.at[sl]).start()

        @pl.when(t == 0)
        def _():
            start_copy(t, slot)          # first window of this batch item

        pltpu.make_async_copy(           # wait for the current window
            x_hbm.at[pl.ds(0, win_len), :],
            xwin.at[pl.ds(slot * slot_rows + 8, win_len), :],
            sem.at[slot]).wait()

        @pl.when(t + 1 < num_t)
        def _():
            start_copy(t + 1, 1 - slot)  # prefetch next window (same n only -> safe)

        base = slot * slot_rows + 7      # +8 head, -1 for the (kh-1) row offset
        acc = jnp.zeros((m_rows, lane_out), jnp.float32)
        for kd in range(3):
            for kh in range(3):
                lhs = xwin[pl.ds(base + kd * hp_pad + kh, m_rows), :]
                acc = acc + jnp.dot(lhs, w_ref[kd * 3 + kh],
                                    preferred_element_type=jnp.float32)

        y = acc + b_ref[...]
        if has_bn:
            y = y * sc_ref[...] + sh_ref[...]
        if has_act:
            y = jnp.where(y >= 0.0, y, y * RRELU_SLOPE)

        y = y.reshape(td, hp_pad, lane_out)
        row = lax.broadcasted_iota(jnp.int32, (td, hp_pad, 1), 1)
        ok = jnp.logical_and(row >= 1, row <= hb)
        if mask_d:
            dpl = t * td + lax.broadcasted_iota(jnp.int32, (td, hp_pad, 1), 0)
            ok = jnp.logical_and(ok, jnp.logical_and(dpl >= 1, dpl <= d_out_store - 2))
        o_ref[0] = jnp.where(ok, y, 0.0).astype(o_ref.dtype)

    return kernel


# ------------------------------ Pallas wrappers ----------------------------- #

def pallas_up(x_flat, w_comb, b_comb, vmem_limit):
    m, cin = x_flat.shape
    cols = w_comb.shape[1]
    tm = min(512, _round_up(max(8, (m + 1) // 2), 8))     # >=2 grid steps for v7x 2 TCs
    mp = _round_up(m, tm)
    if mp != m:
        x_flat = jnp.pad(x_flat, ((0, mp - m), (0, 0)))
    out = pl.pallas_call(
        _up_kernel,
        out_shape=jax.ShapeDtypeStruct((mp, cols), jnp.float32),
        grid=(mp // tm,),
        in_specs=[pl.BlockSpec((tm, cin), lambda i: (i, 0)),
                  pl.BlockSpec((cin, cols), lambda i: (0, 0)),
                  pl.BlockSpec((1, cols), lambda i: (0, 0))],
        out_specs=pl.BlockSpec((tm, cols), lambda i: (i, 0)),
        compiler_params=pltpu.CompilerParams(
            dimension_semantics=("parallel",),
            vmem_limit_bytes=vmem_limit),
    )(x_flat, w_comb, b_comb.reshape(1, -1))
    return out[:m]


def _pick_td(d_out_store, hp_pad, lane_in, lane_out, vmem_limit):
    # Largest D-tile (dividing the stored output D extent) whose working set fits the
    # per-generation VMEM budget.
    budget = vmem_limit // 2
    best = 1
    for td in range(1, d_out_store + 1):
        if d_out_store % td:
            continue
        win = 2 * ((td + 2) * hp_pad + 16) * lane_in * 4   # double-buffered halo window
        outb = 2 * td * hp_pad * lane_out * 4              # double-buffered output block
        accb = td * hp_pad * lane_out * 4                  # f32 accumulator
        if win + outb + accb <= budget and td * hp_pad <= 4096:
            best = td
    return best


def pallas_conv3x3x3(x_flat, n, d_out_store, hp_pad, hb, lane_in, lane_out,
                     w_band, bias_lane, bn_lane, act, mask_d, vmem_limit):
    # x_flat: (N * (d_out_store+2) * hp_pad, lane_in)  -- (D,H) flattened, W*C lane-fused,
    #         zero-padded by 1 in H/W and (output D-pad + 1) in D.
    assert x_flat.shape == (n * (d_out_store + 2) * hp_pad, lane_in)
    td = _pick_td(d_out_store, hp_pad, lane_in, lane_out, vmem_limit)
    num_t = d_out_store // td
    kernel = _make_conv_kernel(td, hp_pad, hb, lane_in, lane_out, d_out_store, num_t,
                               bn_lane is not None, act, mask_d)

    in_specs = [pl.BlockSpec(memory_space=pl.ANY),                       # manual DMA input
                pl.BlockSpec(w_band.shape, lambda nn, tt: (0, 0, 0)),
                pl.BlockSpec((1, lane_out), lambda nn, tt: (0, 0))]
    operands = [x_flat, w_band, bias_lane]
    if bn_lane is not None:
        sc, sh = bn_lane
        in_specs += [pl.BlockSpec((1, lane_out), lambda nn, tt: (0, 0)),
                     pl.BlockSpec((1, lane_out), lambda nn, tt: (0, 0))]
        operands += [sc, sh]

    slot_rows = (td + 2) * hp_pad + 16
    return pl.pallas_call(
        kernel,
        out_shape=jax.ShapeDtypeStruct((n, d_out_store, hp_pad, lane_out), jnp.float32),
        grid=(n, num_t),
        in_specs=in_specs,
        out_specs=pl.BlockSpec((1, td, hp_pad, lane_out), lambda nn, tt: (nn, tt, 0, 0)),
        scratch_shapes=[pltpu.VMEM((2 * slot_rows, lane_in), jnp.float32),
                        pltpu.SemaphoreType.DMA((2,))],
        compiler_params=pltpu.CompilerParams(
            dimension_semantics=("parallel", "arbitrary"),
            vmem_limit_bytes=vmem_limit),
    )(*operands)


# --------------------------- host-side weight prep -------------------------- #

def _banded_weights(w_dhwio, wp):
    # (3,3,3,Ci,Co) -> (9, wp*Ci, wp*Co): per-(kd,kh) block-tridiagonal matrices that fold
    # the kw shift and zero out the W-pad output groups (columns 0 and wp-1).
    ci, co = w_dhwio.shape[3], w_dhwio.shape[4]
    piw = jnp.arange(wp)[:, None]
    pw = jnp.arange(wp)[None, :]
    kw_rel = piw - pw + 1
    valid = (kw_rel >= 0) & (kw_rel <= 2) & (pw >= 1) & (pw <= wp - 2)
    kw_safe = jnp.clip(kw_rel, 0, 2)
    band = w_dhwio[:, :, kw_safe]                                   # (3,3,wp,wp,ci,co)
    band = band * valid[None, None, :, :, None, None].astype(w_dhwio.dtype)
    band = jnp.transpose(band, (0, 1, 2, 4, 3, 5))                  # (3,3,piw,ci,pw,co)
    return band.reshape(9, wp * ci, wp * co)


def _lane_vec(v, wp, pad_value):
    # Tile a per-channel vector over the wp W-groups, with `pad_value` at the pad groups
    # so the fused epilogue keeps the W border exactly zero.
    c = v.shape[0]
    valid = ((jnp.arange(wp) >= 1) & (jnp.arange(wp) <= wp - 2))[:, None]
    tiled = jnp.broadcast_to(v[None, :], (wp, c))
    out = jnp.where(valid, tiled, jnp.full_like(tiled, pad_value))
    return out.reshape(1, wp * c)


# ------------------------------ module params ------------------------------- #

def init_params(key, cin, cout):
    ks = jax.random.split(key, 12)
    p = {}
    p['w1'] = jax.random.normal(ks[0], (cin, cin), jnp.float32) * 0.3            # Conv3d 1x1x1
    p['b1'] = jax.random.normal(ks[1], (cin,), jnp.float32) * 0.1
    p['wt'] = jax.random.normal(ks[2], (cin, 2, 2, 2, cout), jnp.float32) * 0.3  # ConvTranspose3d
    p['bt'] = jax.random.normal(ks[3], (cout,), jnp.float32) * 0.1
    g1 = 1.0 + jax.random.normal(ks[4], (2 * cout,), jnp.float32) * 0.1          # BN1 gamma
    beta1 = jax.random.normal(ks[5], (2 * cout,), jnp.float32) * 0.1             # BN1 beta
    p['bn1_scale'] = g1 / jnp.sqrt(1.0 + BN_EPS)                                 # running stats
    p['bn1_shift'] = beta1
    p['wa'] = jax.random.normal(ks[6], (3, 3, 3, 2 * cout, cout), jnp.float32) * 0.15  # Conv3d DHWIO
    p['ba'] = jax.random.normal(ks[7], (cout,), jnp.float32) * 0.1
    g2 = 1.0 + jax.random.normal(ks[8], (cout,), jnp.float32) * 0.1
    beta2 = jax.random.normal(ks[9], (cout,), jnp.float32) * 0.1
    p['bn2_scale'] = g2 / jnp.sqrt(1.0 + BN_EPS)
    p['bn2_shift'] = beta2
    p['wb'] = jax.random.normal(ks[10], (3, 3, 3, cout, cout), jnp.float32) * 0.15
    p['bb'] = jax.random.normal(ks[11], (cout,), jnp.float32) * 0.1
    return p


# ------------------------------ module forward ------------------------------ #

def res_up_block_forward(x_ncdhw, down_ncdhw, p):
    x = jnp.transpose(x_ncdhw, (0, 2, 3, 4, 1)).astype(jnp.float32)   # NCDHW -> NDHWC
    dn = jnp.transpose(down_ncdhw, (0, 2, 3, 4, 1)).astype(jnp.float32)
    n, d, h, w, cin = x.shape
    cout = p['bt'].shape[0]
    d2, h2, w2 = 2 * d, 2 * h, 2 * w
    hp_pad = _round_up(h2 + 2, 8)       # stored H rows: 1 top pad + h2 real + zero tail
    wp = w2 + 2                         # stored W groups: 1 pad each side
    vmem_limit = _vmem_limit_bytes()

    # --- up path: Conv1x1x1 + ConvTranspose(k2,s2) + BN1(up half) pre-composed into a
    #     single GEMM; RReLU fused in-kernel. ---
    wt_mat = p['wt'].reshape(cin, 8 * cout)                 # columns ordered (kd,kh,kw,c)
    sc_up = jnp.tile(p['bn1_scale'][:cout], 8)
    sh_up = jnp.tile(p['bn1_shift'][:cout], 8)
    w_comb = (p['w1'] @ wt_mat) * sc_up[None, :]
    b_comb = (p['b1'] @ wt_mat + jnp.tile(p['bt'], 8)) * sc_up + sh_up
    up8 = pallas_up(x.reshape(n * d * h * w, cin), w_comb, b_comb, vmem_limit)
    up = up8.reshape(n, d, h, w, 2, 2, 2, cout)
    up = jnp.transpose(up, (0, 1, 4, 2, 5, 3, 6, 7)).reshape(n, d2, h2, w2, cout)

    # --- skip path pre-activation + a1 assembly (single fused concat/pad pass);
    #     zero padding is exact because both halves are already activated. ---
    sc_dn = p['bn1_scale'][cout:]
    sh_dn = p['bn1_shift'][cout:]
    dn_act = dn * sc_dn + sh_dn
    dn_act = jnp.where(dn_act >= 0.0, dn_act, dn_act * RRELU_SLOPE)
    ci1 = 2 * cout
    a1 = jnp.concatenate([up, dn_act], axis=-1)
    a1 = jnp.pad(a1, ((0, 0), (2, 2), (1, hp_pad - 1 - h2), (1, 1), (0, 0)))
    a1 = a1.reshape(n * (d2 + 4) * hp_pad, wp * ci1)

    # --- conv1: 3x3x3 conv + bias + BN2 + RReLU, written directly in the padded stored
    #     layout conv2 consumes (single full-tile store per step). ---
    c1 = pallas_conv3x3x3(
        a1, n, d_out_store=d2 + 2, hp_pad=hp_pad, hb=h2,
        lane_in=wp * ci1, lane_out=wp * cout,
        w_band=_banded_weights(p['wa'], wp),
        bias_lane=_lane_vec(p['ba'], wp, 0.0),
        bn_lane=(_lane_vec(p['bn2_scale'], wp, 1.0), _lane_vec(p['bn2_shift'], wp, 0.0)),
        act=True, mask_d=True, vmem_limit=vmem_limit)

    # --- conv2: plain 3x3x3 conv + bias ---
    c2 = pallas_conv3x3x3(
        c1.reshape(n * (d2 + 2) * hp_pad, wp * cout), n,
        d_out_store=d2, hp_pad=hp_pad, hb=h2,
        lane_in=wp * cout, lane_out=wp * cout,
        w_band=_banded_weights(p['wb'], wp),
        bias_lane=_lane_vec(p['bb'], wp, 0.0),
        bn_lane=None, act=False, mask_d=False, vmem_limit=vmem_limit)

    # --- extract the real region and return NCDHW ---
    c2 = c2[:, :, 1:1 + h2, :].reshape(n, d2, h2, wp, cout)[:, :, :, 1:1 + w2, :]
    return jnp.transpose(c2, (0, 4, 1, 2, 3))


# ------------------------------ pure-JAX reference -------------------------- #

def reference_forward(x_ncdhw, down_ncdhw, p):
    x = jnp.transpose(x_ncdhw, (0, 2, 3, 4, 1)).astype(jnp.float32)
    dn = jnp.transpose(down_ncdhw, (0, 2, 3, 4, 1)).astype(jnp.float32)
    n, d, h, w, _ = x.shape
    cout = p['bt'].shape[0]
    hmid = x @ p['w1'] + p['b1']
    up = jnp.einsum('nabcm,mxyzo->naxbyczo', hmid, p['wt'])
    up = up.reshape(n, 2 * d, 2 * h, 2 * w, cout) + p['bt']
    cat = jnp.concatenate([up, dn], axis=-1)

    def bn_act(v, s, t):
        y = v * s + t
        return jnp.where(y >= 0.0, y, y * RRELU_SLOPE)

    a1 = bn_act(cat, p['bn1_scale'], p['bn1_shift'])
    c1 = lax.conv_general_dilated(a1, p['wa'], (1, 1, 1), 'SAME',
                                  dimension_numbers=('NDHWC', 'DHWIO', 'NDHWC')) + p['ba']
    a2 = bn_act(c1, p['bn2_scale'], p['bn2_shift'])
    c2 = lax.conv_general_dilated(a2, p['wb'], (1, 1, 1), 'SAME',
                                  dimension_numbers=('NDHWC', 'DHWIO', 'NDHWC')) + p['bb']
    return jnp.transpose(c2, (0, 4, 1, 2, 3))


# ------------------------------------ main ----------------------------------- #

if __name__ == "__main__":
    key = jax.random.PRNGKey(0)
    k_x, k_d, k_p = jax.random.split(key, 3)

    in_data, out_data = 4, 4
    N, D, H, W = 2, 4, 4, 4
    x = jax.random.normal(k_x, (N, in_data, D, H, W), jnp.float32)
    down_features = jax.random.normal(k_d, (N, out_data, 2 * D, 2 * H, 2 * W), jnp.float32)
    params = init_params(k_p, in_data, out_data)

    out = jax.jit(res_up_block_forward)(x, down_features, params)
    out = jax.block_until_ready(out)

    ref = reference_forward(x, down_features, params)
    np.testing.assert_allclose(np.asarray(out), np.asarray(ref), rtol=1e-3, atol=1e-3)
    print("KERNEL_OK")
</pallas_src>

<mosaic_0001>
module attributes {stable_mosaic.version = 11 : i64} {
  func.func @_up_kernel(%arg0: i32, %arg1: memref<64x4xf32, #tpu.memory_space<vmem>>, %arg2: memref<4x32xf32, #tpu.memory_space<vmem>>, %arg3: memref<1x32xf32, #tpu.memory_space<vmem>>, %arg4: memref<64x32xf32, #tpu.memory_space<vmem>>) attributes {dimension_semantics = [#tpu.dimension_semantics<parallel>], iteration_bounds = array<i64: 2>, scalar_prefetch = 0 : i64, scratch_operands = 0 : i64, tpu.core_type = #tpu.core_type<tc>, window_params = [{transform_indices = @transform_0, window_bounds = array<i64: 64, 4>}, {pipeline_mode = #tpu.pipeline_mode<synchronous>, transform_indices = @transform_1, window_bounds = array<i64: 4, 32>}, {pipeline_mode = #tpu.pipeline_mode<synchronous>, transform_indices = @transform_2, window_bounds = array<i64: 1, 32>}, {transform_indices = @transform_3, window_bounds = array<i64: 64, 32>}]} {
    %c0 = arith.constant 0 : index
    %c0_0 = arith.constant 0 : index
    %0 = vector.load %arg1[%c0, %c0_0] : memref<64x4xf32, #tpu.memory_space<vmem>>, vector<64x4xf32>
    %c0_1 = arith.constant 0 : index
    %c0_2 = arith.constant 0 : index
    %1 = vector.load %arg2[%c0_1, %c0_2] : memref<4x32xf32, #tpu.memory_space<vmem>>, vector<4x32xf32>
    %cst = arith.constant dense<0.000000e+00> : vector<64x32xf32>
    %2 = tpu.matmul %0, %1, %cst {dimension_numbers = #tpu.dot_dimension_numbers<[1], [0], [0], [1], [0, 0, 1, 1], [], []>} : vector<64x4xf32>, vector<4x32xf32>, vector<64x32xf32> -> vector<64x32xf32>
    %c0_3 = arith.constant 0 : index
    %c0_4 = arith.constant 0 : index
    %3 = vector.load %arg3[%c0_3, %c0_4] : memref<1x32xf32, #tpu.memory_space<vmem>>, vector<1x32xf32>
    %4 = vector.broadcast %3 : vector<1x32xf32> to vector<64x32xf32>
    %5 = arith.addf %2, %4 : vector<64x32xf32>
    %cst_5 = arith.constant 0.000000e+00 : f32
    %6 = vector.broadcast %cst_5 : f32 to vector<64x32xf32>
    %7 = arith.cmpf oge, %5, %6 : vector<64x32xf32>
    %cst_6 = arith.constant 0.229166672 : f32
    %8 = vector.broadcast %cst_6 : f32 to vector<64x32xf32>
    %9 = arith.mulf %5, %8 : vector<64x32xf32>
    %10 = arith.select %7, %5, %9 : vector<64x32xi1>, vector<64x32xf32>
    %c0_7 = arith.constant 0 : index
    %c0_8 = arith.constant 0 : index
    %11 = vector.load %arg4[%c0_7, %c0_8] : memref<64x32xf32, #tpu.memory_space<vmem>>, vector<64x32xf32>
    tpu.vector_store %arg4[%c0_7, %c0_8], %10 {strides = array<i32>} : memref<64x32xf32, #tpu.memory_space<vmem>>, vector<64x32xf32>,
    return
  }
  func.func @transform_0(%arg0: i32) -> (i32, i32) {
    %c0_i32 = arith.constant 0 : i32
    %c0_i32_0 = arith.constant 0 : i32
    return %arg0, %c0_i32 : i32, i32
  }
  func.func @transform_1(%arg0: i32) -> (i32, i32) {
    %c0_i32 = arith.constant 0 : i32
    %c0_i32_0 = arith.constant 0 : i32
    %c0_i32_1 = arith.constant 0 : i32
    return %c0_i32, %c0_i32_0 : i32, i32
  }
  func.func @transform_2(%arg0: i32) -> (i32, i32) {
    %c0_i32 = arith.constant 0 : i32
    %c0_i32_0 = arith.constant 0 : i32
    %c0_i32_1 = arith.constant 0 : i32
    return %c0_i32, %c0_i32_0 : i32, i32
  }
  func.func @transform_3(%arg0: i32) -> (i32, i32) {
    %c0_i32 = arith.constant 0 : i32
    %c0_i32_0 = arith.constant 0 : i32
    return %arg0, %c0_i32 : i32, i32
  }
}

module attributes {stable_mosaic.version = 11 : i64} {
  func.func @kernel(%arg0: i32, %arg1: i32, %arg2: memref<384x80xf32, #tpu.memory_space<any>>, %arg3: memref<9x80x40xf32, #tpu.memory_space<vmem>>, %arg4: memref<1x40xf32, #tpu.memory_space<vmem>>, %arg5: memref<1x40xf32, #tpu.memory_space<vmem>>, %arg6: memref<1x40xf32, #tpu.memory_space<vmem>>, %arg7: memref<1x10x16x40xf32, #tpu.memory_space<vmem>>, %arg8: memref<416x80xf32, #tpu.memory_space<vmem>>, %arg9: memref<2x!tpu.dma_semaphore, #tpu.memory_space<semaphore_mem>>) attributes {dimension_semantics = [#tpu.dimension_semantics<parallel>, #tpu.dimension_semantics<arbitrary>], iteration_bounds = array<i64: 2, 1>, scalar_prefetch = 0 : i64, scratch_operands = 2 : i64, tpu.core_type = #tpu.core_type<tc>, window_params = [{}, {pipeline_mode = #tpu.pipeline_mode<synchronous>, transform_indices = @transform_1, window_bounds = array<i64: 9, 80, 40>}, {pipeline_mode = #tpu.pipeline_mode<synchronous>, transform_indices = @transform_2, window_bounds = array<i64: 1, 40>}, {pipeline_mode = #tpu.pipeline_mode<synchronous>, transform_indices = @transform_3, window_bounds = array<i64: 1, 40>}, {pipeline_mode = #tpu.pipeline_mode<synchronous>, transform_indices = @transform_4, window_bounds = array<i64: 1, 40>}, {transform_indices = @transform_5, window_bounds = array<i64: 1, 10, 16, 40>}]} {
    %c2_i32 = arith.constant 2 : i32
    %0 = arith.remsi %arg1, %c2_i32 : i32
    %c0_i32 = arith.constant 0 : i32
    %1 = arith.cmpi eq, %arg1, %c0_i32 : i32
    %2 = arith.extui %1 : i1 to i32
    %c0_i32_0 = arith.constant 0 : i32
    %3 = arith.cmpi ne, %2, %c0_i32_0 : i32
    scf.if %3 {
      %c192_i32 = arith.constant 192 : i32
      %127 = arith.muli %arg0, %c192_i32 : i32
      %c10_i32_76 = arith.constant 10 : i32
      %128 = arith.muli %arg1, %c10_i32_76 : i32
      %c16_i32_77 = arith.constant 16 : i32
      %129 = arith.muli %128, %c16_i32_77 : i32
      %130 = arith.addi %127, %129 : i32
      %131 = tpu.assume_multiple %130, 8 : i32
      %c208_i32_78 = arith.constant 208 : i32
      %132 = arith.muli %0, %c208_i32_78 : i32
      %c8_i32_79 = arith.constant 8 : i32
      %133 = arith.addi %132, %c8_i32_79 : i32
      %134 = tpu.assume_multiple %133, 8 : i32
      %c0_i32_80 = arith.constant 0 : i32
      %135 = tpu.memref_slice %arg2[%131, %c0_i32_80] : memref<384x80xf32, #tpu.memory_space<any>> -> memref<192x80xf32, #tpu.memory_space<any>>
      %c0_i32_81 = arith.constant 0 : i32
      %136 = tpu.memref_slice %arg8[%134, %c0_i32_81] : memref<416x80xf32, #tpu.memory_space<vmem>> -> memref<192x80xf32, #tpu.memory_space<vmem>>
      %137 = tpu.memref_slice %arg9[%0] : memref<2x!tpu.dma_semaphore, #tpu.memory_space<semaphore_mem>> -> memref<1x!tpu.dma_semaphore, #tpu.memory_space<semaphore_mem>>
      %138 = tpu.memref_squeeze %137 : memref<1x!tpu.dma_semaphore, #tpu.memory_space<semaphore_mem>> -> memref<!tpu.dma_semaphore, #tpu.memory_space<semaphore_mem>>
      tpu.enqueue_dma source(%135 : memref<192x80xf32, #tpu.memory_space<any>>) target(%136 : memref<192x80xf32, #tpu.memory_space<vmem>>) target_semaphore(%138 : memref<!tpu.dma_semaphore, #tpu.memory_space<semaphore_mem>>)
    } else {
    }
    %c208_i32 = arith.constant 208 : i32
    %4 = arith.muli %0, %c208_i32 : i32
    %c8_i32 = arith.constant 8 : i32
    %5 = arith.addi %4, %c8_i32 : i32
    %c0_i32_1 = arith.constant 0 : i32
    %c0_i32_2 = arith.constant 0 : i32
    %6 = tpu.memref_slice %arg2[%c0_i32_1, %c0_i32_2] : memref<384x80xf32, #tpu.memory_space<any>> -> memref<192x80xf32, #tpu.memory_space<any>>
    %c0_i32_3 = arith.constant 0 : i32
    %7 = tpu.memref_slice %arg8[%5, %c0_i32_3] : memref<416x80xf32, #tpu.memory_space<vmem>> -> memref<192x80xf32, #tpu.memory_space<vmem>>
    %8 = tpu.memref_slice %arg9[%0] : memref<2x!tpu.dma_semaphore, #tpu.memory_space<semaphore_mem>> -> memref<1x!tpu.dma_semaphore, #tpu.memory_space<semaphore_mem>>
    %9 = tpu.memref_squeeze %8 : memref<1x!tpu.dma_semaphore, #tpu.memory_space<semaphore_mem>> -> memref<!tpu.dma_semaphore, #tpu.memory_space<semaphore_mem>>
    tpu.wait_dma2 semaphore(%9 : memref<!tpu.dma_semaphore, #tpu.memory_space<semaphore_mem>>) src(%6 : memref<192x80xf32, #tpu.memory_space<any>>) dst(%7 : memref<192x80xf32, #tpu.memory_space<vmem>>)
    %c1_i32 = arith.constant 1 : i32
    %10 = arith.addi %arg1, %c1_i32 : i32
    %c1_i32_4 = arith.constant 1 : i32
    %11 = arith.cmpi slt, %10, %c1_i32_4 : i32
    %12 = arith.extui %11 : i1 to i32
    %c0_i32_5 = arith.constant 0 : i32
    %13 = arith.cmpi ne, %12, %c0_i32_5 : i32
    scf.if %13 {
      %c1_i32_76 = arith.constant 1 : i32
      %127 = arith.addi %arg1, %c1_i32_76 : i32
      %c1_i32_77 = arith.constant 1 : i32
      %128 = arith.subi %c1_i32_77, %0 : i32
      %c192_i32 = arith.constant 192 : i32
      %129 = arith.muli %arg0, %c192_i32 : i32
      %c10_i32_78 = arith.constant 10 : i32
      %130 = arith.muli %127, %c10_i32_78 : i32
      %c16_i32_79 = arith.constant 16 : i32
      %131 = arith.muli %130, %c16_i32_79 : i32
      %132 = arith.addi %129, %131 : i32
      %133 = tpu.assume_multiple %132, 8 : i32
      %c208_i32_80 = arith.constant 208 : i32
      %134 = arith.muli %128, %c208_i32_80 : i32
      %c8_i32_81 = arith.constant 8 : i32
      %135 = arith.addi %134, %c8_i32_81 : i32
      %136 = tpu.assume_multiple %135, 8 : i32
      %c0_i32_82 = arith.constant 0 : i32
      %137 = tpu.memref_slice %arg2[%133, %c0_i32_82] : memref<384x80xf32, #tpu.memory_space<any>> -> memref<192x80xf32, #tpu.memory_space<any>>
      %c0_i32_83 = arith.constant 0 : i32
      %138 = tpu.memref_slice %arg8[%136, %c0_i32_83] : memref<416x80xf32, #tpu.memory_space<vmem>> -> memref<192x80xf32, #tpu.memory_space<vmem>>
      %139 = tpu.memref_slice %arg9[%128] : memref<2x!tpu.dma_semaphore, #tpu.memory_space<semaphore_mem>> -> memref<1x!tpu.dma_semaphore, #tpu.memory_space<semaphore_mem>>
      %140 = tpu.memref_squeeze %139 : memref<1x!tpu.dma_semaphore, #tpu.memory_space<semaphore_mem>> -> memref<!tpu.dma_semaphore, #tpu.memory_space<semaphore_mem>>
      tpu.enqueue_dma source(%137 : memref<192x80xf32, #tpu.memory_space<any>>) target(%138 : memref<192x80xf32, #tpu.memory_space<vmem>>) target_semaphore(%140 : memref<!tpu.dma_semaphore, #tpu.memory_space<semaphore_mem>>)
    } else {
    }
    %c208_i32_6 = arith.constant 208 : i32
    %14 = arith.muli %0, %c208_i32_6 : i32
    %c7_i32 = arith.constant 7 : i32
    %15 = arith.addi %14, %c7_i32 : i32
    %cst = arith.constant 0.000000e+00 : f32
    %16 = vector.broadcast %cst : f32 to vector<160x40xf32>
    %c0_i32_7 = arith.constant 0 : i32
    %17 = arith.addi %15, %c0_i32_7 : i32
    %c0_i32_8 = arith.constant 0 : i32
    %18 = arith.addi %17, %c0_i32_8 : i32
    %19 = arith.index_cast %18 : i32 to index
    %c0 = arith.constant 0 : index
    %20 = vector.load %arg8[%19, %c0] : memref<416x80xf32, #tpu.memory_space<vmem>>, vector<160x80xf32>
    %c0_9 = arith.constant 0 : index
    %c0_10 = arith.constant 0 : index
    %c0_11 = arith.constant 0 : index
    %21 = vector.load %arg3[%c0_9, %c0_10, %c0_11] : memref<9x80x40xf32, #tpu.memory_space<vmem>>, vector<1x80x40xf32>
    %22 = vector.shape_cast %21 : vector<1x80x40xf32> to vector<80x40xf32>
    %cst_12 = arith.constant dense<0.000000e+00> : vector<160x40xf32>
    %23 = tpu.matmul %20, %22, %cst_12 {dimension_numbers = #tpu.dot_dimension_numbers<[1], [0], [0], [1], [0, 0, 1, 1], [], []>} : vector<160x80xf32>, vector<80x40xf32>, vector<160x40xf32> -> vector<160x40xf32>
    %24 = arith.addf %16, %23 : vector<160x40xf32>
    %c0_i32_13 = arith.constant 0 : i32
    %25 = arith.addi %15, %c0_i32_13 : i32
    %c1_i32_14 = arith.constant 1 : i32
    %26 = arith.addi %25, %c1_i32_14 : i32
    %27 = arith.index_cast %26 : i32 to index
    %c0_15 = arith.constant 0 : index
    %28 = vector.load %arg8[%27, %c0_15] : memref<416x80xf32, #tpu.memory_space<vmem>>, vector<160x80xf32>
    %c1 = arith.constant 1 : index
    %c0_16 = arith.constant 0 : index
    %c0_17 = arith.constant 0 : index
    %29 = vector.load %arg3[%c1, %c0_16, %c0_17] : memref<9x80x40xf32, #tpu.memory_space<vmem>>, vector<1x80x40xf32>
    %30 = vector.shape_cast %29 : vector<1x80x40xf32> to vector<80x40xf32>
    %cst_18 = arith.constant dense<0.000000e+00> : vector<160x40xf32>
    %31 = tpu.matmul %28, %30, %cst_18 {dimension_numbers = #tpu.dot_dimension_numbers<[1], [0], [0], [1], [0, 0, 1, 1], [], []>} : vector<160x80xf32>, vector<80x40xf32>, vector<160x40xf32> -> vector<160x40xf32>
    %32 = arith.addf %24, %31 : vector<160x40xf32>
    %c0_i32_19 = arith.constant 0 : i32
    %33 = arith.addi %15, %c0_i32_19 : i32
    %c2_i32_20 = arith.constant 2 : i32
    %34 = arith.addi %33, %c2_i32_20 : i32
    %35 = arith.index_cast %34 : i32 to index
    %c0_21 = arith.constant 0 : index
    %36 = vector.load %arg8[%35, %c0_21] : memref<416x80xf32, #tpu.memory_space<vmem>>, vector<160x80xf32>
    %c2 = arith.constant 2 : index
    %c0_22 = arith.constant 0 : index
    %c0_23 = arith.constant 0 : index
    %37 = vector.load %arg3[%c2, %c0_22, %c0_23] : memref<9x80x40xf32, #tpu.memory_space<vmem>>, vector<1x80x40xf32>
    %38 = vector.shape_cast %37 : vector<1x80x40xf32> to vector<80x40xf32>
    %cst_24 = arith.constant dense<0.000000e+00> : vector<160x40xf32>
    %39 = tpu.matmul %36, %38, %cst_24 {dimension_numbers = #tpu.dot_dimension_numbers<[1], [0], [0], [1], [0, 0, 1, 1], [], []>} : vector<160x80xf32>, vector<80x40xf32>, vector<160x40xf32> -> vector<160x40xf32>
    %40 = arith.addf %32, %39 : vector<160x40xf32>
    %c16_i32 = arith.constant 16 : i32
    %41 = arith.addi %15, %c16_i32 : i32
    %c0_i32_25 = arith.constant 0 : i32
    %42 = arith.addi %41, %c0_i32_25 : i32
    %43 = arith.index_cast %42 : i32 to index
    %c0_26 = arith.constant 0 : index
    %44 = vector.load %arg8[%43, %c0_26] : memref<416x80xf32, #tpu.memory_space<vmem>>, vector<160x80xf32>
    %c3 = arith.constant 3 : index
    %c0_27 = arith.constant 0 : index
    %c0_28 = arith.constant 0 : index
    %45 = vector.load %arg3[%c3, %c0_27, %c0_28] : memref<9x80x40xf32, #tpu.memory_space<vmem>>, vector<1x80x40xf32>
    %46 = vector.shape_cast %45 : vector<1x80x40xf32> to vector<80x40xf32>
    %cst_29 = arith.constant dense<0.000000e+00> : vector<160x40xf32>
    %47 = tpu.matmul %44, %46, %cst_29 {dimension_numbers = #tpu.dot_dimension_numbers<[1], [0], [0], [1], [0, 0, 1, 1], [], []>} : vector<160x80xf32>, vector<80x40xf32>, vector<160x40xf32> -> vector<160x40xf32>
    %48 = arith.addf %40, %47 : vector<160x40xf32>
    %c16_i32_30 = arith.constant 16 : i32
    %49 = arith.addi %15, %c16_i32_30 : i32
    %c1_i32_31 = arith.constant 1 : i32
    %50 = arith.addi %49, %c1_i32_31 : i32
    %51 = arith.index_cast %50 : i32 to index
    %c0_32 = arith.constant 0 : index
    %52 = vector.load %arg8[%51, %c0_32] : memref<416x80xf32, #tpu.memory_space<vmem>>, vector<160x80xf32>
    %c4 = arith.constant 4 : index
    %c0_33 = arith.constant 0 : index
    %c0_34 = arith.constant 0 : index
    %53 = vector.load %arg3[%c4, %c0_33, %c0_34] : memref<9x80x40xf32, #tpu.memory_space<vmem>>, vector<1x80x40xf32>
    %54 = vector.shape_cast %53 : vector<1x80x40xf32> to vector<80x40xf32>
    %cst_35 = arith.constant dense<0.000000e+00> : vector<160x40xf32>
    %55 = tpu.matmul %52, %54, %cst_35 {dimension_numbers = #tpu.dot_dimension_numbers<[1], [0], [0], [1], [0, 0, 1, 1], [], []>} : vector<160x80xf32>, vector<80x40xf32>, vector<160x40xf32> -> vector<160x40xf32>
    %56 = arith.addf %48, %55 : vector<160x40xf32>
    %c16_i32_36 = arith.constant 16 : i32
    %57 = arith.addi %15, %c16_i32_36 : i32
    %c2_i32_37 = arith.constant 2 : i32
    %58 = arith.addi %57, %c2_i32_37 : i32
    %59 = arith.index_cast %58 : i32 to index
    %c0_38 = arith.constant 0 : index
    %60 = vector.load %arg8[%59, %c0_38] : memref<416x80xf32, #tpu.memory_space<vmem>>, vector<160x80xf32>
    %c5 = arith.constant 5 : index
    %c0_39 = arith.constant 0 : index
    %c0_40 = arith.constant 0 : index
    %61 = vector.load %arg3[%c5, %c0_39, %c0_40] : memref<9x80x40xf32, #tpu.memory_space<vmem>>, vector<1x80x40xf32>
    %62 = vector.shape_cast %61 : vector<1x80x40xf32> to vector<80x40xf32>
    %cst_41 = arith.constant dense<0.000000e+00> : vector<160x40xf32>
    %63 = tpu.matmul %60, %62, %cst_41 {dimension_numbers = #tpu.dot_dimension_numbers<[1], [0], [0], [1], [0, 0, 1, 1], [], []>} : vector<160x80xf32>, vector<80x40xf32>, vector<160x40xf32> -> vector<160x40xf32>
    %64 = arith.addf %56, %63 : vector<160x40xf32>
    %c32_i32 = arith.constant 32 : i32
    %65 = arith.addi %15, %c32_i32 : i32
    %c0_i32_42 = arith.constant 0 : i32
    %66 = arith.addi %65, %c0_i32_42 : i32
    %67 = arith.index_cast %66 : i32 to index
    %c0_43 = arith.constant 0 : index
    %68 = vector.load %arg8[%67, %c0_43] : memref<416x80xf32, #tpu.memory_space<vmem>>, vector<160x80xf32>
    %c6 = arith.constant 6 : index
    %c0_44 = arith.constant 0 : index
    %c0_45 = arith.constant 0 : index
    %69 = vector.load %arg3[%c6, %c0_44, %c0_45] : memref<9x80x40xf32, #tpu.memory_space<vmem>>, vector<1x80x40xf32>
    %70 = vector.shape_cast %69 : vector<1x80x40xf32> to vector<80x40xf32>
    %cst_46 = arith.constant dense<0.000000e+00> : vector<160x40xf32>
    %71 = tpu.matmul %68, %70, %cst_46 {dimension_numbers = #tpu.dot_dimension_numbers<[1], [0], [0], [1], [0, 0, 1, 1], [], []>} : vector<160x80xf32>, vector<80x40xf32>, vector<160x40xf32> -> vector<160x40xf32>
    %72 = arith.addf %64, %71 : vector<160x40xf32>
    %c32_i32_47 = arith.constant 32 : i32
    %73 = arith.addi %15, %c32_i32_47 : i32
    %c1_i32_48 = arith.constant 1 : i32
    %74 = arith.addi %73, %c1_i32_48 : i32
    %75 = arith.index_cast %74 : i32 to index
    %c0_49 = arith.constant 0 : index
    %76 = vector.load %arg8[%75, %c0_49] : memref<416x80xf32, #tpu.memory_space<vmem>>, vector<160x80xf32>
    %c7 = arith.constant 7 : index
    %c0_50 = arith.constant 0 : index
    %c0_51 = arith.constant 0 : index
    %77 = vector.load %arg3[%c7, %c0_50, %c0_51] : memref<9x80x40xf32, #tpu.memory_space<vmem>>, vector<1x80x40xf32>
    %78 = vector.shape_cast %77 : vector<1x80x40xf32> to vector<80x40xf32>
    %cst_52 = arith.constant dense<0.000000e+00> : vector<160x40xf32>
    %79 = tpu.matmul %76, %78, %cst_52 {dimension_numbers = #tpu.dot_dimension_numbers<[1], [0], [0], [1], [0, 0, 1, 1], [], []>} : vector<160x80xf32>, vector<80x40xf32>, vector<160x40xf32> -> vector<160x40xf32>
    %80 = arith.addf %72, %79 : vector<160x40xf32>
    %c32_i32_53 = arith.constant 32 : i32
    %81 = arith.addi %15, %c32_i32_53 : i32
    %c2_i32_54 = arith.constant 2 : i32
    %82 = arith.addi %81, %c2_i32_54 : i32
    %83 = arith.index_cast %82 : i32 to index
    %c0_55 = arith.constant 0 : index
    %84 = vector.load %arg8[%83, %c0_55] : memref<416x80xf32, #tpu.memory_space<vmem>>, vector<160x80xf32>
    %c8 = arith.constant 8 : index
    %c0_56 = arith.constant 0 : index
    %c0_57 = arith.constant 0 : index
    %85 = vector.load %arg3[%c8, %c0_56, %c0_57] : memref<9x80x40xf32, #tpu.memory_space<vmem>>, vector<1x80x40xf32>
    %86 = vector.shape_cast %85 : vector<1x80x40xf32> to vector<80x40xf32>
    %cst_58 = arith.constant dense<0.000000e+00> : vector<160x40xf32>
    %87 = tpu.matmul %84, %86, %cst_58 {dimension_numbers = #tpu.dot_dimension_numbers<[1], [0], [0], [1], [0, 0, 1, 1], [], []>} : vector<160x80xf32>, vector<80x40xf32>, vector<160x40xf32> -> vector<160x40xf32>
    %88 = arith.addf %80, %87 : vector<160x40xf32>
    %c0_59 = arith.constant 0 : index
    %c0_60 = arith.constant 0 : index
    %89 = vector.load %arg4[%c0_59, %c0_60] : memref<1x40xf32, #tpu.memory_space<vmem>>, vector<1x40xf32>
    %90 = vector.broadcast %89 : vector<1x40xf32> to vector<160x40xf32>
    %91 = arith.addf %88, %90 : vector<160x40xf32>
    %c0_61 = arith.constant 0 : index
    %c0_62 = arith.constant 0 : index
    %92 = vector.load %arg5[%c0_61, %c0_62] : memref<1x40xf32, #tpu.memory_space<vmem>>, vector<1x40xf32>
    %93 = vector.broadcast %92 : vector<1x40xf32> to vector<160x40xf32>
    %94 = arith.mulf %91, %93 : vector<160x40xf32>
    %c0_63 = arith.constant 0 : index
    %c0_64 = arith.constant 0 : index
    %95 = vector.load %arg6[%c0_63, %c0_64] : memref<1x40xf32, #tpu.memory_space<vmem>>, vector<1x40xf32>
    %96 = vector.broadcast %95 : vector<1x40xf32> to vector<160x40xf32>
    %97 = arith.addf %94, %96 : vector<160x40xf32>
    %cst_65 = arith.constant 0.000000e+00 : f32
    %98 = vector.broadcast %cst_65 : f32 to vector<160x40xf32>
    %99 = arith.cmpf oge, %97, %98 : vector<160x40xf32>
    %cst_66 = arith.constant 0.229166672 : f32
    %100 = vector.broadcast %cst_66 : f32 to vector<160x40xf32>
    %101 = arith.mulf %97, %100 : vector<160x40xf32>
    %102 = arith.select %99, %97, %101 : vector<160x40xi1>, vector<160x40xf32>
    %103 = vector.shape_cast %102 : vector<160x40xf32> to vector<10x16x40xf32>
    %104 = tpu.iota {dimensions = array<i32: 1>} : vector<10x16x1xi32>
    %c1_i32_67 = arith.constant 1 : i32
    %105 = vector.broadcast %c1_i32_67 : i32 to vector<10x16x1xi32>
    %106 = arith.cmpi sge, %104, %105 : vector<10x16x1xi32>
    %c8_i32_68 = arith.constant 8 : i32
    %107 = vector.broadcast %c8_i32_68 : i32 to vector<10x16x1xi32>
    %108 = arith.cmpi sle, %104, %107 : vector<10x16x1xi32>
    %109 = arith.andi %106, %108 : vector<10x16x1xi1>
    %c10_i32 = arith.constant 10 : i32
    %110 = arith.muli %arg1, %c10_i32 : i32
    %111 = tpu.iota {dimensions = array<i32: 0>} : vector<10x16x1xi32>
    %112 = vector.broadcast %110 : i32 to vector<10x16x1xi32>
    %113 = arith.addi %112, %111 : vector<10x16x1xi32>
    %c1_i32_69 = arith.constant 1 : i32
    %114 = vector.broadcast %c1_i32_69 : i32 to vector<10x16x1xi32>
    %115 = arith.cmpi sge, %113, %114 : vector<10x16x1xi32>
    %c8_i32_70 = arith.constant 8 : i32
    %116 = vector.broadcast %c8_i32_70 : i32 to vector<10x16x1xi32>
    %117 = arith.cmpi sle, %113, %116 : vector<10x16x1xi32>
    %118 = arith.andi %115, %117 : vector<10x16x1xi1>
    %119 = arith.andi %109, %118 : vector<10x16x1xi1>
    %cst_71 = arith.constant 0.000000e+00 : f32
    %120 = vector.shape_cast %119 : vector<10x16x1xi1> to vector<10x16x1xi1>
    %121 = vector.broadcast %120 : vector<10x16x1xi1> to vector<10x16x40xi1>
    %122 = vector.broadcast %cst_71 : f32 to vector<10x16x40xf32>
    %123 = arith.select %121, %103, %122 : vector<10x16x40xi1>, vector<10x16x40xf32>
    %c0_72 = arith.constant 0 : index
    %c0_73 = arith.constant 0 : index
    %c0_74 = arith.constant 0 : index
    %c0_75 = arith.constant 0 : index
    %124 = vector.load %arg7[%c0_72, %c0_73, %c0_74, %c0_75] : memref<1x10x16x40xf32, #tpu.memory_space<vmem>>, vector<1x10x16x40xf32>
    %125 = vector.shape_cast %124 : vector<1x10x16x40xf32> to vector<10x16x40xf32>
    %126 = vector.shape_cast %123 : vector<10x16x40xf32> to vector<1x10x16x40xf32>
    tpu.vector_store %arg7[%c0_72, %c0_73, %c0_74, %c0_75], %126 {strides = array<i32>} : memref<1x10x16x40xf32, #tpu.memory_space<vmem>>, vector<1x10x16x40xf32>,
    return
  }
  func.func @transform_1(%arg0: i32, %arg1: i32) -> (i32, i32, i32) {
    %c0_i32 = arith.constant 0 : i32
    %c0_i32_0 = arith.constant 0 : i32
    %c0_i32_1 = arith.constant 0 : i32
    %c0_i32_2 = arith.constant 0 : i32
    return %c0_i32, %c0_i32_0, %c0_i32_1 : i32, i32, i32
  }
  func.func @transform_2(%arg0: i32, %arg1: i32) -> (i32, i32) {
    %c0_i32 = arith.constant 0 : i32
    %c0_i32_0 = arith.constant 0 : i32
    %c0_i32_1 = arith.constant 0 : i32
    return %c0_i32, %c0_i32_0 : i32, i32
  }
  func.func @transform_3(%arg0: i32, %arg1: i32) -> (i32, i32) {
    %c0_i32 = arith.constant 0 : i32
    %c0_i32_0 = arith.constant 0 : i32
    %c0_i32_1 = arith.constant 0 : i32
    return %c0_i32, %c0_i32_0 : i32, i32
  }
  func.func @transform_4(%arg0: i32, %arg1: i32) -> (i32, i32) {
    %c0_i32 = arith.constant 0 : i32
    %c0_i32_0 = arith.constant 0 : i32
    %c0_i32_1 = arith.constant 0 : i32
    return %c0_i32, %c0_i32_0 : i32, i32
  }
  func.func @transform_5(%arg0: i32, %arg1: i32) -> (i32, i32, i32, i32) {
    %c0_i32 = arith.constant 0 : i32
    %c0_i32_0 = arith.constant 0 : i32
    %c0_i32_1 = arith.constant 0 : i32
    return %arg0, %arg1, %c0_i32, %c0_i32_0 : i32, i32, i32, i32
  }
}

module attributes {stable_mosaic.version = 11 : i64} {
  func.func @kernel(%arg0: i32, %arg1: i32, %arg2: memref<320x40xf32, #tpu.memory_space<any>>, %arg3: memref<9x40x40xf32, #tpu.memory_space<vmem>>, %arg4: memref<1x40xf32, #tpu.memory_space<vmem>>, %arg5: memref<1x8x16x40xf32, #tpu.memory_space<vmem>>, %arg6: memref<352x40xf32, #tpu.memory_space<vmem>>, %arg7: memref<2x!tpu.dma_semaphore, #tpu.memory_space<semaphore_mem>>) attributes {dimension_semantics = [#tpu.dimension_semantics<parallel>, #tpu.dimension_semantics<arbitrary>], iteration_bounds = array<i64: 2, 1>, scalar_prefetch = 0 : i64, scratch_operands = 2 : i64, tpu.core_type = #tpu.core_type<tc>, window_params = [{}, {pipeline_mode = #tpu.pipeline_mode<synchronous>, transform_indices = @transform_1, window_bounds = array<i64: 9, 40, 40>}, {pipeline_mode = #tpu.pipeline_mode<synchronous>, transform_indices = @transform_2, window_bounds = array<i64: 1, 40>}, {transform_indices = @transform_3, window_bounds = array<i64: 1, 8, 16, 40>}]} {
    %c2_i32 = arith.constant 2 : i32
    %0 = arith.remsi %arg1, %c2_i32 : i32
    %c0_i32 = arith.constant 0 : i32
    %1 = arith.cmpi eq, %arg1, %c0_i32 : i32
    %2 = arith.extui %1 : i1 to i32
    %c0_i32_0 = arith.constant 0 : i32
    %3 = arith.cmpi ne, %2, %c0_i32_0 : i32
    scf.if %3 {
      %c160_i32 = arith.constant 160 : i32
      %106 = arith.muli %arg0, %c160_i32 : i32
      %c8_i32_68 = arith.constant 8 : i32
      %107 = arith.muli %arg1, %c8_i32_68 : i32
      %c16_i32_69 = arith.constant 16 : i32
      %108 = arith.muli %107, %c16_i32_69 : i32
      %109 = arith.addi %106, %108 : i32
      %110 = tpu.assume_multiple %109, 8 : i32
      %c176_i32_70 = arith.constant 176 : i32
      %111 = arith.muli %0, %c176_i32_70 : i32
      %c8_i32_71 = arith.constant 8 : i32
      %112 = arith.addi %111, %c8_i32_71 : i32
      %113 = tpu.assume_multiple %112, 8 : i32
      %c0_i32_72 = arith.constant 0 : i32
      %114 = tpu.memref_slice %arg2[%110, %c0_i32_72] : memref<320x40xf32, #tpu.memory_space<any>> -> memref<160x40xf32, #tpu.memory_space<any>>
      %c0_i32_73 = arith.constant 0 : i32
      %115 = tpu.memref_slice %arg6[%113, %c0_i32_73] : memref<352x40xf32, #tpu.memory_space<vmem>> -> memref<160x40xf32, #tpu.memory_space<vmem>>
      %116 = tpu.memref_slice %arg7[%0] : memref<2x!tpu.dma_semaphore, #tpu.memory_space<semaphore_mem>> -> memref<1x!tpu.dma_semaphore, #tpu.memory_space<semaphore_mem>>
      %117 = tpu.memref_squeeze %116 : memref<1x!tpu.dma_semaphore, #tpu.memory_space<semaphore_mem>> -> memref<!tpu.dma_semaphore, #tpu.memory_space<semaphore_mem>>
      tpu.enqueue_dma source(%114 : memref<160x40xf32, #tpu.memory_space<any>>) target(%115 : memref<160x40xf32, #tpu.memory_space<vmem>>) target_semaphore(%117 : memref<!tpu.dma_semaphore, #tpu.memory_space<semaphore_mem>>)
    } else {
    }
    %c176_i32 = arith.constant 176 : i32
    %4 = arith.muli %0, %c176_i32 : i32
    %c8_i32 = arith.constant 8 : i32
    %5 = arith.addi %4, %c8_i32 : i32
    %c0_i32_1 = arith.constant 0 : i32
    %c0_i32_2 = arith.constant 0 : i32
    %6 = tpu.memref_slice %arg2[%c0_i32_1, %c0_i32_2] : memref<320x40xf32, #tpu.memory_space<any>> -> memref<160x40xf32, #tpu.memory_space<any>>
    %c0_i32_3 = arith.constant 0 : i32
    %7 = tpu.memref_slice %arg6[%5, %c0_i32_3] : memref<352x40xf32, #tpu.memory_space<vmem>> -> memref<160x40xf32, #tpu.memory_space<vmem>>
    %8 = tpu.memref_slice %arg7[%0] : memref<2x!tpu.dma_semaphore, #tpu.memory_space<semaphore_mem>> -> memref<1x!tpu.dma_semaphore, #tpu.memory_space<semaphore_mem>>
    %9 = tpu.memref_squeeze %8 : memref<1x!tpu.dma_semaphore, #tpu.memory_space<semaphore_mem>> -> memref<!tpu.dma_semaphore, #tpu.memory_space<semaphore_mem>>
    tpu.wait_dma2 semaphore(%9 : memref<!tpu.dma_semaphore, #tpu.memory_space<semaphore_mem>>) src(%6 : memref<160x40xf32, #tpu.memory_space<any>>) dst(%7 : memref<160x40xf32, #tpu.memory_space<vmem>>)
    %c1_i32 = arith.constant 1 : i32
    %10 = arith.addi %arg1, %c1_i32 : i32
    %c1_i32_4 = arith.constant 1 : i32
    %11 = arith.cmpi slt, %10, %c1_i32_4 : i32
    %12 = arith.extui %11 : i1 to i32
    %c0_i32_5 = arith.constant 0 : i32
    %13 = arith.cmpi ne, %12, %c0_i32_5 : i32
    scf.if %13 {
      %c1_i32_68 = arith.constant 1 : i32
      %106 = arith.addi %arg1, %c1_i32_68 : i32
      %c1_i32_69 = arith.constant 1 : i32
      %107 = arith.subi %c1_i32_69, %0 : i32
      %c160_i32 = arith.constant 160 : i32
      %108 = arith.muli %arg0, %c160_i32 : i32
      %c8_i32_70 = arith.constant 8 : i32
      %109 = arith.muli %106, %c8_i32_70 : i32
      %c16_i32_71 = arith.constant 16 : i32
      %110 = arith.muli %109, %c16_i32_71 : i32
      %111 = arith.addi %108, %110 : i32
      %112 = tpu.assume_multiple %111, 8 : i32
      %c176_i32_72 = arith.constant 176 : i32
      %113 = arith.muli %107, %c176_i32_72 : i32
      %c8_i32_73 = arith.constant 8 : i32
      %114 = arith.addi %113, %c8_i32_73 : i32
      %115 = tpu.assume_multiple %114, 8 : i32
      %c0_i32_74 = arith.constant 0 : i32
      %116 = tpu.memref_slice %arg2[%112, %c0_i32_74] : memref<320x40xf32, #tpu.memory_space<any>> -> memref<160x40xf32, #tpu.memory_space<any>>
      %c0_i32_75 = arith.constant 0 : i32
      %117 = tpu.memref_slice %arg6[%115, %c0_i32_75] : memref<352x40xf32, #tpu.memory_space<vmem>> -> memref<160x40xf32, #tpu.memory_space<vmem>>
      %118 = tpu.memref_slice %arg7[%107] : memref<2x!tpu.dma_semaphore, #tpu.memory_space<semaphore_mem>> -> memref<1x!tpu.dma_semaphore, #tpu.memory_space<semaphore_mem>>
      %119 = tpu.memref_squeeze %118 : memref<1x!tpu.dma_semaphore, #tpu.memory_space<semaphore_mem>> -> memref<!tpu.dma_semaphore, #tpu.memory_space<semaphore_mem>>
      tpu.enqueue_dma source(%116 : memref<160x40xf32, #tpu.memory_space<any>>) target(%117 : memref<160x40xf32, #tpu.memory_space<vmem>>) target_semaphore(%119 : memref<!tpu.dma_semaphore, #tpu.memory_space<semaphore_mem>>)
    } else {
    }
    %c176_i32_6 = arith.constant 176 : i32
    %14 = arith.muli %0, %c176_i32_6 : i32
    %c7_i32 = arith.constant 7 : i32
    %15 = arith.addi %14, %c7_i32 : i32
    %cst = arith.constant 0.000000e+00 : f32
    %16 = vector.broadcast %cst : f32 to vector<128x40xf32>
    %c0_i32_7 = arith.constant 0 : i32
    %17 = arith.addi %15, %c0_i32_7 : i32
    %c0_i32_8 = arith.constant 0 : i32
    %18 = arith.addi %17, %c0_i32_8 : i32
    %19 = arith.index_cast %18 : i32 to index
    %c0 = arith.constant 0 : index
    %20 = vector.load %arg6[%19, %c0] : memref<352x40xf32, #tpu.memory_space<vmem>>, vector<128x40xf32>
    %c0_9 = arith.constant 0 : index
    %c0_10 = arith.constant 0 : index
    %c0_11 = arith.constant 0 : index
    %21 = vector.load %arg3[%c0_9, %c0_10, %c0_11] : memref<9x40x40xf32, #tpu.memory_space<vmem>>, vector<1x40x40xf32>
    %22 = vector.shape_cast %21 : vector<1x40x40xf32> to vector<40x40xf32>
    %cst_12 = arith.constant dense<0.000000e+00> : vector<128x40xf32>
    %23 = tpu.matmul %20, %22, %cst_12 {dimension_numbers = #tpu.dot_dimension_numbers<[1], [0], [0], [1], [0, 0, 1, 1], [], []>} : vector<128x40xf32>, vector<40x40xf32>, vector<128x40xf32> -> vector<128x40xf32>
    %24 = arith.addf %16, %23 : vector<128x40xf32>
    %c0_i32_13 = arith.constant 0 : i32
    %25 = arith.addi %15, %c0_i32_13 : i32
    %c1_i32_14 = arith.constant 1 : i32
    %26 = arith.addi %25, %c1_i32_14 : i32
    %27 = arith.index_cast %26 : i32 to index
    %c0_15 = arith.constant 0 : index
    %28 = vector.load %arg6[%27, %c0_15] : memref<352x40xf32, #tpu.memory_space<vmem>>, vector<128x40xf32>
    %c1 = arith.constant 1 : index
    %c0_16 = arith.constant 0 : index
    %c0_17 = arith.constant 0 : index
    %29 = vector.load %arg3[%c1, %c0_16, %c0_17] : memref<9x40x40xf32, #tpu.memory_space<vmem>>, vector<1x40x40xf32>
    %30 = vector.shape_cast %29 : vector<1x40x40xf32> to vector<40x40xf32>
    %cst_18 = arith.constant dense<0.000000e+00> : vector<128x40xf32>
    %31 = tpu.matmul %28, %30, %cst_18 {dimension_numbers = #tpu.dot_dimension_numbers<[1], [0], [0], [1], [0, 0, 1, 1], [], []>} : vector<128x40xf32>, vector<40x40xf32>, vector<128x40xf32> -> vector<128x40xf32>
    %32 = arith.addf %24, %31 : vector<128x40xf32>
    %c0_i32_19 = arith.constant 0 : i32
    %33 = arith.addi %15, %c0_i32_19 : i32
    %c2_i32_20 = arith.constant 2 : i32
    %34 = arith.addi %33, %c2_i32_20 : i32
    %35 = arith.index_cast %34 : i32 to index
    %c0_21 = arith.constant 0 : index
    %36 = vector.load %arg6[%35, %c0_21] : memref<352x40xf32, #tpu.memory_space<vmem>>, vector<128x40xf32>
    %c2 = arith.constant 2 : index
    %c0_22 = arith.constant 0 : index
    %c0_23 = arith.constant 0 : index
    %37 = vector.load %arg3[%c2, %c0_22, %c0_23] : memref<9x40x40xf32, #tpu.memory_space<vmem>>, vector<1x40x40xf32>
    %38 = vector.shape_cast %37 : vector<1x40x40xf32> to vector<40x40xf32>
    %cst_24 = arith.constant dense<0.000000e+00> : vector<128x40xf32>
    %39 = tpu.matmul %36, %38, %cst_24 {dimension_numbers = #tpu.dot_dimension_numbers<[1], [0], [0], [1], [0, 0, 1, 1], [], []>} : vector<128x40xf32>, vector<40x40xf32>, vector<128x40xf32> -> vector<128x40xf32>
    %40 = arith.addf %32, %39 : vector<128x40xf32>
    %c16_i32 = arith.constant 16 : i32
    %41 = arith.addi %15, %c16_i32 : i32
    %c0_i32_25 = arith.constant 0 : i32
    %42 = arith.addi %41, %c0_i32_25 : i32
    %43 = arith.index_cast %42 : i32 to index
    %c0_26 = arith.constant 0 : index
    %44 = vector.load %arg6[%43, %c0_26] : memref<352x40xf32, #tpu.memory_space<vmem>>, vector<128x40xf32>
    %c3 = arith.constant 3 : index
    %c0_27 = arith.constant 0 : index
    %c0_28 = arith.constant 0 : index
    %45 = vector.load %arg3[%c3, %c0_27, %c0_28] : memref<9x40x40xf32, #tpu.memory_space<vmem>>, vector<1x40x40xf32>
    %46 = vector.shape_cast %45 : vector<1x40x40xf32> to vector<40x40xf32>
    %cst_29 = arith.constant dense<0.000000e+00> : vector<128x40xf32>
    %47 = tpu.matmul %44, %46, %cst_29 {dimension_numbers = #tpu.dot_dimension_numbers<[1], [0], [0], [1], [0, 0, 1, 1], [], []>} : vector<128x40xf32>, vector<40x40xf32>, vector<128x40xf32> -> vector<128x40xf32>
    %48 = arith.addf %40, %47 : vector<128x40xf32>
    %c16_i32_30 = arith.constant 16 : i32
    %49 = arith.addi %15, %c16_i32_30 : i32
    %c1_i32_31 = arith.constant 1 : i32
    %50 = arith.addi %49, %c1_i32_31 : i32
    %51 = arith.index_cast %50 : i32 to index
    %c0_32 = arith.constant 0 : index
    %52 = vector.load %arg6[%51, %c0_32] : memref<352x40xf32, #tpu.memory_space<vmem>>, vector<128x40xf32>
    %c4 = arith.constant 4 : index
    %c0_33 = arith.constant 0 : index
    %c0_34 = arith.constant 0 : index
    %53 = vector.load %arg3[%c4, %c0_33, %c0_34] : memref<9x40x40xf32, #tpu.memory_space<vmem>>, vector<1x40x40xf32>
    %54 = vector.shape_cast %53 : vector<1x40x40xf32> to vector<40x40xf32>
    %cst_35 = arith.constant dense<0.000000e+00> : vector<128x40xf32>
    %55 = tpu.matmul %52, %54, %cst_35 {dimension_numbers = #tpu.dot_dimension_numbers<[1], [0], [0], [1], [0, 0, 1, 1], [], []>} : vector<128x40xf32>, vector<40x40xf32>, vector<128x40xf32> -> vector<128x40xf32>
    %56 = arith.addf %48, %55 : vector<128x40xf32>
    %c16_i32_36 = arith.constant 16 : i32
    %57 = arith.addi %15, %c16_i32_36 : i32
    %c2_i32_37 = arith.constant 2 : i32
    %58 = arith.addi %57, %c2_i32_37 : i32
    %59 = arith.index_cast %58 : i32 to index
    %c0_38 = arith.constant 0 : index
    %60 = vector.load %arg6[%59, %c0_38] : memref<352x40xf32, #tpu.memory_space<vmem>>, vector<128x40xf32>
    %c5 = arith.constant 5 : index
    %c0_39 = arith.constant 0 : index
    %c0_40 = arith.constant 0 : index
    %61 = vector.load %arg3[%c5, %c0_39, %c0_40] : memref<9x40x40xf32, #tpu.memory_space<vmem>>, vector<1x40x40xf32>
    %62 = vector.shape_cast %61 : vector<1x40x40xf32> to vector<40x40xf32>
    %cst_41 = arith.constant dense<0.000000e+00> : vector<128x40xf32>
    %63 = tpu.matmul %60, %62, %cst_41 {dimension_numbers = #tpu.dot_dimension_numbers<[1], [0], [0], [1], [0, 0, 1, 1], [], []>} : vector<128x40xf32>, vector<40x40xf32>, vector<128x40xf32> -> vector<128x40xf32>
    %64 = arith.addf %56, %63 : vector<128x40xf32>
    %c32_i32 = arith.constant 32 : i32
    %65 = arith.addi %15, %c32_i32 : i32
    %c0_i32_42 = arith.constant 0 : i32
    %66 = arith.addi %65, %c0_i32_42 : i32
    %67 = arith.index_cast %66 : i32 to index
    %c0_43 = arith.constant 0 : index
    %68 = vector.load %arg6[%67, %c0_43] : memref<352x40xf32, #tpu.memory_space<vmem>>, vector<128x40xf32>
    %c6 = arith.constant 6 : index
    %c0_44 = arith.constant 0 : index
    %c0_45 = arith.constant 0 : index
    %69 = vector.load %arg3[%c6, %c0_44, %c0_45] : memref<9x40x40xf32, #tpu.memory_space<vmem>>, vector<1x40x40xf32>
    %70 = vector.shape_cast %69 : vector<1x40x40xf32> to vector<40x40xf32>
    %cst_46 = arith.constant dense<0.000000e+00> : vector<128x40xf32>
    %71 = tpu.matmul %68, %70, %cst_46 {dimension_numbers = #tpu.dot_dimension_numbers<[1], [0], [0], [1], [0, 0, 1, 1], [], []>} : vector<128x40xf32>, vector<40x40xf32>, vector<128x40xf32> -> vector<128x40xf32>
    %72 = arith.addf %64, %71 : vector<128x40xf32>
    %c32_i32_47 = arith.constant 32 : i32
    %73 = arith.addi %15, %c32_i32_47 : i32
    %c1_i32_48 = arith.constant 1 : i32
    %74 = arith.addi %73, %c1_i32_48 : i32
    %75 = arith.index_cast %74 : i32 to index
    %c0_49 = arith.constant 0 : index
    %76 = vector.load %arg6[%75, %c0_49] : memref<352x40xf32, #tpu.memory_space<vmem>>, vector<128x40xf32>
    %c7 = arith.constant 7 : index
    %c0_50 = arith.constant 0 : index
    %c0_51 = arith.constant 0 : index
    %77 = vector.load %arg3[%c7, %c0_50, %c0_51] : memref<9x40x40xf32, #tpu.memory_space<vmem>>, vector<1x40x40xf32>
    %78 = vector.shape_cast %77 : vector<1x40x40xf32> to vector<40x40xf32>
    %cst_52 = arith.constant dense<0.000000e+00> : vector<128x40xf32>
    %79 = tpu.matmul %76, %78, %cst_52 {dimension_numbers = #tpu.dot_dimension_numbers<[1], [0], [0], [1], [0, 0, 1, 1], [], []>} : vector<128x40xf32>, vector<40x40xf32>, vector<128x40xf32> -> vector<128x40xf32>
    %80 = arith.addf %72, %79 : vector<128x40xf32>
    %c32_i32_53 = arith.constant 32 : i32
    %81 = arith.addi %15, %c32_i32_53 : i32
    %c2_i32_54 = arith.constant 2 : i32
    %82 = arith.addi %81, %c2_i32_54 : i32
    %83 = arith.index_cast %82 : i32 to index
    %c0_55 = arith.constant 0 : index
    %84 = vector.load %arg6[%83, %c0_55] : memref<352x40xf32, #tpu.memory_space<vmem>>, vector<128x40xf32>
    %c8 = arith.constant 8 : index
    %c0_56 = arith.constant 0 : index
    %c0_57 = arith.constant 0 : index
    %85 = vector.load %arg3[%c8, %c0_56, %c0_57] : memref<9x40x40xf32, #tpu.memory_space<vmem>>, vector<1x40x40xf32>
    %86 = vector.shape_cast %85 : vector<1x40x40xf32> to vector<40x40xf32>
    %cst_58 = arith.constant dense<0.000000e+00> : vector<128x40xf32>
    %87 = tpu.matmul %84, %86, %cst_58 {dimension_numbers = #tpu.dot_dimension_numbers<[1], [0], [0], [1], [0, 0, 1, 1], [], []>} : vector<128x40xf32>, vector<40x40xf32>, vector<128x40xf32> -> vector<128x40xf32>
    %88 = arith.addf %80, %87 : vector<128x40xf32>
    %c0_59 = arith.constant 0 : index
    %c0_60 = arith.constant 0 : index
    %89 = vector.load %arg4[%c0_59, %c0_60] : memref<1x40xf32, #tpu.memory_space<vmem>>, vector<1x40xf32>
    %90 = vector.broadcast %89 : vector<1x40xf32> to vector<128x40xf32>
    %91 = arith.addf %88, %90 : vector<128x40xf32>
    %92 = vector.shape_cast %91 : vector<128x40xf32> to vector<8x16x40xf32>
    %93 = tpu.iota {dimensions = array<i32: 1>} : vector<8x16x1xi32>
    %c1_i32_61 = arith.constant 1 : i32
    %94 = vector.broadcast %c1_i32_61 : i32 to vector<8x16x1xi32>
    %95 = arith.cmpi sge, %93, %94 : vector<8x16x1xi32>
    %c8_i32_62 = arith.constant 8 : i32
    %96 = vector.broadcast %c8_i32_62 : i32 to vector<8x16x1xi32>
    %97 = arith.cmpi sle, %93, %96 : vector<8x16x1xi32>
    %98 = arith.andi %95, %97 : vector<8x16x1xi1>
    %cst_63 = arith.constant 0.000000e+00 : f32
    %99 = vector.shape_cast %98 : vector<8x16x1xi1> to vector<8x16x1xi1>
    %100 = vector.broadcast %99 : vector<8x16x1xi1> to vector<8x16x40xi1>
    %101 = vector.broadcast %cst_63 : f32 to vector<8x16x40xf32>
    %102 = arith.select %100, %92, %101 : vector<8x16x40xi1>, vector<8x16x40xf32>
    %c0_64 = arith.constant 0 : index
    %c0_65 = arith.constant 0 : index
    %c0_66 = arith.constant 0 : index
    %c0_67 = arith.constant 0 : index
    %103 = vector.load %arg5[%c0_64, %c0_65, %c0_66, %c0_67] : memref<1x8x16x40xf32, #tpu.memory_space<vmem>>, vector<1x8x16x40xf32>
    %104 = vector.shape_cast %103 : vector<1x8x16x40xf32> to vector<8x16x40xf32>
    %105 = vector.shape_cast %102 : vector<8x16x40xf32> to vector<1x8x16x40xf32>
    tpu.vector_store %arg5[%c0_64, %c0_65, %c0_66, %c0_67], %105 {strides = array<i32>} : memref<1x8x16x40xf32, #tpu.memory_space<vmem>>, vector<1x8x16x40xf32>,
    return
  }
  func.func @transform_1(%arg0: i32, %arg1: i32) -> (i32, i32, i32) {
    %c0_i32 = arith.constant 0 : i32
    %c0_i32_0 = arith.constant 0 : i32
    %c0_i32_1 = arith.constant 0 : i32
    %c0_i32_2 = arith.constant 0 : i32
    return %c0_i32, %c0_i32_0, %c0_i32_1 : i32, i32, i32
  }
  func.func @transform_2(%arg0: i32, %arg1: i32) -> (i32, i32) {
    %c0_i32 = arith.constant 0 : i32
    %c0_i32_0 = arith.constant 0 : i32
    %c0_i32_1 = arith.constant 0 : i32
    return %c0_i32, %c0_i32_0 : i32, i32
  }
  func.func @transform_3(%arg0: i32, %arg1: i32) -> (i32, i32, i32, i32) {
    %c0_i32 = arith.constant 0 : i32
    %c0_i32_0 = arith.constant 0 : i32
    %c0_i32_1 = arith.constant 0 : i32
    return %arg0, %arg1, %c0_i32, %c0_i32_0 : i32, i32, i32, i32
  }
}

</mosaic_0001>

<bundles_post_ra>
// kernel: tile.19
= control target key start
LH: loop header
LB: loop body
LE: loop exit
PB: predicated region body
PF: predicated region fallthrough
CT: control target
= control target key end

     0   :  { %s22_s0 = inlined_call_operand.vmem [shape: f32[4], index: 0, kind: input, shape index: {}]   ;;  %s23_s1 = inlined_call_operand.vmem [shape: f32[8,4], index: 1, kind: output, shape index: {}]  }
   0x1   :  { %v4_v0 = vld [vmem:[%s22_s0] ss:$0 sm:$0xff] }
   0x2   :  { %5 = vst [vmem:[%s23_s1] sm:$0xff] %v4_v0 }

// kernel: tile.30
= control target key start
LH: loop header
LB: loop body
LE: loop exit
PB: predicated region body
PF: predicated region fallthrough
CT: control target
= control target key end

     0   :  { %2 = vsyncpa [#allocation1], 0  ;;  %s42_s6 = smov [#allocation0]   ;;  %s59_s0 = inlined_call_operand.hbm [shape: f32[4], index: 0, kind: input, shape index: {}]   ;;  %s60_s1 = inlined_call_operand.vmem [shape: f32[8,4], index: 1, kind: output, shape index: {}]  }
   0x1   :  { %s9_s7 = sshll.u32 %s42_s6, 4  ;;  %s10_s7 = int_to_ptr.vmem [resolvable:$true] %s9_s7 }
   0x2   :  { %s28_s8 = scalar_lea.vmem %s10_s7, 16  ;;  %s32_s9 = scalar_lea.vmem %s10_s7, 32 }
   0x3   :  { %p29_p0 = scmp.ne.s32.totalorder %s10_s7, %s28_s8  ;;  %p33_p1 = scmp.lt.s32.totalorder %s10_s7, %s10_s7 }
   0x4   :  { %p34_p2 = scmp.lt.s32.totalorder %s32_s9, %s28_s8 }
   0x6   :  { %p35_p3 = por %p34_p2, %p33_p1 }
   0x8   :  { %p36_p4 = pnand %p35_p3, %p29_p0 }
   0xa   :  { %39 = shalt.err (!%p36_p4)
}
   0xb   :  { %12 = dma.hbm_to_vmem [thread:$0]  %s59_s0, 16, %s10_s7, [#allocation1]  }
   0xc   :  { %40 = dma.done.wait [#allocation1], 16  }
   0xd   :  { %41 = vsyncadd [#allocation1], 4294967280  ;;  %v16_v0 = vld [vmem:[#allocation0] ss:$0 sm:$0xff] }
   0xe   :  { %17 = vst [vmem:[%s60_s1] sm:$0xff] %v16_v0 }
   0xf   :  { %18 = vsyncpa [#allocation1], 1 }

// kernel: mul.21
= control target key start
LH: loop header
LB: loop body
LE: loop exit
PB: predicated region body
PF: predicated region fallthrough
CT: control target
= control target key end

     0   :  { %s69_s10 = smov 28   ;;  %s70_s11 = smov 20   ;;  %vm3_vm0 = vcmask 31744   ;;  %vm9_vm1 = vcmask 261344   ;;  %vm15_vm2 = vcmask 228544   ;;  %vm21_vm3 = vcmask 195744   ;;  %s113_s0 = inlined_call_operand.vmem [shape: f32[8,4], index: 0, kind: input, shape index: {}]   ;;  %s114_s1 = inlined_call_operand.vmem [shape: f32[32], index: 1, kind: output, shape index: {}]  }
   0x1   :  { %v55_v0 = vld [vmem:[%s113_s0 + $0x7] sm:$0x1]   ;;  %v57_v1 = vld [vmem:[%s113_s0 + $0x5] sm:$0x1]   ;;  %v56_v2 = vld [vmem:[%s113_s0 + $0x6] sm:$0x1]  }
   0x2   :  { %7 = vrot.lane.b32.xlu0 %v55_v0, %s69_s10  ;;  %19 = vrot.lane.b32.xlu1 %v57_v1, %s70_s11  ;;  %v58_v3 = vld [vmem:[%s113_s0 + $0x4] sm:$0x1]   ;;  %v2_v4 = vld [vmem:[%s113_s0] sm:$0x1]   ;;  %s71_s18 = smov 24   ;;  %s72_s19 = smov 16  }
   0x3   :  { %4 = vst.msk [vmem:[#allocation0] sm:$0x1] %vm3_vm0, %v2_v4   ;;  %v59_v5 = vld [vmem:[%s113_s0 + $0x3] sm:$0x1]   ;;  %v60_v6 = vld [vmem:[%s113_s0 + $0x2] sm:$0x1]  }
   0x4   :  { %s73_s24 = smov 12   ;;  %s74_s25 = smov 8   ;;  %v61_v7 = vld [vmem:[%s113_s0 + $0x1] sm:$0x1]   ;;  %vm27_vm4 = vcmask 162944   ;;  %vm33_vm5 = vcmask 130144  }
   0x5   :  { %s75_s0 = smov 4   ;;  %vm39_vm6 = vcmask 97344   ;;  %vm45_vm7 = vcmask 64544  }
   0x6   :  { %13 = vrot.lane.b32.xlu0 %v56_v2, %s71_s18  ;;  %25 = vrot.lane.b32.xlu1 %v58_v3, %s72_s19 }
   0xa   :  { %31 = vrot.lane.b32.xlu0 %v59_v5, %s73_s24  ;;  %37 = vrot.lane.b32.xlu1 %v60_v6, %s74_s25 }
   0xe   :  { %43 = vrot.lane.b32.xlu0 %v61_v7, %s75_s0 }
  0x74   :  { %v8_v8 = vpop.permute.xlu0 %7   ;;  %v20_v9 = vpop.permute.xlu1 %19  }
  0x75   :  { %10 = vst.msk [vmem:[#allocation0] sm:$0x1] %vm9_vm1, %v8_v8  }
  0x78   :  { %v14_v10 = vpop.permute.xlu0 %13   ;;  %v26_v11 = vpop.permute.xlu1 %25  }
  0x79   :  { %16 = vst.msk [vmem:[#allocation0] sm:$0x1] %vm15_vm2, %v14_v10  }
  0x7a   :  { %22 = vst.msk [vmem:[#allocation0] sm:$0x1] %vm21_vm3, %v20_v9  }
  0x7b   :  { %28 = vst.msk [vmem:[#allocation0] sm:$0x1] %vm27_vm4, %v26_v11  }
  0x7c   :  { %v32_v12 = vpop.permute.xlu0 %31   ;;  %v38_v13 = vpop.permute.xlu1 %37  }
  0x7d   :  { %34 = vst.msk [vmem:[#allocation0] sm:$0x1] %vm33_vm5, %v32_v12  }
  0x7e   :  { %40 = vst.msk [vmem:[#allocation0] sm:$0x1] %vm39_vm6, %v38_v13  }
  0x80   :  { %v44_v14 = vpop.permute.xlu0 %43  }
  0x81   :  { %46 = vst.msk [vmem:[#allocation0] sm:$0x1] %vm45_vm7, %v44_v14  }
  0x88   :  { %v51_v15 = vld [vmem:[#allocation0] sm:$0x1] }
  0x89   :  { %54 = vst [vmem:[%s114_s1] sm:$0x1] %v51_v15 }

// kernel: res_up_block_forward.3
= control target key start
LH: loop header
LB: loop body
LE: loop exit
PB: predicated region body
PF: predicated region fallthrough
CT: control target
= control target key end

     0   :  { %s495_s12 = smov 0   ;;  %s547_s0 = inlined_call_operand.vmem [shape: f32[128,4], index: 0, kind: input, shape index: {}]   ;;  %s548_s1 = inlined_call_operand.vmem [shape: f32[4,32], index: 1, kind: input, shape index: {}]   ;;  %s549_s2 = inlined_call_operand.vmem [shape: f32[1,32], index: 2, kind: input, shape index: {}]   ;;  %s550_s3 = inlined_call_operand.vmem [shape: f32[128,32], index: 3, kind: output, shape index: {}]  }
   0x1 LB: > { %s413_s13 = sadd.s32 4294967295, %s473_s12   ;;  %p417_p0 = scmp.ge.s32.totalorder %s473_s12, 1  ;;  %s473_s12 = sphi %s495_s12, %s13_s12  }
   0x2   : > { %p138_p1 = scmp.lt.s32.totalorder %s473_s12, 3 }
   0x4   : > { %p139_p2 = pnand %p417_p0, %p138_p1 }
   0x5   : > { %s418_s16 = sshll.u32 (!%p139_p2), %s413_s13, 3 }
   0x6   : > { %142 = sbr.rel (%p139_p2) target bundleno = 222 (0xde), region = 32  ;;  %p163_p3 = scmp.lt.s32.totalorder (!%p139_p2), %s418_s16, 15 }
   0xb   : > { %v182_v0 = vld [vmem:[%s548_s1] sm:$0xf]  ;;  %vm215_vm0 = vcmask 1043456   ;;  %s552_s16 = smov (!%p163_p3, %s418_s16), 15  ;;  %vm190_vm1 = vcmask 31744   ;;  %vm348_vm2 = vcmask 261120  }
   0xc   : > { %443 = vmatprep.subr.msk.mxu0 %vm215_vm0, %v182_v0  ;;  %457 = vmatprep.subr.msk.mxu1 %vm215_vm0, %v182_v0  ;;  %s419_s17 = sshll.u32 %s552_s16, 3  ;;  %v422_v9 = vld [vmem:[%s549_s2] ss:$0 sm:$0xff] }
   0xd   : > { %444 = vmatpush3.msk.msra.mxu0 %vm215_vm0, %v182_v0  ;;  %458 = vmatpush3.msk.msra.mxu1 %vm215_vm0, %v182_v0  ;;  %s166_s20 = scalar_lea.vmem %s547_s0, %s419_s17  ;;  %s526_s25 = scalar_lea.vmem %s550_s3, %s419_s17 }
   0xe   : > { %v174_v1 = vld [vmem:[%s166_s20] sm:$0xff]  ;;  %v175_v3 = vld [vmem:[%s166_s20 + $0x8] sm:$0xff]  ;;  %v176_v5 = vld [vmem:[%s166_s20 + $0x10] sm:$0xff] }
   0xf   : > { %v178_v2 = vld [vmem:[%s166_s20 + $0x20] sm:$0xff]  ;;  %445 = vmatprep.mubr.msk.f32.mxu0 %vm190_vm1, %v174_v1  ;;  %v179_v4 = vld [vmem:[%s166_s20 + $0x28] sm:$0xff]  ;;  %v180_v6 = vld [vmem:[%s166_s20 + $0x30] sm:$0xff] }
  0x10   : > { %451 = vmatprep.mubr.msk.f32.mxu1 %vm190_vm1, %v178_v2  ;;  %446 = vmatmul.mubr.msk.f32.vlgmr.msra.gmra.mxu0 %vm190_vm1, %v175_v3  ;;  %v177_v7 = vld [vmem:[%s166_s20 + $0x18] sm:$0xff] }
  0x11   : > { %452 = vmatmul.mubr.msk.f32.vlgmr.msra.gmra.mxu1 %vm190_vm1, %v179_v4  ;;  %448 = vmatprep.mubr.msk.f32.mxu0 %vm190_vm1, %v176_v5  ;;  %v181_v8 = vld [vmem:[%s166_s20 + $0x38] sm:$0xff] }
  0x12   : > { %454 = vmatprep.mubr.msk.f32.mxu1 %vm190_vm1, %v180_v6 }
  0x14   : > { %449 = vmatmul.mubr.msk.f32.gmra.mxu0 %vm190_vm1, %v177_v7 }
  0x15   : > { %455 = vmatmul.mubr.msk.f32.gmra.mxu1 %vm190_vm1, %v181_v8 }
  0xd0   : > { %v447_v10 = vpop.f32.mrf.mxu0 }
  0xd1   : > { %v453_v11 = vpop.f32.mrf.mxu1  ;;  %v291_v12 = vadd.f32 %v447_v10, %v422_v9 }
  0xd2   : > { %v311_v13 = vadd.f32 %v453_v11, %v422_v9  ;;  %v285_v14 = vpop.f32.mrf.mxu0 }
  0xd3   : > { %v305_v15 = vpop.f32.mrf.mxu1  ;;  %vm325_vm3 = vcmp.ge.f32.partialorder %v291_v12, 0.0  ;;  %v333_v16 = vmul.f32 0.22916667, %v291_v12  ;;  %v286_v18 = vadd.f32 %v422_v9, %v285_v14 }
  0xd4   : > { %vm329_vm4 = vcmp.ge.f32.partialorder %v311_v13, 0.0  ;;  %v337_v17 = vmul.f32 0.22916667, %v311_v13  ;;  %v306_v19 = vadd.f32 %v422_v9, %v305_v15  ;;  %v450_v20 = vpop.f32.mrf.mxu0 }
  0xd5   : > { %v456_v21 = vpop.f32.mrf.mxu1  ;;  %v341_v22 = vsel %vm325_vm3, %v291_v12, %v333_v16  ;;  %v301_v24 = vadd.f32 %v450_v20, %v422_v9  ;;  %vm324_vm5 = vcmp.ge.f32.partialorder %v286_v18, 0.0  ;;  %v332_v26 = vmul.f32 0.22916667, %v286_v18 }
  0xd6   : > { %v345_v23 = vsel %vm329_vm4, %v311_v13, %v337_v17  ;;  %v321_v25 = vadd.f32 %v456_v21, %v422_v9  ;;  %350 = vst.msk [vmem:[%s526_s25 + $0x8] sm:$0xff] %vm348_vm2, %v341_v22  ;;  %vm328_vm6 = vcmp.ge.f32.partialorder %v306_v19, 0.0  ;;  %v336_v27 = vmul.f32 0.22916667, %v306_v19  ;;  %v295_v28 = vpop.f32.mrf.mxu0 }
  0xd7   : > { %354 = vst.msk [vmem:[%s526_s25 + $0x28] sm:$0xff] %vm348_vm2, %v345_v23  ;;  %v315_v29 = vpop.f32.mrf.mxu1  ;;  %vm327_vm7 = vcmp.ge.f32.partialorder %v301_v24, 0.0  ;;  %v335_v30 = vmul.f32 0.22916667, %v301_v24  ;;  %v340_v32 = vsel %vm324_vm5, %v286_v18, %v332_v26  ;;  %v296_v34 = vadd.f32 %v422_v9, %v295_v28 }
  0xd8   : > { %vm331_vm8 = vcmp.ge.f32.partialorder %v321_v25, 0.0  ;;  %v339_v31 = vmul.f32 0.22916667, %v321_v25  ;;  %v344_v33 = vsel %vm328_vm6, %v306_v19, %v336_v27  ;;  %v316_v35 = vadd.f32 %v422_v9, %v315_v29  ;;  %349 = vst.msk [vmem:[%s526_s25] sm:$0xff] %vm348_vm2, %v340_v32 }
  0xd9   : > { %353 = vst.msk [vmem:[%s526_s25 + $0x20] sm:$0xff] %vm348_vm2, %v344_v33  ;;  %v343_v36 = vsel %vm327_vm7, %v301_v24, %v335_v30  ;;  %vm326_vm9 = vcmp.ge.f32.partialorder %v296_v34, 0.0  ;;  %v334_v38 = vmul.f32 0.22916667, %v296_v34 }
  0xda   : > { %v347_v37 = vsel %vm331_vm8, %v321_v25, %v339_v31  ;;  %352 = vst.msk [vmem:[%s526_s25 + $0x18] sm:$0xff] %vm348_vm2, %v343_v36  ;;  %vm330_vm10 = vcmp.ge.f32.partialorder %v316_v35, 0.0  ;;  %v338_v39 = vmul.f32 0.22916667, %v316_v35 }
  0xdb   : > { %356 = vst.msk [vmem:[%s526_s25 + $0x38] sm:$0xff] %vm348_vm2, %v347_v37  ;;  %v342_v40 = vsel %vm326_vm9, %v296_v34, %v334_v38 }
  0xdc   : > { %v346_v41 = vsel %vm330_vm10, %v316_v35, %v338_v39  ;;  %351 = vst.msk [vmem:[%s526_s25 + $0x10] sm:$0xff] %vm348_vm2, %v342_v40 }
  0xdd   : > { %355 = vst.msk [vmem:[%s526_s25 + $0x30] sm:$0xff] %vm348_vm2, %v346_v41 }
  0xde PF: > { %s13_s12 = sadd.s32 1, %s473_s12  }
  0xdf   : > { %p10_p4 = scmp.ge.s32.totalorder %s13_s12, 4  }
  0xe1   :  { %12 = sbr.rel (!%p10_p4) target bundleno = 1 (0x1), region = 62 }

// kernel: res_up_block_forward.4
= control target key start
LH: loop header
LB: loop body
LE: loop exit
PB: predicated region body
PF: predicated region fallthrough
CT: control target
= control target key end

     0   :  { %s4673_s18 = smov 0   ;;  %s4675_s19 = smov 0   ;;  %s5768_s0 = inlined_call_operand.vmem [shape: f32[384,80], index: 0, kind: input, shape index: {}]   ;;  %s5769_s1 = inlined_call_operand.vmem [shape: f32[9,80,40], index: 1, kind: input, shape index: {}]   ;;  %s5770_s2 = inlined_call_operand.vmem [shape: f32[1,40], index: 2, kind: input, shape index: {}]   ;;  %s5771_s3 = inlined_call_operand.vmem [shape: f32[1,40], index: 3, kind: input, shape index: {}]   ;;  %s5772_s4 = inlined_call_operand.vmem [shape: f32[1,40], index: 4, kind: input, shape index: {}]   ;;  %s5773_s5 = inlined_call_operand.vmem [shape: f32[2,10,16,40], index: 5, kind: output, shape index: {}]  }
   0x1   :  { %s4677_s20 = smov 0  }
   0x2 LB: > { %s27_s21 = sadd.s32 1, %s4636_s19  ;;  %p3325_p0 = scmp.ge.s32.totalorder %s4640_s20, 1  ;;  %s4640_s20 = sphi %s4677_s20, %s15_s20   ;;  %s4636_s19 = sphi %s4675_s19, %s5775_s19   ;;  %s4632_s18 = sphi %s4673_s18, %s5774_s18  }
   0x3   : > { %p29_p1 = scmp.ge.s32.totalorder %s27_s21, 2  ;;  %p167_p2 = scmp.lt.s32.totalorder %s4640_s20, 3 }
   0x5   : > { %s5777_s21 = smov (%p29_p1, %s27_s21), 0  ;;  %p168_p3 = pnand %p3325_p0, %p167_p2 }
   0x6   : > { %p194_p4 = scmp.lt.s32.totalorder (!%p168_p3), %s4632_s18, 1  ;;  %s214_s22 = smul.u32 (!%p168_p3), 192, %s4632_s18 }
   0x7   : > { %171 = sbr.rel (%p168_p3) target bundleno = 443 (0x1bb), region = 36 }
   0x8   : > { %s4694_s25 = scalar_lea.vmem (!%p168_p3), %s5768_s0, %s214_s22 }
   0xc   : > { %s5779_s18 = smov (!%p194_p4, %s4632_s18), 1  ;;  %v255_v0 = vld [vmem:[%s4694_s25] sm:$0xff]  ;;  %v257_v1 = vld [vmem:[%s4694_s25 + $0x8] sm:$0xff]  ;;  %v259_v2 = vld [vmem:[%s4694_s25 + $0x10] sm:$0xff] }
   0xd   : > { %s4590_s26 = smul.u32 160, %s5779_s18  ;;  %3327 = vst [vmem:[#allocation2 + $0x8] sm:$0xff] %v255_v0  ;;  %3328 = vst [vmem:[#allocation2 + $0x10] sm:$0xff] %v257_v1  ;;  %v261_v3 = vld [vmem:[%s4694_s25 + $0x18] sm:$0xff]  ;;  %v263_v4 = vld [vmem:[%s4694_s25 + $0x20] sm:$0xff] }
   0xe   : > { %3329 = vst [vmem:[#allocation2 + $0x18] sm:$0xff] %v259_v2  ;;  %v265_v5 = vld [vmem:[%s4694_s25 + $0x28] sm:$0xff]  ;;  %3330 = vst [vmem:[#allocation2 + $0x20] sm:$0xff] %v261_v3  ;;  %v267_v6 = vld [vmem:[%s4694_s25 + $0x30] sm:$0xff] }
   0xf   : > { %s4705_s29 = scalar_lea.vmem %s5773_s5, %s4590_s26  ;;  %3331 = vst [vmem:[#allocation2 + $0x28] sm:$0xff] %v263_v4  ;;  %3332 = vst [vmem:[#allocation2 + $0x30] sm:$0xff] %v265_v5  ;;  %v269_v7 = vld [vmem:[%s4694_s25 + $0x38] sm:$0xff]  ;;  %v271_v8 = vld [vmem:[%s4694_s25 + $0x40] sm:$0xff] }
  0x10   : > { %3333 = vst [vmem:[#allocation2 + $0x38] sm:$0xff] %v267_v6  ;;  %3334 = vst [vmem:[#allocation2 + $0x40] sm:$0xff] %v269_v7  ;;  %v273_v9 = vld [vmem:[%s4694_s25 + $0x48] sm:$0xff]  ;;  %v275_v10 = vld [vmem:[%s4694_s25 + $0x50] sm:$0xff] }
  0x11   : > { %3335 = vst [vmem:[#allocation2 + $0x48] sm:$0xff] %v271_v8  ;;  %v277_v11 = vld [vmem:[%s4694_s25 + $0x58] sm:$0xff]  ;;  %3336 = vst [vmem:[#allocation2 + $0x50] sm:$0xff] %v273_v9  ;;  %v279_v12 = vld [vmem:[%s4694_s25 + $0x60] sm:$0xff] }
  0x12   : > { %3337 = vst [vmem:[#allocation2 + $0x58] sm:$0xff] %v275_v10  ;;  %3338 = vst [vmem:[#allocation2 + $0x60] sm:$0xff] %v277_v11  ;;  %v281_v13 = vld [vmem:[%s4694_s25 + $0x68] sm:$0xff]  ;;  %v283_v14 = vld [vmem:[%s4694_s25 + $0x70] sm:$0xff] }
  0x13   : > { %3339 = vst [vmem:[#allocation2 + $0x68] sm:$0xff] %v279_v12  ;;  %3340 = vst [vmem:[#allocation2 + $0x70] sm:$0xff] %v281_v13  ;;  %v285_v15 = vld [vmem:[%s4694_s25 + $0x78] sm:$0xff]  ;;  %v287_v16 = vld [vmem:[%s4694_s25 + $0x80] sm:$0xff] }
  0x14   : > { %3341 = vst [vmem:[#allocation2 + $0x78] sm:$0xff] %v283_v14  ;;  %v289_v17 = vld [vmem:[%s4694_s25 + $0x88] sm:$0xff]  ;;  %3342 = vst [vmem:[#allocation2 + $0x80] sm:$0xff] %v285_v15  ;;  %v291_v18 = vld [vmem:[%s4694_s25 + $0x90] sm:$0xff] }
  0x15   : > { %3343 = vst [vmem:[#allocation2 + $0x88] sm:$0xff] %v287_v16  ;;  %3344 = vst [vmem:[#allocation2 + $0x90] sm:$0xff] %v289_v17  ;;  %v293_v19 = vld [vmem:[%s4694_s25 + $0x98] sm:$0xff]  ;;  %v295_v20 = vld [vmem:[%s4694_s25 + $0xa0] sm:$0xff] }
  0x16   : > { %3345 = vst [vmem:[#allocation2 + $0x98] sm:$0xff] %v291_v18  ;;  %3346 = vst [vmem:[#allocation2 + $0xa0] sm:$0xff] %v293_v19  ;;  %v297_v21 = vld [vmem:[%s4694_s25 + $0xa8] sm:$0xff]  ;;  %v299_v22 = vld [vmem:[%s4694_s25 + $0xb0] sm:$0xff] }
  0x17   : > { %3347 = vst [vmem:[#allocation2 + $0xa8] sm:$0xff] %v295_v20  ;;  %v301_v23 = vld [vmem:[%s4694_s25 + $0xb8] sm:$0xff]  ;;  %3348 = vst [vmem:[#allocation2 + $0xb0] sm:$0xff] %v297_v21 }
  0x18   : > { %3349 = vst [vmem:[#allocation2 + $0xb8] sm:$0xff] %v299_v22  ;;  %3350 = vst [vmem:[#allocation2 + $0xc0] sm:$0xff] %v301_v23 }
  0x19   : > { %310 = vsyncadd [#allocation3], 3072 }
  0x1a   : > { %4628 = dma.done.wait [#allocation3], 3072 }
  0x1b   : > { %4629 = vsyncadd [#allocation3], 4294964224  ;;  %v3452_v24 = vld [vmem:[%s5769_s1 + $0x98] sm:$0xff]  ;;  %v3451_v25 = vld [vmem:[%s5769_s1 + $0x90] sm:$0xff]  ;;  %vm484_vm0 = vcmask 654336   ;;  %vm3152_vm1 = vcmask 326656  }
  0x1c   : > { %4570 = vmatprep.subr.mxu1 %v3452_v24  ;;  %4120 = vmatprep.subr.mxu0 %v3452_v24  ;;  %v3450_v26 = vld [vmem:[%s5769_s1 + $0x88] sm:$0xff]  ;;  %v3449_v27 = vld [vmem:[%s5769_s1 + $0x80] sm:$0xff]  ;;  %v3448_v28 = vld [vmem:[%s5769_s1 + $0x78] sm:$0xff] }
  0x1d   : > { %4580 = vmatpush3.msra.mxu1 %v3452_v24  ;;  %4121 = vmatpush3.msra.mxu0 %v3452_v24  ;;  %v3447_v29 = vld [vmem:[%s5769_s1 + $0x70] sm:$0xff]  ;;  %v3446_v30 = vld [vmem:[%s5769_s1 + $0x68] sm:$0xff]  ;;  %v3445_v31 = vld [vmem:[%s5769_s1 + $0x60] sm:$0xff] }
  0x1e   : > { %4571 = vmatprep.subr.mxu1 %v3451_v25  ;;  %4122 = vmatprep.subr.mxu0 %v3451_v25  ;;  %v3444_v32 = vld [vmem:[%s5769_s1 + $0x58] sm:$0xff]  ;;  %v3443_v33 = vld [vmem:[%s5769_s1 + $0x50] sm:$0xff]  ;;  %v3423_v35 = vld [vmem:[#allocation2 + $0x8] sm:$0xff] }
  0x1f   : > { %4581 = vmatpush3.msra.mxu1 %v3451_v25  ;;  %4123 = vmatpush3.msra.mxu0 %v3451_v25  ;;  %v4755_v34 = vld [vmem:[#allocation2 + $0x58] sm:$0xff]  ;;  %v4757_v36 = vld [vmem:[#allocation2 + $0x60] sm:$0xff]  ;;  %v451_v37 = vld [vmem:[%s5769_s1 + $0x48] sm:$0xff] }
  0x20   : > { %4572 = vmatprep.subr.mxu1 %v3450_v26  ;;  %4124 = vmatprep.subr.mxu0 %v3450_v26  ;;  %v3424_v38 = vld [vmem:[#allocation2 + $0x10] sm:$0xff]  ;;  %v3522_v39 = vld [vmem:[%s5769_s1 + $0xe8] sm:$0xff]  ;;  %v450_v40 = vld [vmem:[%s5769_s1 + $0x40] sm:$0xff] }
  0x21   : > { %4582 = vmatpush3.msra.mxu1 %v3450_v26  ;;  %4125 = vmatpush3.msra.mxu0 %v3450_v26  ;;  %v4773_v41 = vld [vmem:[#allocation2 + $0x68] sm:$0xff]  ;;  %v3521_v42 = vld [vmem:[%s5769_s1 + $0xe0] sm:$0xff]  ;;  %v4779_v43 = vld [vmem:[#allocation2 + $0x18] sm:$0xff] }
  0x22   : > { %4573 = vmatprep.subr.mxu1 %v3449_v27  ;;  %4126 = vmatprep.subr.mxu0 %v3449_v27  ;;  %v4781_v44 = vld [vmem:[#allocation2 + $0x70] sm:$0xff]  ;;  %v449_v45 = vld [vmem:[%s5769_s1 + $0x38] sm:$0xff]  ;;  %v4788_v46 = vld [vmem:[#allocation2 + $0x20] sm:$0xff] }
  0x23   : > { %4583 = vmatpush3.msra.mxu1 %v3449_v27  ;;  %4127 = vmatpush3.msra.mxu0 %v3449_v27  ;;  %v3520_v47 = vld [vmem:[%s5769_s1 + $0xd8] sm:$0xff]  ;;  %v448_v48 = vld [vmem:[%s5769_s1 + $0x30] sm:$0xff]  ;;  %v4807_v51 = vld [vmem:[#allocation2 + $0x28] sm:$0xff] }
  0x24   : > { %4574 = vmatprep.subr.mxu1 %v3448_v28  ;;  %4128 = vmatprep.subr.mxu0 %v3448_v28  ;;  %v4800_v49 = vld [vmem:[#allocation2 + $0x78] sm:$0xff]  ;;  %v3519_v50 = vld [vmem:[%s5769_s1 + $0xd0] sm:$0xff]  ;;  %v4809_v52 = vld [vmem:[#allocation2 + $0x80] sm:$0xff] }
  0x25   : > { %4584 = vmatpush3.msra.mxu1 %v3448_v28  ;;  %4129 = vmatpush3.msra.mxu0 %v3448_v28  ;;  %v447_v53 = vld [vmem:[%s5769_s1 + $0x28] sm:$0xff]  ;;  %v4816_v54 = vld [vmem:[#allocation2 + $0x30] sm:$0xff]  ;;  %v446_v56 = vld [vmem:[%s5769_s1 + $0x20] sm:$0xff] }
  0x26   : > { %4575 = vmatprep.subr.mxu1 %v3447_v29  ;;  %4130 = vmatprep.subr.mxu0 %v3447_v29  ;;  %v3518_v55 = vld [vmem:[%s5769_s1 + $0xc8] sm:$0xff]  ;;  %v3517_v58 = vld [vmem:[%s5769_s1 + $0xc0] sm:$0xff]  ;;  %v4835_v59 = vld [vmem:[#allocation2 + $0x38] sm:$0xff] }
  0x27   : > { %4585 = vmatpush3.msra.mxu1 %v3447_v29  ;;  %4131 = vmatpush3.msra.mxu0 %v3447_v29  ;;  %v4828_v57 = vld [vmem:[#allocation2 + $0x88] sm:$0xff]  ;;  %v4837_v60 = vld [vmem:[#allocation2 + $0x90] sm:$0xff]  ;;  %v445_v61 = vld [vmem:[%s5769_s1 + $0x18] sm:$0xff] }
  0x28   : > { %4576 = vmatprep.subr.mxu1 %v3446_v30  ;;  %4132 = vmatprep.subr.mxu0 %v3446_v30  ;;  %v4844_v62 = vld [vmem:[#allocation2 + $0x40] sm:$0xff]  ;;  %v3516_v63 = vld [vmem:[%s5769_s1 + $0xb8] sm:$0xff]  ;;  %v444_v0 = vld [vmem:[%s5769_s1 + $0x10] sm:$0xff] }
  0x29   : > { %4586 = vmatpush3.msra.mxu1 %v3446_v30  ;;  %4133 = vmatpush3.msra.mxu0 %v3446_v30  ;;  %v4856_v1 = vld [vmem:[#allocation2 + $0x98] sm:$0xff]  ;;  %v3515_v2 = vld [vmem:[%s5769_s1 + $0xb0] sm:$0xff]  ;;  %v4863_v3 = vld [vmem:[#allocation2 + $0x48] sm:$0xff] }
  0x2a   : > { %4577 = vmatprep.subr.mxu1 %v3445_v31  ;;  %4134 = vmatprep.subr.mxu0 %v3445_v31  ;;  %v4865_v4 = vld [vmem:[#allocation2 + $0xa0] sm:$0xff]  ;;  %v443_v5 = vld [vmem:[%s5769_s1 + $0x8] sm:$0xff]  ;;  %v4872_v6 = vld [vmem:[#allocation2 + $0x50] sm:$0xff] }
  0x2b   : > { %4587 = vmatpush3.msra.mxu1 %v3445_v31  ;;  %4135 = vmatpush3.msra.mxu0 %v3445_v31  ;;  %v3514_v7 = vld [vmem:[%s5769_s1 + $0xa8] sm:$0xff]  ;;  %v442_v8 = vld [vmem:[%s5769_s1] sm:$0xff]  ;;  %v3572_v13 = vld [vmem:[%s5769_s1 + $0x138] sm:$0xff] }
  0x2c   : > { %4578 = vmatprep.subr.mxu1 %v3444_v32  ;;  %4136 = vmatprep.subr.mxu0 %v3444_v32  ;;  %v3403_v9 = vld [vmem:[#allocation2 + $0x7] sm:$0xff]  ;;  %v3404_v11 = vld [vmem:[#allocation2 + $0xf] sm:$0xff]  ;;  %v4897_v16 = vld [vmem:[#allocation2 + $0x17] sm:$0xff] }
  0x2d   : > { %4588 = vmatpush3.msra.mxu1 %v3444_v32  ;;  %4137 = vmatpush3.msra.mxu0 %v3444_v32  ;;  %v3513_v10 = vld [vmem:[%s5769_s1 + $0xa0] sm:$0xff]  ;;  %v3493_v12 = vld [vmem:[#allocation2 + $0x9] sm:$0xff]  ;;  %v3494_v14 = vld [vmem:[#allocation2 + $0x11] sm:$0xff] }
  0x2e   : > { %4579 = vmatprep.subr.mxu1 %v3443_v33  ;;  %4138 = vmatprep.subr.mxu0 %v3443_v33  ;;  %v3622_v15 = vld [vmem:[%s5769_s1 + $0x188] sm:$0xff]  ;;  %v4900_v17 = vld [vmem:[#allocation2 + $0x1f] sm:$0xff]  ;;  %v3571_v19 = vld [vmem:[%s5769_s1 + $0x130] sm:$0xff] }
  0x2f   : > { %4589 = vmatpush3.msra.mxu1 %v3443_v33  ;;  %4155 = vmatprep.mubr.msk.f32.mxu1 %vm484_vm0, %v4755_v34  ;;  %v4903_v18 = vld [vmem:[#allocation2 + $0x19] sm:$0xff]  ;;  %v4910_v20 = vld [vmem:[#allocation2 + $0x21] sm:$0xff]  ;;  %v4921_v23 = vld [vmem:[#allocation2 + $0x2f] sm:$0xff] }
  0x30   : > { %4139 = vmatpush3.msra.mxu0 %v3443_v33  ;;  %4140 = vmatprep.mubr.msk.f32.mxu0 %vm484_vm0, %v3423_v35  ;;  %v3621_v21 = vld [vmem:[%s5769_s1 + $0x180] sm:$0xff]  ;;  %v4925_v24 = vld [vmem:[#allocation2 + $0x29] sm:$0xff]  ;;  %v4932_v26 = vld [vmem:[#allocation2 + $0x31] sm:$0xff] }
  0x31   : > { %4156 = vmatmul.mubr.msk.f32.vlgmr.msra.gmra.mxu1 %vm484_vm0, %v4757_v36  ;;  %4170 = vmatprep.subr.mxu1 %v451_v37  ;;  %v4917_v22 = vld [vmem:[#allocation2 + $0x27] sm:$0xff]  ;;  %v3620_v27 = vld [vmem:[%s5769_s1 + $0x178] sm:$0xff]  ;;  %v3619_v33 = vld [vmem:[%s5769_s1 + $0x170] sm:$0xff] }
  0x32   : > { %4141 = vmatmul.mubr.msk.f32.vlgmr.msra.gmra.mxu0 %vm484_vm0, %v3424_v38  ;;  %4171 = vmatpush3.msra.mxu1 %v451_v37  ;;  %v3570_v25 = vld [vmem:[%s5769_s1 + $0x128] sm:$0xff]  ;;  %v4939_v28 = vld [vmem:[#allocation2 + $0x37] sm:$0xff]  ;;  %v4943_v29 = vld [vmem:[#allocation2 + $0x3f] sm:$0xff] }
  0x33   : > { %4220 = vmatprep.subr.mxu0 %v3522_v39  ;;  %4172 = vmatprep.subr.mxu1 %v450_v40  ;;  %v4947_v30 = vld [vmem:[#allocation2 + $0x39] sm:$0xff]  ;;  %v4954_v32 = vld [vmem:[#allocation2 + $0x41] sm:$0xff]  ;;  %v4965_v37 = vld [vmem:[#allocation2 + $0x4f] sm:$0xff] }
  0x34   : > { %4221 = vmatpush3.msra.mxu0 %v3522_v39  ;;  %4158 = vmatprep.mubr.msk.f32.mxu1 %vm484_vm0, %v4773_v41  ;;  %v3569_v31 = vld [vmem:[%s5769_s1 + $0x120] sm:$0xff]  ;;  %v4969_v38 = vld [vmem:[#allocation2 + $0x49] sm:$0xff]  ;;  %v3568_v39 = vld [vmem:[%s5769_s1 + $0x118] sm:$0xff] }
  0x35   : > { %4173 = vmatpush3.msra.mxu1 %v450_v40  ;;  %4222 = vmatprep.subr.mxu0 %v3521_v42  ;;  %v4961_v35 = vld [vmem:[#allocation2 + $0x47] sm:$0xff]  ;;  %v4976_v40 = vld [vmem:[#allocation2 + $0x51] sm:$0xff] }
  0x36   : > { %4143 = vmatprep.mubr.msk.f32.mxu0 %vm484_vm0, %v4779_v43  ;;  %4159 = vmatmul.mubr.msk.f32.gmra.mxu1 %vm484_vm0, %v4781_v44 }
  0x37   : > { %4174 = vmatprep.subr.mxu1 %v449_v45  ;;  %4223 = vmatpush3.msra.mxu0 %v3521_v42  ;;  %v3618_v42 = vld [vmem:[%s5769_s1 + $0x168] sm:$0xff] }
  0x38   : > { %4144 = vmatmul.mubr.msk.f32.gmra.mxu0 %vm484_vm0, %v4788_v46  ;;  %4175 = vmatpush3.msra.mxu1 %v449_v45  ;;  %v4983_v45 = vld [vmem:[#allocation2 + $0x57] sm:$0xff] }
  0x39   : > { %4224 = vmatprep.subr.mxu0 %v3520_v47  ;;  %4176 = vmatprep.subr.mxu1 %v448_v48 }
  0x3a   : > { %4225 = vmatpush3.msra.mxu0 %v3520_v47  ;;  %4161 = vmatprep.mubr.msk.f32.mxu1 %vm484_vm0, %v4800_v49  ;;  %v4987_v47 = vld [vmem:[#allocation2 + $0x5f] sm:$0xff] }
  0x3b   : > { %4177 = vmatpush3.msra.mxu1 %v448_v48  ;;  %4226 = vmatprep.subr.mxu0 %v3519_v50  ;;  %v4991_v48 = vld [vmem:[#allocation2 + $0x59] sm:$0xff] }
  0x3c   : > { %4146 = vmatprep.mubr.msk.f32.mxu0 %vm484_vm0, %v4807_v51  ;;  %4162 = vmatmul.mubr.msk.f32.gmra.mxu1 %vm484_vm0, %v4809_v52 }
  0x3d   : > { %4178 = vmatprep.subr.mxu1 %v447_v53  ;;  %4227 = vmatpush3.msra.mxu0 %v3519_v50  ;;  %v3567_v50 = vld [vmem:[%s5769_s1 + $0x110] sm:$0xff] }
  0x3e   : > { %4147 = vmatmul.mubr.msk.f32.gmra.mxu0 %vm484_vm0, %v4816_v54  ;;  %4179 = vmatpush3.msra.mxu1 %v447_v53  ;;  %v4998_v53 = vld [vmem:[#allocation2 + $0x61] sm:$0xff] }
  0x3f   : > { %4228 = vmatprep.subr.mxu0 %v3518_v55  ;;  %4180 = vmatprep.subr.mxu1 %v446_v56 }
  0x40   : > { %4229 = vmatpush3.msra.mxu0 %v3518_v55  ;;  %4164 = vmatprep.mubr.msk.f32.mxu1 %vm484_vm0, %v4828_v57  ;;  %v3617_v55 = vld [vmem:[%s5769_s1 + $0x160] sm:$0xff] }
  0x41   : > { %4181 = vmatpush3.msra.mxu1 %v446_v56  ;;  %4230 = vmatprep.subr.mxu0 %v3517_v58  ;;  %v5005_v56 = vld [vmem:[#allocation2 + $0x67] sm:$0xff] }
  0x42   : > { %4149 = vmatprep.mubr.msk.f32.mxu0 %vm484_vm0, %v4835_v59  ;;  %4165 = vmatmul.mubr.msk.f32.gmra.mxu1 %vm484_vm0, %v4837_v60 }
  0x43   : > { %4182 = vmatprep.subr.mxu1 %v445_v61  ;;  %4231 = vmatpush3.msra.mxu0 %v3517_v58  ;;  %v5009_v58 = vld [vmem:[#allocation2 + $0x6f] sm:$0xff] }
  0x44   : > { %4150 = vmatmul.mubr.msk.f32.gmra.mxu0 %vm484_vm0, %v4844_v62  ;;  %4183 = vmatpush3.msra.mxu1 %v445_v61  ;;  %v5013_v61 = vld [vmem:[#allocation2 + $0x69] sm:$0xff] }
  0x45   : > { %4232 = vmatprep.subr.mxu0 %v3516_v63  ;;  %4184 = vmatprep.subr.mxu1 %v444_v0 }
  0x46   : > { %4233 = vmatpush3.msra.mxu0 %v3516_v63  ;;  %4167 = vmatprep.mubr.msk.f32.mxu1 %vm484_vm0, %v4856_v1  ;;  %v3566_v63 = vld [vmem:[%s5769_s1 + $0x108] sm:$0xff] }
  0x47   : > { %4185 = vmatpush3.msra.mxu1 %v444_v0  ;;  %4234 = vmatprep.subr.mxu0 %v3515_v2  ;;  %v5020_v0 = vld [vmem:[#allocation2 + $0x71] sm:$0xff] }
  0x48   : > { %4152 = vmatprep.mubr.msk.f32.mxu0 %vm484_vm0, %v4863_v3  ;;  %4168 = vmatmul.mubr.msk.f32.gmra.mxu1 %vm484_vm0, %v4865_v4 }
  0x49   : > { %4186 = vmatprep.subr.mxu1 %v443_v5  ;;  %4235 = vmatpush3.msra.mxu0 %v3515_v2  ;;  %v3616_v2 = vld [vmem:[%s5769_s1 + $0x158] sm:$0xff] }
  0x4a   : > { %4153 = vmatmul.mubr.msk.f32.gmra.mxu0 %vm484_vm0, %v4872_v6  ;;  %4187 = vmatpush3.msra.mxu1 %v443_v5  ;;  %v5027_v5 = vld [vmem:[#allocation2 + $0x77] sm:$0xff] }
  0x4b   : > { %4236 = vmatprep.subr.mxu0 %v3514_v7  ;;  %4188 = vmatprep.subr.mxu1 %v442_v8 }
  0x4c   : > { %4237 = vmatpush3.msra.mxu0 %v3514_v7  ;;  %4189 = vmatpush3.msra.mxu1 %v442_v8  ;;  %v5031_v7 = vld [vmem:[#allocation2 + $0x7f] sm:$0xff] }
  0x4d   : > { %4190 = vmatprep.mubr.msk.f32.mxu1 %vm484_vm0, %v3403_v9  ;;  %4238 = vmatprep.subr.mxu0 %v3513_v10  ;;  %v5035_v8 = vld [vmem:[#allocation2 + $0x79] sm:$0xff] }
  0x4e   : > { %4191 = vmatmul.mubr.msk.f32.vlgmr.msra.gmra.mxu1 %vm484_vm0, %v3404_v11  ;;  %4239 = vmatpush3.msra.mxu0 %v3513_v10  ;;  %v3565_v9 = vld [vmem:[%s5769_s1 + $0x100] sm:$0xff]  ;;  %v3615_v11 = vld [vmem:[%s5769_s1 + $0x150] sm:$0xff] }
  0x4f   : > { %4240 = vmatprep.mubr.msk.f32.mxu0 %vm484_vm0, %v3493_v12  ;;  %4270 = vmatprep.subr.mxu1 %v3572_v13  ;;  %v5042_v10 = vld [vmem:[#allocation2 + $0x81] sm:$0xff] }
  0x50   : > { %4241 = vmatmul.mubr.msk.f32.vlgmr.msra.gmra.mxu0 %vm484_vm0, %v3494_v14  ;;  %4271 = vmatpush3.msra.mxu1 %v3572_v13  ;;  %v5049_v12 = vld [vmem:[#allocation2 + $0x87] sm:$0xff]  ;;  %v5053_v13 = vld [vmem:[#allocation2 + $0x8f] sm:$0xff] }
  0x51   : > { %4320 = vmatprep.subr.mxu0 %v3622_v15  ;;  %4193 = vmatprep.mubr.msk.f32.mxu1 %vm484_vm0, %v4897_v16  ;;  %v5057_v14 = vld [vmem:[#allocation2 + $0x89] sm:$0xff] }
  0x52   : > { %4321 = vmatpush3.msra.mxu0 %v3622_v15  ;;  %4194 = vmatmul.mubr.msk.f32.gmra.mxu1 %vm484_vm0, %v4900_v17  ;;  %v3564_v15 = vld [vmem:[%s5769_s1 + $0xf8] sm:$0xff] }
  0x53   : > { %4243 = vmatprep.mubr.msk.f32.mxu0 %vm484_vm0, %v4903_v18  ;;  %4272 = vmatprep.subr.mxu1 %v3571_v19 }
  0x54   : > { %4244 = vmatmul.mubr.msk.f32.gmra.mxu0 %vm484_vm0, %v4910_v20  ;;  %4273 = vmatpush3.msra.mxu1 %v3571_v19  ;;  %v5064_v19 = vld [vmem:[#allocation2 + $0x91] sm:$0xff] }
  0x55   : > { %4322 = vmatprep.subr.mxu0 %v3621_v21  ;;  %4196 = vmatprep.mubr.msk.f32.mxu1 %vm484_vm0, %v4917_v22 }
  0x56   : > { %4323 = vmatpush3.msra.mxu0 %v3621_v21  ;;  %4197 = vmatmul.mubr.msk.f32.gmra.mxu1 %vm484_vm0, %v4921_v23  ;;  %v3614_v21 = vld [vmem:[%s5769_s1 + $0x148] sm:$0xff] }
  0x57   : > { %4246 = vmatprep.mubr.msk.f32.mxu0 %vm484_vm0, %v4925_v24  ;;  %4274 = vmatprep.subr.mxu1 %v3570_v25 }
  0x58   : > { %4247 = vmatmul.mubr.msk.f32.gmra.mxu0 %vm484_vm0, %v4932_v26  ;;  %4275 = vmatpush3.msra.mxu1 %v3570_v25  ;;  %v5071_v25 = vld [vmem:[#allocation2 + $0x97] sm:$0xff] }
  0x59   : > { %4324 = vmatprep.subr.mxu0 %v3620_v27  ;;  %4199 = vmatprep.mubr.msk.f32.mxu1 %vm484_vm0, %v4939_v28 }
  0x5a   : > { %4325 = vmatpush3.msra.mxu0 %v3620_v27  ;;  %4200 = vmatmul.mubr.msk.f32.gmra.mxu1 %vm484_vm0, %v4943_v29  ;;  %v5075_v27 = vld [vmem:[#allocation2 + $0x9f] sm:$0xff] }
  0x5b   : > { %4249 = vmatprep.mubr.msk.f32.mxu0 %vm484_vm0, %v4947_v30  ;;  %4276 = vmatprep.subr.mxu1 %v3569_v31 }
  0x5c   : > { %4250 = vmatmul.mubr.msk.f32.gmra.mxu0 %vm484_vm0, %v4954_v32  ;;  %4277 = vmatpush3.msra.mxu1 %v3569_v31  ;;  %v5079_v31 = vld [vmem:[#allocation2 + $0x99] sm:$0xff] }
  0x5d   : > { %4326 = vmatprep.subr.mxu0 %v3619_v33  ;;  %4202 = vmatprep.mubr.msk.f32.mxu1 %vm484_vm0, %v4961_v35 }
  0x5e   : > { %4327 = vmatpush3.msra.mxu0 %v3619_v33  ;;  %4203 = vmatmul.mubr.msk.f32.gmra.mxu1 %vm484_vm0, %v4965_v37  ;;  %v3563_v33 = vld [vmem:[%s5769_s1 + $0xf0] sm:$0xff] }
  0x5f   : > { %4252 = vmatprep.mubr.msk.f32.mxu0 %vm484_vm0, %v4969_v38  ;;  %4278 = vmatprep.subr.mxu1 %v3568_v39 }
  0x60   : > { %4253 = vmatmul.mubr.msk.f32.gmra.mxu0 %vm484_vm0, %v4976_v40  ;;  %4279 = vmatpush3.msra.mxu1 %v3568_v39  ;;  %v5086_v39 = vld [vmem:[#allocation2 + $0xa1] sm:$0xff] }
  0x61   : > { %4328 = vmatprep.subr.mxu0 %v3618_v42  ;;  %4205 = vmatprep.mubr.msk.f32.mxu1 %vm484_vm0, %v4983_v45 }
  0x62   : > { %4329 = vmatpush3.msra.mxu0 %v3618_v42  ;;  %4206 = vmatmul.mubr.msk.f32.gmra.mxu1 %vm484_vm0, %v4987_v47  ;;  %v3613_v42 = vld [vmem:[%s5769_s1 + $0x140] sm:$0xff] }
  0x63   : > { %4255 = vmatprep.mubr.msk.f32.mxu0 %vm484_vm0, %v4991_v48  ;;  %4280 = vmatprep.subr.mxu1 %v3567_v50 }
  0x64   : > { %4256 = vmatmul.mubr.msk.f32.gmra.mxu0 %vm484_vm0, %v4998_v53  ;;  %4281 = vmatpush3.msra.mxu1 %v3567_v50  ;;  %v3672_v50 = vld [vmem:[%s5769_s1 + $0x1d8] sm:$0xff] }
  0x65   : > { %4330 = vmatprep.subr.mxu0 %v3617_v55  ;;  %4208 = vmatprep.mubr.msk.f32.mxu1 %vm484_vm0, %v5005_v56 }
  0x66   : > { %4331 = vmatpush3.msra.mxu0 %v3617_v55  ;;  %4209 = vmatmul.mubr.msk.f32.gmra.mxu1 %vm484_vm0, %v5009_v58  ;;  %v3722_v55 = vld [vmem:[%s5769_s1 + $0x228] sm:$0xff] }
  0x67   : > { %4258 = vmatprep.mubr.msk.f32.mxu0 %vm484_vm0, %v5013_v61  ;;  %4282 = vmatprep.subr.mxu1 %v3566_v63 }
  0x68   : > { %4259 = vmatmul.mubr.msk.f32.gmra.mxu0 %vm484_vm0, %v5020_v0  ;;  %4283 = vmatpush3.msra.mxu1 %v3566_v63  ;;  %v3669_v63 = vld [vmem:[%s5769_s1 + $0x1c0] sm:$0xff] }
  0x69   : > { %4332 = vmatprep.subr.mxu0 %v3616_v2  ;;  %4211 = vmatprep.mubr.msk.f32.mxu1 %vm484_vm0, %v5027_v5 }
  0x6a   : > { %4333 = vmatpush3.msra.mxu0 %v3616_v2  ;;  %4212 = vmatmul.mubr.msk.f32.gmra.mxu1 %vm484_vm0, %v5031_v7  ;;  %v3719_v2 = vld [vmem:[%s5769_s1 + $0x210] sm:$0xff] }
  0x6b   : > { %4261 = vmatprep.mubr.msk.f32.mxu0 %vm484_vm0, %v5035_v8  ;;  %4284 = vmatprep.subr.mxu1 %v3565_v9 }
  0x6c   : > { %4262 = vmatmul.mubr.msk.f32.gmra.mxu0 %vm484_vm0, %v5042_v10  ;;  %4285 = vmatpush3.msra.mxu1 %v3565_v9  ;;  %v3668_v9 = vld [vmem:[%s5769_s1 + $0x1b8] sm:$0xff] }
  0x6d   : > { %4334 = vmatprep.subr.mxu0 %v3615_v11  ;;  %4214 = vmatprep.mubr.msk.f32.mxu1 %vm484_vm0, %v5049_v12 }
  0x6e   : > { %4335 = vmatpush3.msra.mxu0 %v3615_v11  ;;  %4215 = vmatmul.mubr.msk.f32.gmra.mxu1 %vm484_vm0, %v5053_v13  ;;  %v3718_v11 = vld [vmem:[%s5769_s1 + $0x208] sm:$0xff] }
  0x6f   : > { %4264 = vmatprep.mubr.msk.f32.mxu0 %vm484_vm0, %v5057_v14  ;;  %4286 = vmatprep.subr.mxu1 %v3564_v15 }
  0x70   : > { %4265 = vmatmul.mubr.msk.f32.gmra.mxu0 %vm484_vm0, %v5064_v19  ;;  %4287 = vmatpush3.msra.mxu1 %v3564_v15  ;;  %v3667_v15 = vld [vmem:[%s5769_s1 + $0x1b0] sm:$0xff] }
  0x71   : > { %4336 = vmatprep.subr.mxu0 %v3614_v21  ;;  %4217 = vmatprep.mubr.msk.f32.mxu1 %vm484_vm0, %v5071_v25 }
  0x72   : > { %4337 = vmatpush3.msra.mxu0 %v3614_v21  ;;  %4218 = vmatmul.mubr.msk.f32.gmra.mxu1 %vm484_vm0, %v5075_v27  ;;  %v3714_v21 = vld [vmem:[%s5769_s1 + $0x1e8] sm:$0xff] }
  0x73   : > { %4267 = vmatprep.mubr.msk.f32.mxu0 %vm484_vm0, %v5079_v31  ;;  %4288 = vmatprep.subr.mxu1 %v3563_v33 }
  0x74   : > { %4268 = vmatmul.mubr.msk.f32.gmra.mxu0 %vm484_vm0, %v5086_v39  ;;  %4289 = vmatpush3.msra.mxu1 %v3563_v33  ;;  %v5219_v33 = vld [vmem:[#allocation2 + $0xa7] sm:$0xff] }
  0x75   : > { %4338 = vmatprep.subr.mxu0 %v3613_v42  ;;  %4290 = vmatprep.mubr.msk.f32.mxu1 %vm484_vm0, %v4897_v16  ;;  %v3671_v16 = vld [vmem:[%s5769_s1 + $0x1d0] sm:$0xff] }
  0x76   : > { %4339 = vmatpush3.msra.mxu0 %v3613_v42  ;;  %4291 = vmatmul.mubr.msk.f32.vlgmr.msra.gmra.mxu1 %vm484_vm0, %v4900_v17  ;;  %v3720_v17 = vld [vmem:[%s5769_s1 + $0x218] sm:$0xff]  ;;  %v5223_v42 = vld [vmem:[#allocation2 + $0xaf] sm:$0xff] }
  0x77   : > { %4340 = vmatprep.mubr.msk.f32.mxu0 %vm484_vm0, %v4779_v43  ;;  %4370 = vmatprep.subr.mxu1 %v3672_v50  ;;  %v3721_v43 = vld [vmem:[%s5769_s1 + $0x220] sm:$0xff] }
  0x78   : > { %4341 = vmatmul.mubr.msk.f32.vlgmr.msra.gmra.mxu0 %vm484_vm0, %v4788_v46  ;;  %4371 = vmatpush3.msra.mxu1 %v3672_v50  ;;  %v3670_v46 = vld [vmem:[%s5769_s1 + $0x1c8] sm:$0xff] }
  0x79   : > { %4420 = vmatprep.subr.mxu0 %v3722_v55  ;;  %4293 = vmatprep.mubr.msk.f32.mxu1 %vm484_vm0, %v4917_v22  ;;  %v5227_v50 = vld [vmem:[#allocation2 + $0xa8] sm:$0xff] }
  0x7a   : > { %4421 = vmatpush3.msra.mxu0 %v3722_v55  ;;  %4294 = vmatmul.mubr.msk.f32.gmra.mxu1 %vm484_vm0, %v4921_v23  ;;  %v3663_v55 = vld [vmem:[%s5769_s1 + $0x190] sm:$0xff] }
  0x7b   : > { %4343 = vmatprep.mubr.msk.f32.mxu0 %vm484_vm0, %v4807_v51  ;;  %4372 = vmatprep.subr.mxu1 %v3671_v16 }
  0x7c   : > { %4344 = vmatmul.mubr.msk.f32.gmra.mxu0 %vm484_vm0, %v4816_v54  ;;  %4373 = vmatpush3.msra.mxu1 %v3671_v16  ;;  %v5234_v16 = vld [vmem:[#allocation2 + $0xb0] sm:$0xff] }
  0x7d   : > { %4422 = vmatprep.subr.mxu0 %v3721_v43  ;;  %4296 = vmatprep.mubr.msk.f32.mxu1 %vm484_vm0, %v4939_v28 }
  0x7e   : > { %4423 = vmatpush3.msra.mxu0 %v3721_v43  ;;  %4297 = vmatmul.mubr.msk.f32.gmra.mxu1 %vm484_vm0, %v4943_v29  ;;  %v3713_v43 = vld [vmem:[%s5769_s1 + $0x1e0] sm:$0xff] }
  0x7f   : > { %4346 = vmatprep.mubr.msk.f32.mxu0 %vm484_vm0, %v4835_v59  ;;  %4374 = vmatprep.subr.mxu1 %v3670_v46 }
  0x80   : > { %4347 = vmatmul.mubr.msk.f32.gmra.mxu0 %vm484_vm0, %v4844_v62  ;;  %4375 = vmatpush3.msra.mxu1 %v3670_v46  ;;  %v3772_v46 = vld [vmem:[%s5769_s1 + $0x278] sm:$0xff] }
  0x81   : > { %4424 = vmatprep.subr.mxu0 %v3720_v17  ;;  %4299 = vmatprep.mubr.msk.f32.mxu1 %vm484_vm0, %v4961_v35 }
  0x82   : > { %4425 = vmatpush3.msra.mxu0 %v3720_v17  ;;  %4300 = vmatmul.mubr.msk.f32.gmra.mxu1 %vm484_vm0, %v4965_v37  ;;  %v3822_v17 = vld [vmem:[%s5769_s1 + $0x2c8] sm:$0xff] }
  0x83   : > { %4349 = vmatprep.mubr.msk.f32.mxu0 %vm484_vm0, %v4863_v3  ;;  %4376 = vmatprep.subr.mxu1 %v3669_v63 }
  0x84   : > { %4350 = vmatmul.mubr.msk.f32.gmra.mxu0 %vm484_vm0, %v4872_v6  ;;  %4377 = vmatpush3.msra.mxu1 %v3669_v63  ;;  %v3711_v63 = vld [vmem:[#allocation2 + $0xb7] sm:$0xff] }
  0x85   : > { %4426 = vmatprep.subr.mxu0 %v3719_v2  ;;  %4302 = vmatprep.mubr.msk.f32.mxu1 %vm484_vm0, %v4983_v45 }
  0x86   : > { %4427 = vmatpush3.msra.mxu0 %v3719_v2  ;;  %4303 = vmatmul.mubr.msk.f32.gmra.mxu1 %vm484_vm0, %v4987_v47  ;;  %v3763_v2 = vld [vmem:[%s5769_s1 + $0x230] sm:$0xff] }
  0x87   : > { %4352 = vmatprep.mubr.msk.f32.mxu0 %vm484_vm0, %v4755_v34  ;;  %4378 = vmatprep.subr.mxu1 %v3668_v9  ;;  %v3717_v34 = vld [vmem:[%s5769_s1 + $0x200] sm:$0xff] }
  0x88   : > { %4353 = vmatmul.mubr.msk.f32.gmra.mxu0 %vm484_vm0, %v4757_v36  ;;  %4379 = vmatpush3.msra.mxu1 %v3668_v9  ;;  %v3666_v36 = vld [vmem:[%s5769_s1 + $0x1a8] sm:$0xff]  ;;  %v3712_v9 = vld [vmem:[#allocation2 + $0xbf] sm:$0xff] }
  0x89   : > { %4428 = vmatprep.subr.mxu0 %v3718_v11  ;;  %4305 = vmatprep.mubr.msk.f32.mxu1 %vm484_vm0, %v5005_v56 }
  0x8a   : > { %4429 = vmatpush3.msra.mxu0 %v3718_v11  ;;  %4306 = vmatmul.mubr.msk.f32.gmra.mxu1 %vm484_vm0, %v5009_v58  ;;  %v3813_v11 = vld [vmem:[%s5769_s1 + $0x280] sm:$0xff] }
  0x8b   : > { %4355 = vmatprep.mubr.msk.f32.mxu0 %vm484_vm0, %v4773_v41  ;;  %4380 = vmatprep.subr.mxu1 %v3667_v15  ;;  %v3716_v41 = vld [vmem:[%s5769_s1 + $0x1f8] sm:$0xff] }
  0x8c   : > { %4356 = vmatmul.mubr.msk.f32.gmra.mxu0 %vm484_vm0, %v4781_v44  ;;  %4381 = vmatpush3.msra.mxu1 %v3667_v15  ;;  %v3665_v44 = vld [vmem:[%s5769_s1 + $0x1a0] sm:$0xff] }
  0x8d   : > { %4430 = vmatprep.subr.mxu0 %v3717_v34  ;;  %4308 = vmatprep.mubr.msk.f32.mxu1 %vm484_vm0, %v5027_v5 }
  0x8e   : > { %4431 = vmatpush3.msra.mxu0 %v3717_v34  ;;  %4309 = vmatmul.mubr.msk.f32.gmra.mxu1 %vm484_vm0, %v5031_v7 }
  0x8f   : > { %4358 = vmatprep.mubr.msk.f32.mxu0 %vm484_vm0, %v4800_v49  ;;  %4382 = vmatprep.subr.mxu1 %v3666_v36  ;;  %v3715_v49 = vld [vmem:[%s5769_s1 + $0x1f0] sm:$0xff] }
  0x90   : > { %4359 = vmatmul.mubr.msk.f32.gmra.mxu0 %vm484_vm0, %v4809_v52  ;;  %4383 = vmatpush3.msra.mxu1 %v3666_v36  ;;  %v3664_v52 = vld [vmem:[%s5769_s1 + $0x198] sm:$0xff] }
  0x91   : > { %4432 = vmatprep.subr.mxu0 %v3716_v41  ;;  %4311 = vmatprep.mubr.msk.f32.mxu1 %vm484_vm0, %v5049_v12 }
  0x92   : > { %4433 = vmatpush3.msra.mxu0 %v3716_v41  ;;  %4312 = vmatmul.mubr.msk.f32.gmra.mxu1 %vm484_vm0, %v5053_v13 }
  0x93   : > { %4361 = vmatprep.mubr.msk.f32.mxu0 %vm484_vm0, %v4828_v57  ;;  %4384 = vmatprep.subr.mxu1 %v3665_v44 }
  0x94   : > { %4362 = vmatmul.mubr.msk.f32.gmra.mxu0 %vm484_vm0, %v4837_v60  ;;  %4385 = vmatpush3.msra.mxu1 %v3665_v44 }
  0x95   : > { %4434 = vmatprep.subr.mxu0 %v3715_v49  ;;  %4314 = vmatprep.mubr.msk.f32.mxu1 %vm484_vm0, %v5071_v25 }
  0x96   : > { %4435 = vmatpush3.msra.mxu0 %v3715_v49  ;;  %4315 = vmatmul.mubr.msk.f32.gmra.mxu1 %vm484_vm0, %v5075_v27 }
  0x97   : > { %4364 = vmatprep.mubr.msk.f32.mxu0 %vm484_vm0, %v4856_v1  ;;  %4386 = vmatprep.subr.mxu1 %v3664_v52 }
  0x98   : > { %4365 = vmatmul.mubr.msk.f32.gmra.mxu0 %vm484_vm0, %v4865_v4  ;;  %4387 = vmatpush3.msra.mxu1 %v3664_v52 }
  0x99   : > { %4436 = vmatprep.subr.mxu0 %v3714_v21  ;;  %4317 = vmatprep.mubr.msk.f32.mxu1 %vm484_vm0, %v5219_v33 }
  0x9a   : > { %4437 = vmatpush3.msra.mxu0 %v3714_v21  ;;  %4318 = vmatmul.mubr.msk.f32.gmra.mxu1 %vm484_vm0, %v5223_v42 }
  0x9b   : > { %4367 = vmatprep.mubr.msk.f32.mxu0 %vm484_vm0, %v5227_v50  ;;  %4388 = vmatprep.subr.mxu1 %v3663_v55 }
  0x9c   : > { %4368 = vmatmul.mubr.msk.f32.gmra.mxu0 %vm484_vm0, %v5234_v16  ;;  %4389 = vmatpush3.msra.mxu1 %v3663_v55 }
  0x9d   : > { %4438 = vmatprep.subr.mxu0 %v3713_v43  ;;  %4390 = vmatprep.mubr.msk.f32.mxu1 %vm484_vm0, %v4903_v18  ;;  %v3771_v18 = vld [vmem:[%s5769_s1 + $0x270] sm:$0xff] }
  0x9e   : > { %4439 = vmatpush3.msra.mxu0 %v3713_v43  ;;  %4391 = vmatmul.mubr.msk.f32.vlgmr.msra.gmra.mxu1 %vm484_vm0, %v4910_v20  ;;  %v3821_v20 = vld [vmem:[%s5769_s1 + $0x2c0] sm:$0xff] }
  0x9f   : > { %4440 = vmatprep.mubr.msk.f32.mxu0 %vm484_vm0, %v4917_v22  ;;  %4470 = vmatprep.subr.mxu1 %v3772_v46  ;;  %v3770_v22 = vld [vmem:[%s5769_s1 + $0x268] sm:$0xff] }
  0xa0   : > { %4441 = vmatmul.mubr.msk.f32.vlgmr.msra.gmra.mxu0 %vm484_vm0, %v4921_v23  ;;  %4471 = vmatpush3.msra.mxu1 %v3772_v46  ;;  %v3820_v23 = vld [vmem:[%s5769_s1 + $0x2b8] sm:$0xff] }
  0xa1   : > { %4520 = vmatprep.subr.mxu0 %v3822_v17  ;;  %4393 = vmatprep.mubr.msk.f32.mxu1 %vm484_vm0, %v4925_v24 }
  0xa2   : > { %4521 = vmatpush3.msra.mxu0 %v3822_v17  ;;  %4394 = vmatmul.mubr.msk.f32.gmra.mxu1 %vm484_vm0, %v4932_v26 }
  0xa3   : > { %4443 = vmatprep.mubr.msk.f32.mxu0 %vm484_vm0, %v4939_v28  ;;  %4472 = vmatprep.subr.mxu1 %v3771_v18  ;;  %v3769_v28 = vld [vmem:[%s5769_s1 + $0x260] sm:$0xff] }
  0xa4   : > { %4444 = vmatmul.mubr.msk.f32.gmra.mxu0 %vm484_vm0, %v4943_v29  ;;  %4473 = vmatpush3.msra.mxu1 %v3771_v18  ;;  %v3819_v29 = vld [vmem:[%s5769_s1 + $0x2b0] sm:$0xff] }
  0xa5   : > { %4522 = vmatprep.subr.mxu0 %v3821_v20  ;;  %4396 = vmatprep.mubr.msk.f32.mxu1 %vm484_vm0, %v4947_v30 }
  0xa6   : > { %4523 = vmatpush3.msra.mxu0 %v3821_v20  ;;  %4397 = vmatmul.mubr.msk.f32.gmra.mxu1 %vm484_vm0, %v4954_v32 }
  0xa7   : > { %4446 = vmatprep.mubr.msk.f32.mxu0 %vm484_vm0, %v4961_v35  ;;  %4474 = vmatprep.subr.mxu1 %v3770_v22  ;;  %v3768_v35 = vld [vmem:[%s5769_s1 + $0x258] sm:$0xff] }
  0xa8   : > { %4447 = vmatmul.mubr.msk.f32.gmra.mxu0 %vm484_vm0, %v4965_v37  ;;  %4475 = vmatpush3.msra.mxu1 %v3770_v22  ;;  %v3818_v37 = vld [vmem:[%s5769_s1 + $0x2a8] sm:$0xff] }
  0xa9   : > { %4524 = vmatprep.subr.mxu0 %v3820_v23  ;;  %4399 = vmatprep.mubr.msk.f32.mxu1 %vm484_vm0, %v4969_v38 }
  0xaa   : > { %4525 = vmatpush3.msra.mxu0 %v3820_v23  ;;  %4400 = vmatmul.mubr.msk.f32.gmra.mxu1 %vm484_vm0, %v4976_v40 }
  0xab   : > { %4449 = vmatprep.mubr.msk.f32.mxu0 %vm484_vm0, %v4983_v45  ;;  %4476 = vmatprep.subr.mxu1 %v3769_v28  ;;  %v3767_v45 = vld [vmem:[%s5769_s1 + $0x250] sm:$0xff] }
  0xac   : > { %4450 = vmatmul.mubr.msk.f32.gmra.mxu0 %vm484_vm0, %v4987_v47  ;;  %4477 = vmatpush3.msra.mxu1 %v3769_v28  ;;  %v3817_v47 = vld [vmem:[%s5769_s1 + $0x2a0] sm:$0xff] }
  0xad   : > { %4526 = vmatprep.subr.mxu0 %v3819_v29  ;;  %4402 = vmatprep.mubr.msk.f32.mxu1 %vm484_vm0, %v4991_v48 }
  0xae   : > { %4527 = vmatpush3.msra.mxu0 %v3819_v29  ;;  %4403 = vmatmul.mubr.msk.f32.gmra.mxu1 %vm484_vm0, %v4998_v53 }
  0xaf   : > { %4452 = vmatprep.mubr.msk.f32.mxu0 %vm484_vm0, %v5005_v56  ;;  %4478 = vmatprep.subr.mxu1 %v3768_v35  ;;  %v3766_v56 = vld [vmem:[%s5769_s1 + $0x248] sm:$0xff] }
  0xb0   : > { %4453 = vmatmul.mubr.msk.f32.gmra.mxu0 %vm484_vm0, %v5009_v58  ;;  %4479 = vmatpush3.msra.mxu1 %v3768_v35  ;;  %v3816_v58 = vld [vmem:[%s5769_s1 + $0x298] sm:$0xff]  ;;  %v4642_v35 = vmov 0.0  }
  0xb1   : > { %4528 = vmatprep.subr.mxu0 %v3818_v37  ;;  %4405 = vmatprep.mubr.msk.f32.mxu1 %vm484_vm0, %v5013_v61  ;;  %3153 = vst.msk [vmem:[%s4705_s29] sm:$0xff] %vm3152_vm1, %v4642_v35  ;;  %3154 = vst.msk [vmem:[%s4705_s29 + $0x8] sm:$0xff] %vm3152_vm1, %v4642_v35 }
  0xb2   : > { %4529 = vmatpush3.msra.mxu0 %v3818_v37  ;;  %4406 = vmatmul.mubr.msk.f32.gmra.mxu1 %vm484_vm0, %v5020_v0  ;;  %3171 = vst.msk [vmem:[%s4705_s29 + $0x90] sm:$0xff] %vm3152_vm1, %v4642_v35  ;;  %3172 = vst.msk [vmem:[%s4705_s29 + $0x98] sm:$0xff] %vm3152_vm1, %v4642_v35 }
  0xb3   : > { %4455 = vmatprep.mubr.msk.f32.mxu0 %vm484_vm0, %v5027_v5  ;;  %4480 = vmatprep.subr.mxu1 %v3767_v45  ;;  %v3765_v5 = vld [vmem:[%s5769_s1 + $0x240] sm:$0xff] }
  0xb4   : > { %4456 = vmatmul.mubr.msk.f32.gmra.mxu0 %vm484_vm0, %v5031_v7  ;;  %4481 = vmatpush3.msra.mxu1 %v3767_v45  ;;  %v3815_v7 = vld [vmem:[%s5769_s1 + $0x290] sm:$0xff] }
  0xb5   : > { %4530 = vmatprep.subr.mxu0 %v3817_v47  ;;  %4408 = vmatprep.mubr.msk.f32.mxu1 %vm484_vm0, %v5035_v8 }
  0xb6   : > { %4531 = vmatpush3.msra.mxu0 %v3817_v47  ;;  %4409 = vmatmul.mubr.msk.f32.gmra.mxu1 %vm484_vm0, %v5042_v10 }
  0xb7   : > { %4458 = vmatprep.mubr.msk.f32.mxu0 %vm484_vm0, %v5049_v12  ;;  %4482 = vmatprep.subr.mxu1 %v3766_v56  ;;  %v3764_v12 = vld [vmem:[%s5769_s1 + $0x238] sm:$0xff] }
  0xb8   : > { %4459 = vmatmul.mubr.msk.f32.gmra.mxu0 %vm484_vm0, %v5053_v13  ;;  %4483 = vmatpush3.msra.mxu1 %v3766_v56  ;;  %v3814_v13 = vld [vmem:[%s5769_s1 + $0x288] sm:$0xff] }
  0xb9   : > { %4532 = vmatprep.subr.mxu0 %v3816_v58  ;;  %4411 = vmatprep.mubr.msk.f32.mxu1 %vm484_vm0, %v5057_v14 }
  0xba   : > { %4533 = vmatpush3.msra.mxu0 %v3816_v58  ;;  %4412 = vmatmul.mubr.msk.f32.gmra.mxu1 %vm484_vm0, %v5064_v19 }
  0xbb   : > { %4461 = vmatprep.mubr.msk.f32.mxu0 %vm484_vm0, %v5071_v25  ;;  %4484 = vmatprep.subr.mxu1 %v3765_v5  ;;  %v3661_v25 = vld [vmem:[#allocation2 + $0xa9] sm:$0xff] }
  0xbc   : > { %4462 = vmatmul.mubr.msk.f32.gmra.mxu0 %vm484_vm0, %v5075_v27  ;;  %4485 = vmatpush3.msra.mxu1 %v3765_v5  ;;  %v3662_v27 = vld [vmem:[#allocation2 + $0xb1] sm:$0xff] }
  0xbd   : > { %4534 = vmatprep.subr.mxu0 %v3815_v7  ;;  %4414 = vmatprep.mubr.msk.f32.mxu1 %vm484_vm0, %v5079_v31 }
  0xbe   : > { %4535 = vmatpush3.msra.mxu0 %v3815_v7  ;;  %4415 = vmatmul.mubr.msk.f32.gmra.mxu1 %vm484_vm0, %v5086_v39 }
  0xbf   : > { %4464 = vmatprep.mubr.msk.f32.mxu0 %vm484_vm0, %v5219_v33  ;;  %4486 = vmatprep.subr.mxu1 %v3764_v12 }
  0xc0   : > { %4465 = vmatmul.mubr.msk.f32.gmra.mxu0 %vm484_vm0, %v5223_v42  ;;  %4487 = vmatpush3.msra.mxu1 %v3764_v12 }
  0xc1   : > { %4536 = vmatprep.subr.mxu0 %v3814_v13  ;;  %4417 = vmatprep.mubr.msk.f32.mxu1 %vm484_vm0, %v3661_v25 }
  0xc2   : > { %4537 = vmatpush3.msra.mxu0 %v3814_v13  ;;  %4418 = vmatmul.mubr.msk.f32.gmra.mxu1 %vm484_vm0, %v3662_v27 }
  0xc3   : > { %4467 = vmatprep.mubr.msk.f32.mxu0 %vm484_vm0, %v3711_v63  ;;  %4488 = vmatprep.subr.mxu1 %v3763_v2 }
  0xc4   : > { %4468 = vmatmul.mubr.msk.f32.gmra.mxu0 %vm484_vm0, %v3712_v9  ;;  %4489 = vmatpush3.msra.mxu1 %v3763_v2 }
  0xc5   : > { %4538 = vmatprep.subr.mxu0 %v3813_v11  ;;  %4490 = vmatprep.mubr.msk.f32.mxu1 %vm484_vm0, %v4807_v51  ;;  %v3749_v51 = vld [vmem:[#allocation2 + $0x58] sm:$0xff] }
  0xc6   : > { %4539 = vmatpush3.msra.mxu0 %v3813_v11  ;;  %4491 = vmatmul.mubr.msk.f32.vlgmr.msra.gmra.mxu1 %vm484_vm0, %v4816_v54  ;;  %v3750_v54 = vld [vmem:[#allocation2 + $0x60] sm:$0xff] }
  0xc7   : > { %4540 = vmatprep.mubr.msk.f32.mxu0 %vm484_vm0, %v4925_v24  ;;  %4493 = vmatprep.mubr.msk.f32.mxu1 %vm484_vm0, %v4835_v59  ;;  %v3751_v59 = vld [vmem:[#allocation2 + $0x68] sm:$0xff] }
  0xc8   : > { %4541 = vmatmul.mubr.msk.f32.vlgmr.msra.gmra.mxu0 %vm484_vm0, %v4932_v26 }
  0xc9   : > { %4543 = vmatprep.mubr.msk.f32.mxu0 %vm484_vm0, %v4947_v30 }
  0xca   : > { %4494 = vmatmul.mubr.msk.f32.gmra.mxu1 %vm484_vm0, %v4844_v62  ;;  %v3752_v62 = vld [vmem:[#allocation2 + $0x70] sm:$0xff] }
  0xcb   : > { %4496 = vmatprep.mubr.msk.f32.mxu1 %vm484_vm0, %v4863_v3  ;;  %v3753_v3 = vld [vmem:[#allocation2 + $0x78] sm:$0xff] }
  0xcc   : > { %4544 = vmatmul.mubr.msk.f32.gmra.mxu0 %vm484_vm0, %v4954_v32 }
  0xcd   : > { %4546 = vmatprep.mubr.msk.f32.mxu0 %vm484_vm0, %v4969_v38 }
  0xce   : > { %4497 = vmatmul.mubr.msk.f32.gmra.mxu1 %vm484_vm0, %v4872_v6  ;;  %v3754_v6 = vld [vmem:[#allocation2 + $0x80] sm:$0xff] }
  0xcf   : > { %4499 = vmatprep.mubr.msk.f32.mxu1 %vm484_vm0, %v3749_v51 }
  0xd0   : > { %4547 = vmatmul.mubr.msk.f32.gmra.mxu0 %vm484_vm0, %v4976_v40 }
  0xd1   : > { %4549 = vmatprep.mubr.msk.f32.mxu0 %vm484_vm0, %v4991_v48 }
  0xd2   : > { %4500 = vmatmul.mubr.msk.f32.gmra.mxu1 %vm484_vm0, %v3750_v54 }
  0xd3   : > { %4502 = vmatprep.mubr.msk.f32.mxu1 %vm484_vm0, %v3751_v59 }
  0xd4   : > { %4550 = vmatmul.mubr.msk.f32.gmra.mxu0 %vm484_vm0, %v4998_v53 }
  0xd5   : > { %4552 = vmatprep.mubr.msk.f32.mxu0 %vm484_vm0, %v5013_v61 }
  0xd6   : > { %4503 = vmatmul.mubr.msk.f32.gmra.mxu1 %vm484_vm0, %v3752_v62 }
  0xd7   : > { %4505 = vmatprep.mubr.msk.f32.mxu1 %vm484_vm0, %v3753_v3 }
  0xd8   : > { %4553 = vmatmul.mubr.msk.f32.gmra.mxu0 %vm484_vm0, %v5020_v0 }
  0xd9   : > { %4555 = vmatprep.mubr.msk.f32.mxu0 %vm484_vm0, %v5035_v8 }
  0xda   : > { %4506 = vmatmul.mubr.msk.f32.gmra.mxu1 %vm484_vm0, %v3754_v6 }
  0xdb   : > { %4508 = vmatprep.mubr.msk.f32.mxu1 %vm484_vm0, %v4828_v57  ;;  %v3761_v57 = vld [vmem:[#allocation2 + $0xb8] sm:$0xff] }
  0xdc   : > { %4556 = vmatmul.mubr.msk.f32.gmra.mxu0 %vm484_vm0, %v5042_v10 }
  0xdd   : > { %4558 = vmatprep.mubr.msk.f32.mxu0 %vm484_vm0, %v5057_v14 }
  0xde   : > { %4509 = vmatmul.mubr.msk.f32.gmra.mxu1 %vm484_vm0, %v4837_v60  ;;  %v3811_v60 = vld [vmem:[#allocation2 + $0xb9] sm:$0xff] }
  0xdf   : > { %4511 = vmatprep.mubr.msk.f32.mxu1 %vm484_vm0, %v4856_v1  ;;  %v3762_v1 = vld [vmem:[#allocation2 + $0xc0] sm:$0xff] }
  0xe0   : > { %4559 = vmatmul.mubr.msk.f32.gmra.mxu0 %vm484_vm0, %v5064_v19 }
  0xe1   : > { %4561 = vmatprep.mubr.msk.f32.mxu0 %vm484_vm0, %v5079_v31 }
  0xe2   : > { %4512 = vmatmul.mubr.msk.f32.gmra.mxu1 %vm484_vm0, %v4865_v4  ;;  %v3812_v4 = vld [vmem:[#allocation2 + $0xc1] sm:$0xff] }
  0xe3   : > { %4514 = vmatprep.mubr.msk.f32.mxu1 %vm484_vm0, %v5227_v50 }
  0xe4   : > { %4562 = vmatmul.mubr.msk.f32.gmra.mxu0 %vm484_vm0, %v5086_v39 }
  0xe5   : > { %4564 = vmatprep.mubr.msk.f32.mxu0 %vm484_vm0, %v3661_v25 }
  0xe6   : > { %4515 = vmatmul.mubr.msk.f32.gmra.mxu1 %vm484_vm0, %v5234_v16 }
  0xe7   : > { %4517 = vmatprep.mubr.msk.f32.mxu1 %vm484_vm0, %v3761_v57 }
  0xe8   : > { %4565 = vmatmul.mubr.msk.f32.gmra.mxu0 %vm484_vm0, %v3662_v27 }
  0xe9   : > { %4567 = vmatprep.mubr.msk.f32.mxu0 %vm484_vm0, %v3811_v60 }
  0xea   : > { %4518 = vmatmul.mubr.msk.f32.gmra.mxu1 %vm484_vm0, %v3762_v1 }
  0xec   : > { %4568 = vmatmul.mubr.msk.f32.gmra.mxu0 %vm484_vm0, %v3812_v4 }
  0xf1   : > { %v5449_v24 = vpop.f32.mrf.mxu1 }
  0xf2   : > { %v4142_v26 = vpop.f32.mrf.mxu0 }
  0xf3   : > { %v5451_v30 = vpop.f32.mrf.mxu1 }
  0xf4   : > { %v611_v32 = vpop.f32.mrf.mxu0 }
  0xf6   : > { %v5453_v38 = vpop.f32.mrf.mxu1 }
  0xf8   : > { %v4145_v40 = vpop.f32.mrf.mxu0  ;;  %v5455_v48 = vpop.f32.mrf.mxu1 }
  0xfa   : > { %v621_v53 = vpop.f32.mrf.mxu0 }
  0xfc   : > { %v5457_v61 = vpop.f32.mrf.mxu1 }
  0xfe   : > { %v4148_v0 = vpop.f32.mrf.mxu0  ;;  %v5459_v8 = vpop.f32.mrf.mxu1 }
 0x100   : > { %v631_v10 = vpop.f32.mrf.mxu0 }
 0x102   : > { %v5461_v14 = vpop.f32.mrf.mxu1 }
 0x104   : > { %v4151_v19 = vpop.f32.mrf.mxu0  ;;  %v5463_v31 = vpop.f32.mrf.mxu1 }
 0x106   : > { %v641_v39 = vpop.f32.mrf.mxu0 }
 0x108   : > { %v4169_v15 = vpop.f32.mrf.mxu1 }
 0x10a   : > { %v4154_v34 = vpop.f32.mrf.mxu0  ;;  %v701_v36 = vpop.f32.mrf.mxu1 }
 0x10c   : > { %v651_v41 = vpop.f32.mrf.mxu0 }
 0x10e   : > { %v4192_v44 = vpop.f32.mrf.mxu1 }
 0x110   : > { %v4242_v49 = vpop.f32.mrf.mxu0  ;;  %v836_v52 = vpop.f32.mrf.mxu1 }
 0x112   : > { %v1094_v21 = vpop.f32.mrf.mxu0  ;;  %v4195_v33 = vpop.f32.mrf.mxu1 }
 0x113   : > { %v852_v42 = vadd.f32 %v4195_v33, %v4145_v40 }
 0x114   : > { %v4245_v50 = vpop.f32.mrf.mxu0  ;;  %v846_v55 = vpop.f32.mrf.mxu1 }
 0x115   : > { %v5465_v16 = vadd.f32 %v4245_v50, %v852_v42  ;;  %v847_v43 = vadd.f32 %v846_v55, %v621_v53 }
 0x116   : > { %v1104_v46 = vpop.f32.mrf.mxu0  ;;  %v4198_v17 = vpop.f32.mrf.mxu1 }
 0x117   : > { %v5467_v18 = vadd.f32 %v1104_v46, %v847_v43  ;;  %v862_v20 = vadd.f32 %v4198_v17, %v4148_v0 }
 0x118   : > { %v4248_v22 = vpop.f32.mrf.mxu0  ;;  %v856_v23 = vpop.f32.mrf.mxu1 }
 0x119   : > { %v5469_v28 = vadd.f32 %v4248_v22, %v862_v20  ;;  %v857_v29 = vadd.f32 %v856_v23, %v631_v10 }
 0x11a   : > { %v1114_v37 = vpop.f32.mrf.mxu0  ;;  %v4201_v45 = vpop.f32.mrf.mxu1 }
 0x11b   : > { %v5479_v47 = vadd.f32 %v1114_v37, %v857_v29  ;;  %v872_v56 = vadd.f32 %v4201_v45, %v4151_v19 }
 0x11c   : > { %v4251_v58 = vpop.f32.mrf.mxu0  ;;  %v866_v5 = vpop.f32.mrf.mxu1 }
 0x11d   : > { %v5481_v7 = vadd.f32 %v4251_v58, %v872_v56  ;;  %v867_v12 = vadd.f32 %v866_v5, %v641_v39 }
 0x11e   : > { %v1124_v13 = vpop.f32.mrf.mxu0  ;;  %v4204_v25 = vpop.f32.mrf.mxu1 }
 0x11f   : > { %v5483_v27 = vadd.f32 %v1124_v13, %v867_v12  ;;  %v882_v63 = vadd.f32 %v4204_v25, %v4154_v34 }
 0x120   : > { %v4254_v2 = vpop.f32.mrf.mxu0  ;;  %v876_v9 = vpop.f32.mrf.mxu1 }
 0x121   : > { %v5485_v11 = vadd.f32 %v4254_v2, %v882_v63  ;;  %v877_v51 = vadd.f32 %v876_v9, %v651_v41 }
 0x122   : > { %v1134_v54 = vpop.f32.mrf.mxu0  ;;  %v4207_v59 = vpop.f32.mrf.mxu1 }
 0x123   : > { %v5487_v62 = vadd.f32 %v1134_v54, %v877_v51  ;;  %v892_v3 = vadd.f32 %v4207_v59, %v5449_v24 }
 0x124   : > { %v4257_v6 = vpop.f32.mrf.mxu0  ;;  %v886_v57 = vpop.f32.mrf.mxu1 }
 0x125   : > { %v5490_v60 = vadd.f32 %v4257_v6, %v892_v3  ;;  %v887_v1 = vadd.f32 %v886_v57, %v5451_v30 }
 0x126   : > { %v1144_v4 = vpop.f32.mrf.mxu0  ;;  %v4210_v26 = vpop.f32.mrf.mxu1 }
 0x127   : > { %v5493_v32 = vadd.f32 %v1144_v4, %v887_v1  ;;  %v902_v40 = vadd.f32 %v4210_v26, %v5453_v38 }
 0x128   : > { %v4260_v53 = vpop.f32.mrf.mxu0  ;;  %v896_v0 = vpop.f32.mrf.mxu1 }
 0x129   : > { %v5496_v10 = vadd.f32 %v4260_v53, %v902_v40  ;;  %v897_v19 = vadd.f32 %v896_v0, %v5455_v48 }
 0x12a   : > { %v1154_v39 = vpop.f32.mrf.mxu0  ;;  %v4213_v24 = vpop.f32.mrf.mxu1 }
 0x12b   : > { %v5499_v15 = vadd.f32 %v1154_v39, %v897_v19  ;;  %v912_v34 = vadd.f32 %v4213_v24, %v5457_v61 }
 0x12c   : > { %v4263_v36 = vpop.f32.mrf.mxu0  ;;  %v906_v30 = vpop.f32.mrf.mxu1 }
 0x12d   : > { %v5502_v41 = vadd.f32 %v4263_v36, %v912_v34  ;;  %v907_v44 = vadd.f32 %v906_v30, %v5459_v8 }
 0x12e   : > { %v1164_v49 = vpop.f32.mrf.mxu0  ;;  %v4216_v38 = vpop.f32.mrf.mxu1 }
 0x12f   : > { %v5505_v52 = vadd.f32 %v1164_v49, %v907_v44  ;;  %v922_v21 = vadd.f32 %v4216_v38, %v5461_v14 }
 0x130   : > { %v4266_v33 = vpop.f32.mrf.mxu0  ;;  %v916_v48 = vpop.f32.mrf.mxu1 }
 0x131   : > { %v5508_v42 = vadd.f32 %v4266_v33, %v922_v21  ;;  %v917_v50 = vadd.f32 %v916_v48, %v5463_v31 }
 0x132   : > { %v1174_v55 = vpop.f32.mrf.mxu0  ;;  %v4219_v61 = vpop.f32.mrf.mxu1 }
 0x133   : > { %v5511_v43 = vadd.f32 %v1174_v55, %v917_v50 }
 0x134   : > { %v4269_v46 = vpop.f32.mrf.mxu0  ;;  %v926_v17 = vpop.f32.mrf.mxu1 }
 0x136   : > { %v1184_v20 = vpop.f32.mrf.mxu0  ;;  %v4292_v8 = vpop.f32.mrf.mxu1 }
 0x138   : > { %v4342_v22 = vpop.f32.mrf.mxu0  ;;  %v1372_v23 = vpop.f32.mrf.mxu1 }
 0x13a   : > { %v1650_v29 = vpop.f32.mrf.mxu0  ;;  %v4295_v35 = vpop.f32.mrf.mxu1 }
 0x13b   : > { %v1474_v14 = vadd.f32 %v4295_v35, %v5465_v16 }
 0x13c   : > { %v4345_v37 = vpop.f32.mrf.mxu0  ;;  %v1382_v45 = vpop.f32.mrf.mxu1 }
 0x13d   : > { %v5514_v56 = vadd.f32 %v4345_v37, %v1474_v14  ;;  %v1473_v31 = vadd.f32 %v1382_v45, %v5467_v18 }
 0x13e   : > { %v1660_v58 = vpop.f32.mrf.mxu0  ;;  %v4298_v5 = vpop.f32.mrf.mxu1 }
 0x13f   : > { %v5517_v12 = vadd.f32 %v1660_v58, %v1473_v31  ;;  %v1476_v13 = vadd.f32 %v4298_v5, %v5469_v28 }
 0x140   : > { %v4348_v25 = vpop.f32.mrf.mxu0  ;;  %v1392_v63 = vpop.f32.mrf.mxu1 }
 0x141   : > { %v5520_v2 = vadd.f32 %v4348_v25, %v1476_v13  ;;  %v1475_v9 = vadd.f32 %v1392_v63, %v5479_v47 }
 0x142   : > { %v1670_v51 = vpop.f32.mrf.mxu0  ;;  %v4301_v16 = vpop.f32.mrf.mxu1 }
 0x143   : > { %v5523_v54 = vadd.f32 %v1670_v51, %v1475_v9  ;;  %v1478_v59 = vadd.f32 %v4301_v16, %v5481_v7 }
 0x144   : > { %v4351_v3 = vpop.f32.mrf.mxu0  ;;  %v1402_v18 = vpop.f32.mrf.mxu1 }
 0x145   : > { %v5526_v6 = vadd.f32 %v4351_v3, %v1478_v59  ;;  %v1477_v57 = vadd.f32 %v1402_v18, %v5483_v27 }
 0x146   : > { %v1680_v1 = vpop.f32.mrf.mxu0  ;;  %v4304_v28 = vpop.f32.mrf.mxu1 }
 0x147   : > { %v5529_v4 = vadd.f32 %v1680_v1, %v1477_v57  ;;  %v1480_v26 = vadd.f32 %v4304_v28, %v5485_v11 }
 0x148   : > { %v4354_v40 = vpop.f32.mrf.mxu0  ;;  %v1412_v47 = vpop.f32.mrf.mxu1 }
 0x149   : > { %v5532_v53 = vadd.f32 %v4354_v40, %v1480_v26  ;;  %v1479_v0 = vadd.f32 %v1412_v47, %v5487_v62 }
 0x14a   : > { %v1690_v19 = vpop.f32.mrf.mxu0  ;;  %v4307_v7 = vpop.f32.mrf.mxu1 }
 0x14b   : > { %v5535_v39 = vadd.f32 %v1690_v19, %v1479_v0  ;;  %v1482_v24 = vadd.f32 %v4307_v7, %v5490_v60 }
 0x14c   : > { %v4357_v34 = vpop.f32.mrf.mxu0  ;;  %v1422_v27 = vpop.f32.mrf.mxu1 }
 0x14d   : > { %v5538_v36 = vadd.f32 %v4357_v34, %v1482_v24  ;;  %v1481_v30 = vadd.f32 %v1422_v27, %v5493_v32 }
 0x14e   : > { %v1700_v44 = vpop.f32.mrf.mxu0  ;;  %v4310_v11 = vpop.f32.mrf.mxu1 }
 0x14f   : > { %v5541_v49 = vadd.f32 %v1700_v44, %v1481_v30  ;;  %v1484_v38 = vadd.f32 %v4310_v11, %v5496_v10 }
 0x150   : > { %v4360_v21 = vpop.f32.mrf.mxu0  ;;  %v1432_v62 = vpop.f32.mrf.mxu1 }
 0x151   : > { %v5544_v33 = vadd.f32 %v4360_v21, %v1484_v38  ;;  %v1483_v48 = vadd.f32 %v1432_v62, %v5499_v15 }
 0x152   : > { %v1710_v50 = vpop.f32.mrf.mxu0  ;;  %v4313_v60 = vpop.f32.mrf.mxu1 }
 0x153   : > { %v5547_v55 = vadd.f32 %v1710_v50, %v1483_v48  ;;  %v1486_v61 = vadd.f32 %v4313_v60, %v5502_v41 }
 0x154   : > { %v4363_v46 = vpop.f32.mrf.mxu0  ;;  %v1442_v32 = vpop.f32.mrf.mxu1 }
 0x155   : > { %v5550_v17 = vadd.f32 %v4363_v46, %v1486_v61  ;;  %v1485_v20 = vadd.f32 %v1442_v32, %v5505_v52  ;;  %v3022_v32 = vlaneseq }
 0x156   : > { %v1720_v8 = vpop.f32.mrf.mxu0  ;;  %v4316_v10 = vpop.f32.mrf.mxu1 }
 0x157   : > { %v5553_v22 = vadd.f32 %v1720_v8, %v1485_v20  ;;  %v1488_v23 = vadd.f32 %v4316_v10, %v5508_v42 }
 0x158   : > { %v4366_v29 = vpop.f32.mrf.mxu0  ;;  %v1452_v15 = vpop.f32.mrf.mxu1 }
 0x159   : > { %v5556_v35 = vadd.f32 %v4366_v29, %v1488_v23  ;;  %v1487_v14 = vadd.f32 %v1452_v15, %v5511_v43  ;;  %v5576_v15 = vshrl.u32 %v3022_v32, 7 }
 0x15a   : > { %v1730_v37 = vpop.f32.mrf.mxu0  ;;  %v4319_v41 = vpop.f32.mrf.mxu1 }
 0x15b   : > { %v5559_v45 = vadd.f32 %v1730_v37, %v1487_v14  ;;  %vm3025_vm3 = vcmp.ge.s32.totalorder %v5576_v15, 1 }
 0x15c   : > { %v4369_v31 = vpop.f32.mrf.mxu0  ;;  %v1462_v58 = vpop.f32.mrf.mxu1 }
 0x15e   : > { %v1740_v5 = vpop.f32.mrf.mxu0  ;;  %v4392_v52 = vpop.f32.mrf.mxu1 }
 0x160   : > { %v4442_v13 = vpop.f32.mrf.mxu0  ;;  %v1928_v25 = vpop.f32.mrf.mxu1 }
 0x162   : > { %v2206_v63 = vpop.f32.mrf.mxu0  ;;  %v4395_v9 = vpop.f32.mrf.mxu1 }
 0x163   : > { %v2030_v29 = vadd.f32 %v4395_v9, %v5514_v56 }
 0x164   : > { %v4445_v51 = vpop.f32.mrf.mxu0  ;;  %v1938_v42 = vpop.f32.mrf.mxu1 }
 0x165   : > { %v2029_v41 = vadd.f32 %v1938_v42, %v5517_v12  ;;  %v2308_v13 = vadd.f32 %v4445_v51, %v2030_v29 }
 0x166   : > { %v2216_v16 = vpop.f32.mrf.mxu0  ;;  %v4398_v59 = vpop.f32.mrf.mxu1 }
 0x167   : > { %v2032_v31 = vadd.f32 %v4398_v59, %v5520_v2 }
 0x168   : > { %v4448_v3 = vpop.f32.mrf.mxu0  ;;  %v1948_v18 = vpop.f32.mrf.mxu1 }
 0x169   : > { %v2031_v58 = vadd.f32 %v1948_v18, %v5523_v54  ;;  %v2310_v42 = vadd.f32 %v4448_v3, %v2032_v31 }
 0x16a   : > { %v2226_v57 = vpop.f32.mrf.mxu0  ;;  %v4401_v43 = vpop.f32.mrf.mxu1 }
 0x16b   : > { %v2034_v25 = vadd.f32 %v4401_v43, %v5526_v6  ;;  %v2309_v54 = vadd.f32 %v2226_v57, %v2031_v58  ;;  %v5592_v6 = vld [vmem:[%s5770_s2] ss:$0 sm:$0xff] }
 0x16c   : > { %v4451_v1 = vpop.f32.mrf.mxu0  ;;  %v1958_v28 = vpop.f32.mrf.mxu1  ;;  %v5603_v57 = vld [vmem:[%s5771_s3] ss:$0 sm:$0xff] }
 0x16d   : > { %v2033_v63 = vadd.f32 %v1958_v28, %v5529_v4  ;;  %v2312_v18 = vadd.f32 %v4451_v1, %v2034_v25 }
 0x16e   : > { %v2236_v26 = vpop.f32.mrf.mxu0  ;;  %v4404_v40 = vpop.f32.mrf.mxu1 }
 0x16f   : > { %v2036_v56 = vadd.f32 %v4404_v40, %v5532_v53  ;;  %v2311_v43 = vadd.f32 %v2236_v26, %v2033_v63 }
 0x170   : > { %v4454_v47 = vpop.f32.mrf.mxu0  ;;  %v1968_v0 = vpop.f32.mrf.mxu1 }
 0x171   : > { %v2035_v12 = vadd.f32 %v1968_v0, %v5535_v39  ;;  %v5595_v28 = vadd.f32 %v4454_v47, %v2036_v56 }
 0x172   : > { %v2246_v19 = vpop.f32.mrf.mxu0  ;;  %v4407_v7 = vpop.f32.mrf.mxu1 }
 0x173   : > { %v2038_v59 = vadd.f32 %v4407_v7, %v5538_v36  ;;  %v5605_v26 = vadd.f32 %v2246_v19, %v2035_v12 }
 0x174   : > { %v4457_v24 = vpop.f32.mrf.mxu0  ;;  %v1978_v34 = vpop.f32.mrf.mxu1 }
 0x175   : > { %v2037_v39 = vadd.f32 %v1978_v34, %v5541_v49  ;;  %v2316_v49 = vadd.f32 %v4457_v24, %v2038_v59 }
 0x176   : > { %v5561_v27 = vpop.f32.mrf.mxu0  ;;  %v4410_v30 = vpop.f32.mrf.mxu1 }
 0x177   : > { %v2040_v3 = vadd.f32 %v4410_v30, %v5544_v33  ;;  %v5615_v30 = vld [vmem:[%s5772_s4] ss:$0 sm:$0xff]  ;;  %v5620_v24 = vadd.f32 %v5561_v27, %v2037_v39 }
 0x178   : > { %v5563_v44 = vpop.f32.mrf.mxu0  ;;  %v1988_v11 = vpop.f32.mrf.mxu1 }
 0x179   : > { %v2039_v36 = vadd.f32 %v1988_v11, %v5547_v55 }
 0x17a   : > { %v5565_v38 = vpop.f32.mrf.mxu0  ;;  %v4413_v21 = vpop.f32.mrf.mxu1 }
 0x17b   : > { %v2042_v33 = vadd.f32 %v4413_v21, %v5550_v17  ;;  %v5623_v17 = vadd.f32 %v5563_v44, %v2040_v3 }
 0x17c   : > { %v5567_v62 = vpop.f32.mrf.mxu0  ;;  %v1998_v48 = vpop.f32.mrf.mxu1 }
 0x17d   : > { %v2041_v55 = vadd.f32 %v1998_v48, %v5553_v22  ;;  %v5626_v22 = vadd.f32 %v5565_v38, %v2039_v36  ;;  %v5633_v27 = vadd.f32 %v5567_v62, %v2042_v33 }
 0x17e   : > { %v5569_v50 = vpop.f32.mrf.mxu0  ;;  %v4416_v60 = vpop.f32.mrf.mxu1 }
 0x17f   : > { %v2044_v34 = vadd.f32 %v4416_v60, %v5556_v35  ;;  %v5636_v44 = vadd.f32 %v5569_v50, %v2041_v55 }
 0x180   : > { %v5571_v61 = vpop.f32.mrf.mxu0  ;;  %v2008_v46 = vpop.f32.mrf.mxu1 }
 0x181   : > { %v2043_v35 = vadd.f32 %v2008_v46, %v5559_v45  ;;  %v5639_v38 = vadd.f32 %v5571_v61, %v2044_v34 }
 0x182   : > { %v5573_v20 = vpop.f32.mrf.mxu0  ;;  %v4419_v8 = vpop.f32.mrf.mxu1 }
 0x183   : > { %v5584_v8 = vadd.s32 8, %v5576_v15  ;;  %v5644_v63 = vadd.f32 %v5573_v20, %v2043_v35 }
 0x184   : > { %v4469_v10 = vpop.f32.mrf.mxu0  ;;  %v2018_v23 = vpop.f32.mrf.mxu1 }
 0x185   : > { %v2307_v10 = vadd.f32 %v2216_v16, %v2029_v41  ;;  %vm3028_vm2 = vcmp.le.s32.totalorder %v5584_v8, 8 }
 0x186   : > { %v2296_v14 = vpop.f32.mrf.mxu0  ;;  %v4492_v37 = vpop.f32.mrf.mxu1 }
 0x188   : > { %v4542_v5 = vpop.f32.mrf.mxu0  ;;  %v2484_v52 = vpop.f32.mrf.mxu1 }
 0x18a   : > { %v2762_v9 = vpop.f32.mrf.mxu0  ;;  %v4495_v32 = vpop.f32.mrf.mxu1 }
 0x18b   : > { %v2586_v2 = vadd.f32 %v4495_v32, %v2308_v13 }
 0x18c   : > { %v4545_v51 = vpop.f32.mrf.mxu0  ;;  %v2494_v4 = vpop.f32.mrf.mxu1 }
 0x18d   : > { %v2864_v53 = vadd.f32 %v4545_v51, %v2586_v2  ;;  %v2585_v16 = vadd.f32 %v2494_v4, %v2307_v10 }
 0x18e   : > { %v2772_v40 = vpop.f32.mrf.mxu0  ;;  %v4498_v1 = vpop.f32.mrf.mxu1 }
 0x18f   : > { %v2891_v0 = vadd.f32 %v5592_v6, %v2864_v53  ;;  %v2863_v7 = vadd.f32 %v2772_v40, %v2585_v16  ;;  %v2588_v47 = vadd.f32 %v4498_v1, %v2310_v42 }
 0x190   : > { %v4548_v19 = vpop.f32.mrf.mxu0  ;;  %v2504_v11 = vpop.f32.mrf.mxu1 }
 0x191   : > { %v2918_v23 = vmul.f32 %v5603_v57, %v2891_v0  ;;  %v2890_v29 = vadd.f32 %v5592_v6, %v2863_v7  ;;  %v2866_v14 = vadd.f32 %v4548_v19, %v2588_v47  ;;  %v2587_v37 = vadd.f32 %v2504_v11, %v2309_v54 }
 0x192   : > { %v2782_v21 = vpop.f32.mrf.mxu0  ;;  %v4501_v48 = vpop.f32.mrf.mxu1 }
 0x193   : > { %v2945_v60 = vadd.f32 %v5615_v30, %v2918_v23  ;;  %v2917_v41 = vmul.f32 %v5603_v57, %v2890_v29  ;;  %v2893_v31 = vadd.f32 %v5592_v6, %v2866_v14  ;;  %v2865_v58 = vadd.f32 %v2782_v21, %v2587_v37 }
 0x194   : > { %v2590_v5 = vadd.f32 %v4501_v48, %v2312_v18  ;;  %v4551_v45 = vpop.f32.mrf.mxu0  ;;  %v2514_v46 = vpop.f32.mrf.mxu1 }
 0x195   : > { %vm2965_vm4 = vcmp.ge.f32.partialorder %v2945_v60, 0.0  ;;  %v2985_v52 = vmul.f32 0.22916667, %v2945_v60  ;;  %v2944_v13 = vadd.f32 %v5615_v30, %v2917_v41  ;;  %v2920_v25 = vmul.f32 %v5603_v57, %v2893_v31 }
 0x196   : > { %v2892_v62 = vadd.f32 %v5592_v6, %v2865_v58  ;;  %v2868_v50 = vadd.f32 %v4551_v45, %v2590_v5  ;;  %v2589_v56 = vadd.f32 %v2514_v46, %v2311_v43  ;;  %v2792_v9 = vpop.f32.mrf.mxu0  ;;  %v4504_v61 = vpop.f32.mrf.mxu1 }
 0x197   : > { %v3005_v32 = vsel %vm2965_vm4, %v2945_v60, %v2985_v52  ;;  %vm2964_vm5 = vcmp.ge.f32.partialorder %v2944_v13, 0.0  ;;  %v2984_v10 = vmul.f32 0.22916667, %v2944_v13  ;;  %v2947_v12 = vadd.f32 %v5615_v30, %v2920_v25 }
 0x198   : > { %v3135_v2 = vsel %vm3028_vm2, %v3005_v32, 0.0  ;;  %v2919_v42 = vmul.f32 %v5603_v57, %v2892_v62  ;;  %v2895_v20 = vadd.f32 %v5592_v6, %v2868_v50  ;;  %v2867_v54 = vadd.f32 %v2792_v9, %v2589_v56  ;;  %v4554_v59 = vpop.f32.mrf.mxu0  ;;  %v2524_v51 = vpop.f32.mrf.mxu1 }
 0x199   : > { %3156 = vst.msk [vmem:[%s4705_s29 + $0x18] sm:$0xff] %vm3152_vm1, %v3135_v2  ;;  %v3004_v4 = vsel %vm2964_vm5, %v2944_v13, %v2984_v10  ;;  %vm2967_vm6 = vcmp.ge.f32.partialorder %v2947_v12, 0.0  ;;  %v2987_v18 = vmul.f32 0.22916667, %v2947_v12  ;;  %v2592_v43 = vadd.f32 %v4504_v61, %v5595_v28 }
 0x19a   : > { %v3134_v53 = vsel %vm3025_vm3, %v3004_v4, 0.0  ;;  %v2946_v16 = vadd.f32 %v5615_v30, %v2919_v42  ;;  %v2922_v39 = vmul.f32 %v5603_v57, %v2895_v20  ;;  %v2894_v3 = vadd.f32 %v5592_v6, %v2867_v54  ;;  %v2802_v36 = vpop.f32.mrf.mxu0  ;;  %v4507_v40 = vpop.f32.mrf.mxu1 }
 0x19b   : > { %3155 = vst.msk [vmem:[%s4705_s29 + $0x10] sm:$0xff] %vm3152_vm1, %v3134_v53  ;;  %v3007_v1 = vsel %vm2967_vm6, %v2947_v12, %v2987_v18  ;;  %v2870_v0 = vadd.f32 %v4554_v59, %v2592_v43  ;;  %v2591_v7 = vadd.f32 %v2524_v51, %v5605_v26  ;;  %v2594_v47 = vadd.f32 %v4507_v40, %v2316_v49 }
 0x19c   : > { %v3137_v28 = vsel %vm3028_vm2, %v3007_v1, 0.0  ;;  %vm2966_vm7 = vcmp.ge.f32.partialorder %v2946_v16, 0.0  ;;  %v2986_v33 = vmul.f32 0.22916667, %v2946_v16  ;;  %v2949_v55 = vadd.f32 %v5615_v30, %v2922_v39  ;;  %v4557_v34 = vpop.f32.mrf.mxu0  ;;  %v2534_v19 = vpop.f32.mrf.mxu1 }
 0x19d   : > { %3158 = vst.msk [vmem:[%s4705_s29 + $0x28] sm:$0xff] %vm3152_vm1, %v3137_v28  ;;  %v2921_v11 = vmul.f32 %v5603_v57, %v2894_v3  ;;  %v2897_v23 = vadd.f32 %v5592_v6, %v2870_v0  ;;  %v2869_v29 = vadd.f32 %v2802_v36, %v2591_v7  ;;  %v2872_v14 = vadd.f32 %v4557_v34, %v2594_v47 }
 0x19e   : > { %v3006_v26 = vsel %vm2966_vm7, %v2946_v16, %v2986_v33  ;;  %vm2969_vm8 = vcmp.ge.f32.partialorder %v2949_v55, 0.0  ;;  %v2989_v49 = vmul.f32 0.22916667, %v2949_v55  ;;  %v2593_v37 = vadd.f32 %v2534_v19, %v5620_v24  ;;  %v2812_v35 = vpop.f32.mrf.mxu0  ;;  %v4510_v21 = vpop.f32.mrf.mxu1 }
 0x19f   : > { %v3136_v48 = vsel %vm3025_vm3, %v3006_v26, 0.0  ;;  %v2948_v60 = vadd.f32 %v5615_v30, %v2921_v11  ;;  %v2924_v41 = vmul.f32 %v5603_v57, %v2897_v23  ;;  %v2896_v31 = vadd.f32 %v5592_v6, %v2869_v29 }
 0x1a0   : > { %3157 = vst.msk [vmem:[%s4705_s29 + $0x20] sm:$0xff] %vm3152_vm1, %v3136_v48  ;;  %v3009_v58 = vsel %vm2969_vm8, %v2949_v55, %v2989_v49  ;;  %v2899_v5 = vadd.f32 %v5592_v6, %v2872_v14  ;;  %v2871_v45 = vadd.f32 %v2812_v35, %v2593_v37  ;;  %v2596_v24 = vadd.f32 %v4510_v21, %v5623_v17  ;;  %v4560_v46 = vpop.f32.mrf.mxu0  ;;  %v2544_v52 = vpop.f32.mrf.mxu1 }
 0x1a1   : > { %v3139_v13 = vsel %vm3028_vm2, %v3009_v58, 0.0  ;;  %vm2968_vm9 = vcmp.ge.f32.partialorder %v2948_v60, 0.0  ;;  %v2988_v25 = vmul.f32 0.22916667, %v2948_v60  ;;  %v2951_v62 = vadd.f32 %v5615_v30, %v2924_v41 }
 0x1a2   : > { %3160 = vst.msk [vmem:[%s4705_s29 + $0x38] sm:$0xff] %vm3152_vm1, %v3139_v13  ;;  %v2923_v50 = vmul.f32 %v5603_v57, %v2896_v31  ;;  %v2926_v56 = vmul.f32 %v5603_v57, %v2899_v5  ;;  %v2898_v9 = vadd.f32 %v5592_v6, %v2871_v45  ;;  %v2874_v61 = vadd.f32 %v4560_v46, %v2596_v24  ;;  %v2822_v17 = vpop.f32.mrf.mxu0  ;;  %v4513_v32 = vpop.f32.mrf.mxu1 }
 0x1a3   : > { %v3008_v10 = vsel %vm2968_vm9, %v2948_v60, %v2988_v25  ;;  %vm2971_vm10 = vcmp.ge.f32.partialorder %v2951_v62, 0.0  ;;  %v2991_v12 = vmul.f32 0.22916667, %v2951_v62  ;;  %v2595_v2 = vadd.f32 %v2544_v52, %v5626_v22 }
 0x1a4   : > { %v3138_v42 = vsel %vm3025_vm3, %v3008_v10, 0.0  ;;  %v2950_v20 = vadd.f32 %v5615_v30, %v2923_v50  ;;  %v2953_v54 = vadd.f32 %v5615_v30, %v2926_v56  ;;  %v2925_v59 = vmul.f32 %v5603_v57, %v2898_v9  ;;  %v4563_v51 = vpop.f32.mrf.mxu0  ;;  %v2554_v4 = vpop.f32.mrf.mxu1 }
 0x1a5   : > { %3159 = vst.msk [vmem:[%s4705_s29 + $0x30] sm:$0xff] %vm3152_vm1, %v3138_v42  ;;  %v3011_v18 = vsel %vm2971_vm10, %v2951_v62, %v2991_v12  ;;  %v2901_v43 = vadd.f32 %v5592_v6, %v2874_v61  ;;  %v2873_v53 = vadd.f32 %v2822_v17, %v2595_v2  ;;  %v2598_v22 = vadd.f32 %v4513_v32, %v5633_v27 }
 0x1a6   : > { %v3141_v16 = vsel %vm3028_vm2, %v3011_v18, 0.0  ;;  %vm2970_vm11 = vcmp.ge.f32.partialorder %v2950_v20, 0.0  ;;  %v2990_v39 = vmul.f32 0.22916667, %v2950_v20  ;;  %vm2973_vm12 = vcmp.ge.f32.partialorder %v2953_v54, 0.0  ;;  %v2832_v3 = vpop.f32.mrf.mxu0  ;;  %v4516_v36 = vpop.f32.mrf.mxu1 }
 0x1a7   : > { %3162 = vst.msk [vmem:[%s4705_s29 + $0x48] sm:$0xff] %vm3152_vm1, %v3141_v16  ;;  %v2993_v40 = vmul.f32 0.22916667, %v2953_v54  ;;  %v2952_v1 = vadd.f32 %v5615_v30, %v2925_v59  ;;  %v2928_v0 = vmul.f32 %v5603_v57, %v2901_v43  ;;  %v2900_v7 = vadd.f32 %v5592_v6, %v2873_v53 }
 0x1a8   : > { %v3010_v47 = vsel %vm2970_vm11, %v2950_v20, %v2990_v39  ;;  %v2876_v27 = vadd.f32 %v4563_v51, %v2598_v22  ;;  %v2597_v28 = vadd.f32 %v2554_v4, %v5636_v44  ;;  %v2600_v33 = vadd.f32 %v4516_v36, %v5639_v38  ;;  %v4566_v55 = vpop.f32.mrf.mxu0  ;;  %v2564_v34 = vpop.f32.mrf.mxu1 }
 0x1a9   : > { %v3140_v19 = vsel %vm3025_vm3, %v3010_v47, 0.0  ;;  %v3013_v11 = vsel %vm2973_vm12, %v2953_v54, %v2993_v40  ;;  %vm2972_vm13 = vcmp.ge.f32.partialorder %v2952_v1, 0.0  ;;  %v2992_v23 = vmul.f32 0.22916667, %v2952_v1 }
 0x1aa   : > { %3161 = vst.msk [vmem:[%s4705_s29 + $0x40] sm:$0xff] %vm3152_vm1, %v3140_v19  ;;  %v3143_v29 = vsel %vm3028_vm2, %v3013_v11, 0.0  ;;  %v2955_v14 = vadd.f32 %v5615_v30, %v2928_v0  ;;  %v2927_v44 = vmul.f32 %v5603_v57, %v2900_v7  ;;  %v2903_v38 = vadd.f32 %v5592_v6, %v2876_v27  ;;  %v2842_v26 = vpop.f32.mrf.mxu0  ;;  %v4519_v49 = vpop.f32.mrf.mxu1 }
 0x1ab   : > { %3164 = vst.msk [vmem:[%s4705_s29 + $0x58] sm:$0xff] %vm3152_vm1, %v3143_v29  ;;  %v3012_v37 = vsel %vm2972_vm13, %v2952_v1, %v2992_v23  ;;  %v2875_v35 = vadd.f32 %v2832_v3, %v2597_v28  ;;  %v2878_v21 = vadd.f32 %v4566_v55, %v2600_v33  ;;  %v2599_v48 = vadd.f32 %v2564_v34, %v5644_v63 }
 0x1ac   : > { %v3142_v60 = vsel %vm3025_vm3, %v3012_v37, 0.0  ;;  %vm2975_vm14 = vcmp.ge.f32.partialorder %v2955_v14, 0.0  ;;  %v2995_v41 = vmul.f32 0.22916667, %v2955_v14  ;;  %v2954_v31 = vadd.f32 %v5615_v30, %v2927_v44  ;;  %v4569_v58 = vpop.f32.mrf.mxu0  ;;  %v2574_v5 = vpop.f32.mrf.mxu1 }
 0x1ad   : > { %3163 = vst.msk [vmem:[%s4705_s29 + $0x50] sm:$0xff] %vm3152_vm1, %v3142_v60  ;;  %v2930_v45 = vmul.f32 %v5603_v57, %v2903_v38  ;;  %v2902_v24 = vadd.f32 %v5592_v6, %v2875_v35  ;;  %v2905_v46 = vadd.f32 %v5592_v6, %v2878_v21  ;;  %v2877_v52 = vadd.f32 %v2842_v26, %v2599_v48 }
 0x1ae   : > { %v3015_v63 = vsel %vm2975_vm14, %v2955_v14, %v2995_v41  ;;  %vm2974_vm15 = vcmp.ge.f32.partialorder %v2954_v31, 0.0  ;;  %v2994_v13 = vmul.f32 0.22916667, %v2954_v31  ;;  %v2852_v25 = vpop.f32.mrf.mxu0 }
 0x1af   : > { %v3145_v62 = vsel %vm3028_vm2, %v3015_v63, 0.0  ;;  %v2957_v50 = vadd.f32 %v5615_v30, %v2930_v45  ;;  %v2929_v56 = vmul.f32 %v5603_v57, %v2902_v24  ;;  %v2932_v9 = vmul.f32 %v5603_v57, %v2905_v46 }
 0x1b0   : > { %3166 = vst.msk [vmem:[%s4705_s29 + $0x68] sm:$0xff] %vm3152_vm1, %v3145_v62  ;;  %v3014_v61 = vsel %vm2974_vm15, %v2954_v31, %v2994_v13  ;;  %v2904_v17 = vadd.f32 %v5592_v6, %v2877_v52 }
 0x1b1   : > { %v3144_v32 = vsel %vm3025_vm3, %v3014_v61, 0.0  ;;  %vm2977_vm0 = vcmp.ge.f32.partialorder %v2957_v50, 0.0  ;;  %v2997_v10 = vmul.f32 0.22916667, %v2957_v50  ;;  %v2956_v12 = vadd.f32 %v5615_v30, %v2929_v56 }
 0x1b2   : > { %3165 = vst.msk [vmem:[%s4705_s29 + $0x60] sm:$0xff] %vm3152_vm1, %v3144_v32  ;;  %v2959_v2 = vadd.f32 %v5615_v30, %v2932_v9  ;;  %v2931_v42 = vmul.f32 %v5603_v57, %v2904_v17 }
 0x1b3   : > { %v3017_v20 = vsel %vm2977_vm0, %v2957_v50, %v2997_v10  ;;  %vm2976_vm4 = vcmp.ge.f32.partialorder %v2956_v12, 0.0  ;;  %v2996_v54 = vmul.f32 0.22916667, %v2956_v12 }
 0x1b4   : > { %v3147_v6 = vsel %vm3028_vm2, %v3017_v20, 0.0  ;;  %vm2979_vm5 = vcmp.ge.f32.partialorder %v2959_v2, 0.0  ;;  %v2999_v59 = vmul.f32 0.22916667, %v2959_v2  ;;  %v2958_v51 = vadd.f32 %v5615_v30, %v2931_v42 }
 0x1b5   : > { %3168 = vst.msk [vmem:[%s4705_s29 + $0x78] sm:$0xff] %vm3152_vm1, %v3147_v6  ;;  %v3016_v4 = vsel %vm2976_vm4, %v2956_v12, %v2996_v54 }
 0x1b6   : > { %v3146_v18 = vsel %vm3025_vm3, %v3016_v4, 0.0  ;;  %v3019_v43 = vsel %vm2979_vm5, %v2959_v2, %v2999_v59  ;;  %vm2978_vm6 = vcmp.ge.f32.partialorder %v2958_v51, 0.0  ;;  %v2998_v57 = vmul.f32 0.22916667, %v2958_v51 }
 0x1b7   : > { %3167 = vst.msk [vmem:[%s4705_s29 + $0x70] sm:$0xff] %vm3152_vm1, %v3146_v18  ;;  %v3149_v53 = vsel %vm3028_vm2, %v3019_v43, 0.0 }
 0x1b8   : > { %3170 = vst.msk [vmem:[%s4705_s29 + $0x88] sm:$0xff] %vm3152_vm1, %v3149_v53  ;;  %v3018_v22 = vsel %vm2978_vm6, %v2958_v51, %v2998_v57 }
 0x1b9   : > { %v3148_v30 = vsel %vm3025_vm3, %v3018_v22, 0.0 }
 0x1ba   : > { %3169 = vst.msk [vmem:[%s4705_s29 + $0x80] sm:$0xff] %vm3152_vm1, %v3148_v30 }
 0x1bb PF: > { %s15_s20 = sadd.s32 1, %s4640_s20   ;;  %s5774_s18 = smov %s4636_s19 }
 0x1bc   : > { %p12_p5 = scmp.ge.s32.totalorder %s15_s20, 4   ;;  %s5775_s19 = smov %s5777_s21 }
 0x1be   :  { %14 = sbr.rel (!%p12_p5) target bundleno = 2 (0x2), region = 180 }
 0x1c3   :  { %3205 = vsyncmov [#allocation3] }
 0x1c6   :  { %s3206_s26 = vpop.sfrf %3205 }
 0x1c7   :  { %p3848_p6 = scmp.ne.s32.totalorder %s3206_s26, 0 }
 0x1c9   :  { %3210 = shalt.err (%p3848_p6)  }
 0x1ca   :  { %3212 = vsyncmov [#allocation3 + $0x1] }
 0x1cd   :  { %s3213_s27 = vpop.sfrf %3212 }
 0x1ce   :  { %p3849_p7 = scmp.ne.s32.totalorder %s3213_s27, 0 }
 0x1d0   :  { %3217 = shalt.err (%p3849_p7)  }

// kernel: res_up_block_forward.5
= control target key start
LH: loop header
LB: loop body
LE: loop exit
PB: predicated region body
PF: predicated region fallthrough
CT: control target
= control target key end

     0   :  { %s3610_s12 = smov 0   ;;  %s3612_s13 = smov 0   ;;  %s4453_s0 = inlined_call_operand.vmem [shape: f32[320,40], index: 0, kind: input, shape index: {}]   ;;  %s4454_s1 = inlined_call_operand.vmem [shape: f32[9,40,40], index: 1, kind: input, shape index: {}]   ;;  %s4455_s2 = inlined_call_operand.vmem [shape: f32[1,40], index: 2, kind: input, shape index: {}]   ;;  %s4456_s3 = inlined_call_operand.vmem [shape: f32[2,8,16,40], index: 3, kind: output, shape index: {}]  }
   0x1   :  { %s3614_s14 = smov 0  }
   0x2 LB: > { %s25_s15 = sadd.s32 1, %s3584_s13  ;;  %p2634_p0 = scmp.ge.s32.totalorder %s3588_s14, 1  ;;  %s3588_s14 = sphi %s3614_s14, %s13_s14   ;;  %s3584_s13 = sphi %s3612_s13, %s4496_s13   ;;  %s3580_s12 = sphi %s3610_s12, %s4495_s12  }
   0x3   : > { %p27_p1 = scmp.ge.s32.totalorder %s25_s15, 2  ;;  %p117_p2 = scmp.lt.s32.totalorder %s3588_s14, 3 }
   0x5   : > { %s4498_s15 = smov (%p27_p1, %s25_s15), 0  ;;  %p118_p3 = pnand %p2634_p0, %p117_p2 }
   0x7   : > { %121 = sbr.rel (%p118_p3) target bundleno = 384 (0x180), region = 28 }
   0xc   : > { %p140_p4 = scmp.lt.s32.totalorder %s3580_s12, 1  ;;  %s160_s16 = smul.u32 160, %s3580_s12 }
   0xe   : > { %s4500_s12 = smov (!%p140_p4, %s3580_s12), 1  ;;  %s3631_s19 = scalar_lea.vmem %s4453_s0, %s160_s16 }
   0xf   : > { %s3034_s20 = sshll.u32 %s4500_s12, 7  ;;  %v201_v0 = vld [vmem:[%s3631_s19] sm:$0xff]  ;;  %v203_v1 = vld [vmem:[%s3631_s19 + $0x8] sm:$0xff]  ;;  %v205_v2 = vld [vmem:[%s3631_s19 + $0x10] sm:$0xff] }
  0x10   : > { %s3639_s23 = scalar_lea.vmem %s4456_s3, %s3034_s20  ;;  %2637 = vst [vmem:[#allocation2 + $0x8] sm:$0xff] %v201_v0  ;;  %2638 = vst [vmem:[#allocation2 + $0x10] sm:$0xff] %v203_v1  ;;  %v207_v3 = vld [vmem:[%s3631_s19 + $0x18] sm:$0xff]  ;;  %v209_v4 = vld [vmem:[%s3631_s19 + $0x20] sm:$0xff] }
  0x11   : > { %2639 = vst [vmem:[#allocation2 + $0x18] sm:$0xff] %v205_v2  ;;  %v211_v5 = vld [vmem:[%s3631_s19 + $0x28] sm:$0xff]  ;;  %2640 = vst [vmem:[#allocation2 + $0x20] sm:$0xff] %v207_v3  ;;  %v213_v6 = vld [vmem:[%s3631_s19 + $0x30] sm:$0xff] }
  0x12   : > { %2641 = vst [vmem:[#allocation2 + $0x28] sm:$0xff] %v209_v4  ;;  %2642 = vst [vmem:[#allocation2 + $0x30] sm:$0xff] %v211_v5  ;;  %v215_v7 = vld [vmem:[%s3631_s19 + $0x38] sm:$0xff]  ;;  %v217_v8 = vld [vmem:[%s3631_s19 + $0x40] sm:$0xff] }
  0x13   : > { %2643 = vst [vmem:[#allocation2 + $0x38] sm:$0xff] %v213_v6  ;;  %2644 = vst [vmem:[#allocation2 + $0x40] sm:$0xff] %v215_v7  ;;  %v219_v9 = vld [vmem:[%s3631_s19 + $0x48] sm:$0xff]  ;;  %v221_v10 = vld [vmem:[%s3631_s19 + $0x50] sm:$0xff] }
  0x14   : > { %2645 = vst [vmem:[#allocation2 + $0x48] sm:$0xff] %v217_v8  ;;  %v223_v11 = vld [vmem:[%s3631_s19 + $0x58] sm:$0xff]  ;;  %2646 = vst [vmem:[#allocation2 + $0x50] sm:$0xff] %v219_v9  ;;  %v225_v12 = vld [vmem:[%s3631_s19 + $0x60] sm:$0xff] }
  0x15   : > { %2647 = vst [vmem:[#allocation2 + $0x58] sm:$0xff] %v221_v10  ;;  %2648 = vst [vmem:[#allocation2 + $0x60] sm:$0xff] %v223_v11  ;;  %v227_v13 = vld [vmem:[%s3631_s19 + $0x68] sm:$0xff]  ;;  %v229_v14 = vld [vmem:[%s3631_s19 + $0x70] sm:$0xff] }
  0x16   : > { %2649 = vst [vmem:[#allocation2 + $0x68] sm:$0xff] %v225_v12  ;;  %2650 = vst [vmem:[#allocation2 + $0x70] sm:$0xff] %v227_v13  ;;  %v231_v15 = vld [vmem:[%s3631_s19 + $0x78] sm:$0xff]  ;;  %v233_v16 = vld [vmem:[%s3631_s19 + $0x80] sm:$0xff] }
  0x17   : > { %2651 = vst [vmem:[#allocation2 + $0x78] sm:$0xff] %v229_v14  ;;  %v235_v17 = vld [vmem:[%s3631_s19 + $0x88] sm:$0xff]  ;;  %2652 = vst [vmem:[#allocation2 + $0x80] sm:$0xff] %v231_v15  ;;  %v237_v18 = vld [vmem:[%s3631_s19 + $0x90] sm:$0xff] }
  0x18   : > { %2653 = vst [vmem:[#allocation2 + $0x88] sm:$0xff] %v233_v16  ;;  %2654 = vst [vmem:[#allocation2 + $0x90] sm:$0xff] %v235_v17  ;;  %v239_v19 = vld [vmem:[%s3631_s19 + $0x98] sm:$0xff] }
  0x19   : > { %2655 = vst [vmem:[#allocation2 + $0x98] sm:$0xff] %v237_v18  ;;  %2656 = vst [vmem:[#allocation2 + $0xa0] sm:$0xff] %v239_v19 }
  0x1a   : > { %248 = vsyncadd [#allocation3], 2560 }
  0x1b   : > { %3576 = dma.done.wait [#allocation3], 2560 }
  0x1c   : > { %3577 = vsyncadd [#allocation3], 4294964736  ;;  %v2737_v20 = vld [vmem:[%s4454_s1 + $0x48] sm:$0xff]  ;;  %v2736_v21 = vld [vmem:[%s4454_s1 + $0x40] sm:$0xff]  ;;  %vm396_vm0 = vcmask 326656  }
  0x1d   : > { %3530 = vmatprep.subr.mxu1 %v2737_v20  ;;  %3224 = vmatprep.subr.mxu0 %v2737_v20  ;;  %v2735_v22 = vld [vmem:[%s4454_s1 + $0x38] sm:$0xff]  ;;  %v2734_v23 = vld [vmem:[%s4454_s1 + $0x30] sm:$0xff]  ;;  %v2733_v24 = vld [vmem:[%s4454_s1 + $0x28] sm:$0xff] }
  0x1e   : > { %3535 = vmatpush3.msra.mxu1 %v2737_v20  ;;  %3225 = vmatpush3.msra.mxu0 %v2737_v20  ;;  %v3673_v25 = vld [vmem:[#allocation2 + $0x48] sm:$0xff]  ;;  %v3675_v27 = vld [vmem:[#allocation2 + $0x50] sm:$0xff]  ;;  %v372_v28 = vld [vmem:[%s4454_s1 + $0x20] sm:$0xff] }
  0x1f   : > { %3531 = vmatprep.subr.mxu1 %v2736_v21  ;;  %3226 = vmatprep.subr.mxu0 %v2736_v21  ;;  %v2717_v26 = vld [vmem:[#allocation2 + $0x8] sm:$0xff]  ;;  %v2718_v29 = vld [vmem:[#allocation2 + $0x10] sm:$0xff]  ;;  %v3686_v31 = vld [vmem:[#allocation2 + $0x58] sm:$0xff] }
  0x20   : > { %3536 = vmatpush3.msra.mxu1 %v2736_v21  ;;  %3227 = vmatpush3.msra.mxu0 %v2736_v21  ;;  %v2790_v30 = vld [vmem:[%s4454_s1 + $0x70] sm:$0xff]  ;;  %v3690_v32 = vld [vmem:[#allocation2 + $0x18] sm:$0xff]  ;;  %v3693_v33 = vld [vmem:[#allocation2 + $0x60] sm:$0xff] }
  0x21   : > { %3532 = vmatprep.subr.mxu1 %v2735_v22  ;;  %3228 = vmatprep.subr.mxu0 %v2735_v22  ;;  %v371_v34 = vld [vmem:[%s4454_s1 + $0x18] sm:$0xff]  ;;  %v3700_v35 = vld [vmem:[#allocation2 + $0x20] sm:$0xff]  ;;  %v2789_v36 = vld [vmem:[%s4454_s1 + $0x68] sm:$0xff] }
  0x22   : > { %3537 = vmatpush3.msra.mxu1 %v2735_v22  ;;  %3229 = vmatpush3.msra.mxu0 %v2735_v22  ;;  %v3707_v37 = vld [vmem:[#allocation2 + $0x68] sm:$0xff]  ;;  %v370_v38 = vld [vmem:[%s4454_s1 + $0x10] sm:$0xff]  ;;  %v2788_v42 = vld [vmem:[%s4454_s1 + $0x60] sm:$0xff] }
  0x23   : > { %3533 = vmatprep.subr.mxu1 %v2734_v23  ;;  %3230 = vmatprep.subr.mxu0 %v2734_v23  ;;  %v3716_v39 = vld [vmem:[#allocation2 + $0x28] sm:$0xff]  ;;  %v3718_v40 = vld [vmem:[#allocation2 + $0x70] sm:$0xff]  ;;  %v3734_v44 = vld [vmem:[#allocation2 + $0x78] sm:$0xff] }
  0x24   : > { %3538 = vmatpush3.msra.mxu1 %v2734_v23  ;;  %3231 = vmatpush3.msra.mxu0 %v2734_v23  ;;  %v3722_v41 = vld [vmem:[#allocation2 + $0x30] sm:$0xff]  ;;  %v369_v43 = vld [vmem:[%s4454_s1 + $0x8] sm:$0xff]  ;;  %v3738_v45 = vld [vmem:[#allocation2 + $0x38] sm:$0xff] }
  0x25   : > { %3534 = vmatprep.subr.mxu1 %v2733_v24  ;;  %3232 = vmatprep.subr.mxu0 %v2733_v24  ;;  %v3740_v46 = vld [vmem:[#allocation2 + $0x80] sm:$0xff]  ;;  %v2787_v47 = vld [vmem:[%s4454_s1 + $0x58] sm:$0xff]  ;;  %v2786_v51 = vld [vmem:[%s4454_s1 + $0x50] sm:$0xff] }
  0x26   : > { %3539 = vmatpush3.msra.mxu1 %v2733_v24  ;;  %3246 = vmatprep.mubr.msk.f32.mxu1 %vm396_vm0, %v3673_v25  ;;  %v3747_v48 = vld [vmem:[#allocation2 + $0x40] sm:$0xff]  ;;  %v2702_v52 = vld [vmem:[#allocation2 + $0xf] sm:$0xff]  ;;  %v2827_v54 = vld [vmem:[%s4454_s1 + $0x98] sm:$0xff] }
  0x27   : > { %3233 = vmatpush3.msra.mxu0 %v2733_v24  ;;  %3234 = vmatprep.mubr.msk.f32.mxu0 %vm396_vm0, %v2717_v26  ;;  %v368_v49 = vld [vmem:[%s4454_s1] sm:$0xff]  ;;  %v2770_v53 = vld [vmem:[#allocation2 + $0x9] sm:$0xff]  ;;  %v2771_v55 = vld [vmem:[#allocation2 + $0x11] sm:$0xff] }
  0x28   : > { %3247 = vmatmul.mubr.msk.f32.vlgmr.msra.gmra.mxu1 %vm396_vm0, %v3675_v27  ;;  %3258 = vmatprep.subr.mxu1 %v372_v28  ;;  %v2701_v50 = vld [vmem:[#allocation2 + $0x7] sm:$0xff]  ;;  %v3769_v57 = vld [vmem:[#allocation2 + $0x17] sm:$0xff]  ;;  %v3772_v58 = vld [vmem:[#allocation2 + $0x1f] sm:$0xff] }
  0x29   : > { %3235 = vmatmul.mubr.msk.f32.vlgmr.msra.gmra.mxu0 %vm396_vm0, %v2718_v29  ;;  %3259 = vmatpush3.msra.mxu1 %v372_v28  ;;  %v2864_v56 = vld [vmem:[%s4454_s1 + $0xc0] sm:$0xff]  ;;  %v2826_v62 = vld [vmem:[%s4454_s1 + $0x90] sm:$0xff]  ;;  %v2863_v1 = vld [vmem:[%s4454_s1 + $0xb8] sm:$0xff] }
  0x2a   : > { %3292 = vmatprep.subr.mxu0 %v2790_v30  ;;  %3249 = vmatprep.mubr.msk.f32.mxu1 %vm396_vm0, %v3686_v31  ;;  %v3775_v59 = vld [vmem:[#allocation2 + $0x19] sm:$0xff]  ;;  %v3777_v60 = vld [vmem:[#allocation2 + $0x27] sm:$0xff]  ;;  %v3794_v0 = vld [vmem:[#allocation2 + $0x2f] sm:$0xff] }
  0x2b   : > { %3293 = vmatpush3.msra.mxu0 %v2790_v30  ;;  %3237 = vmatprep.mubr.msk.f32.mxu0 %vm396_vm0, %v3690_v32  ;;  %v3781_v61 = vld [vmem:[#allocation2 + $0x21] sm:$0xff]  ;;  %v3788_v63 = vld [vmem:[#allocation2 + $0x29] sm:$0xff]  ;;  %v3801_v2 = vld [vmem:[#allocation2 + $0x37] sm:$0xff] }
  0x2c   : > { %3250 = vmatmul.mubr.msk.f32.gmra.mxu1 %vm396_vm0, %v3693_v33  ;;  %3260 = vmatprep.subr.mxu1 %v371_v34  ;;  %v3805_v3 = vld [vmem:[#allocation2 + $0x31] sm:$0xff]  ;;  %v2825_v4 = vld [vmem:[%s4454_s1 + $0x88] sm:$0xff]  ;;  %v3812_v5 = vld [vmem:[#allocation2 + $0x39] sm:$0xff] }
  0x2d   : > { %3238 = vmatmul.mubr.msk.f32.gmra.mxu0 %vm396_vm0, %v3700_v35  ;;  %3261 = vmatpush3.msra.mxu1 %v371_v34  ;;  %v3816_v6 = vld [vmem:[#allocation2 + $0x3f] sm:$0xff]  ;;  %v2862_v7 = vld [vmem:[%s4454_s1 + $0xb0] sm:$0xff]  ;;  %v3823_v8 = vld [vmem:[#allocation2 + $0x47] sm:$0xff] }
  0x2e   : > { %3294 = vmatprep.subr.mxu0 %v2789_v36  ;;  %3252 = vmatprep.mubr.msk.f32.mxu1 %vm396_vm0, %v3707_v37  ;;  %v3827_v9 = vld [vmem:[#allocation2 + $0x41] sm:$0xff]  ;;  %v3834_v11 = vld [vmem:[#allocation2 + $0x49] sm:$0xff]  ;;  %v3845_v14 = vld [vmem:[#allocation2 + $0x57] sm:$0xff] }
  0x2f   : > { %3262 = vmatprep.subr.mxu1 %v370_v38  ;;  %3295 = vmatpush3.msra.mxu0 %v2789_v36  ;;  %v2824_v10 = vld [vmem:[%s4454_s1 + $0x80] sm:$0xff]  ;;  %v3838_v12 = vld [vmem:[#allocation2 + $0x4f] sm:$0xff]  ;;  %v2823_v16 = vld [vmem:[%s4454_s1 + $0x78] sm:$0xff] }
  0x30   : > { %3240 = vmatprep.mubr.msk.f32.mxu0 %vm396_vm0, %v3716_v39  ;;  %3253 = vmatmul.mubr.msk.f32.gmra.mxu1 %vm396_vm0, %v3718_v40  ;;  %v2861_v13 = vld [vmem:[%s4454_s1 + $0xa8] sm:$0xff]  ;;  %v3849_v15 = vld [vmem:[#allocation2 + $0x51] sm:$0xff]  ;;  %v3856_v17 = vld [vmem:[#allocation2 + $0x59] sm:$0xff] }
  0x31   : > { %3263 = vmatpush3.msra.mxu1 %v370_v38  ;;  %3241 = vmatmul.mubr.msk.f32.gmra.mxu0 %vm396_vm0, %v3722_v41  ;;  %v3860_v18 = vld [vmem:[#allocation2 + $0x5f] sm:$0xff]  ;;  %v3867_v20 = vld [vmem:[#allocation2 + $0x67] sm:$0xff]  ;;  %v2938_v24 = vld [vmem:[%s4454_s1 + $0x110] sm:$0xff] }
  0x32   : > { %3296 = vmatprep.subr.mxu0 %v2788_v42  ;;  %3264 = vmatprep.subr.mxu1 %v369_v43  ;;  %v2860_v19 = vld [vmem:[%s4454_s1 + $0xa0] sm:$0xff]  ;;  %v2901_v22 = vld [vmem:[%s4454_s1 + $0xe8] sm:$0xff]  ;;  %v3889_v28 = vld [vmem:[#allocation2 + $0x77] sm:$0xff] }
  0x33   : > { %3297 = vmatpush3.msra.mxu0 %v2788_v42  ;;  %3255 = vmatprep.mubr.msk.f32.mxu1 %vm396_vm0, %v3734_v44  ;;  %v3871_v21 = vld [vmem:[#allocation2 + $0x61] sm:$0xff]  ;;  %v3878_v23 = vld [vmem:[#allocation2 + $0x69] sm:$0xff]  ;;  %v3893_v29 = vld [vmem:[#allocation2 + $0x71] sm:$0xff] }
  0x34   : > { %3265 = vmatpush3.msra.mxu1 %v369_v43  ;;  %3243 = vmatprep.mubr.msk.f32.mxu0 %vm396_vm0, %v3738_v45  ;;  %v3885_v26 = vld [vmem:[#allocation2 + $0x6f] sm:$0xff]  ;;  %v3897_v30 = vld [vmem:[#allocation2 + $0x79] sm:$0xff]  ;;  %v3907_v36 = vld [vmem:[#allocation2 + $0x81] sm:$0xff] }
  0x35   : > { %3256 = vmatmul.mubr.msk.f32.gmra.mxu1 %vm396_vm0, %v3740_v46  ;;  %3298 = vmatprep.subr.mxu0 %v2787_v47  ;;  %v3901_v34 = vld [vmem:[#allocation2 + $0x7f] sm:$0xff]  ;;  %v2937_v42 = vld [vmem:[%s4454_s1 + $0x108] sm:$0xff]  ;;  %v2898_v43 = vld [vmem:[%s4454_s1 + $0xd0] sm:$0xff] }
  0x36   : > { %3244 = vmatmul.mubr.msk.f32.gmra.mxu0 %vm396_vm0, %v3747_v48  ;;  %3266 = vmatprep.subr.mxu1 %v368_v49  ;;  %v2900_v38 = vld [vmem:[%s4454_s1 + $0xe0] sm:$0xff] }
  0x37   : > { %3299 = vmatpush3.msra.mxu0 %v2787_v47  ;;  %3267 = vmatpush3.msra.mxu1 %v368_v49  ;;  %v2935_v47 = vld [vmem:[%s4454_s1 + $0xf8] sm:$0xff]  ;;  %v2897_v49 = vld [vmem:[%s4454_s1 + $0xc8] sm:$0xff] }
  0x38   : > { %3268 = vmatprep.mubr.msk.f32.mxu1 %vm396_vm0, %v2701_v50  ;;  %3300 = vmatprep.subr.mxu0 %v2786_v51  ;;  %v2934_v50 = vld [vmem:[%s4454_s1 + $0xf0] sm:$0xff] }
  0x39   : > { %3269 = vmatmul.mubr.msk.f32.vlgmr.msra.gmra.mxu1 %vm396_vm0, %v2702_v52  ;;  %3301 = vmatpush3.msra.mxu0 %v2786_v51  ;;  %v2975_v51 = vld [vmem:[%s4454_s1 + $0x138] sm:$0xff]  ;;  %v3012_v52 = vld [vmem:[%s4454_s1 + $0x160] sm:$0xff] }
  0x3a   : > { %3302 = vmatprep.mubr.msk.f32.mxu0 %vm396_vm0, %v2770_v53  ;;  %3326 = vmatprep.subr.mxu1 %v2827_v54  ;;  %v3993_v53 = vld [vmem:[#allocation2 + $0x87] sm:$0xff] }
  0x3b   : > { %3303 = vmatmul.mubr.msk.f32.vlgmr.msra.gmra.mxu0 %vm396_vm0, %v2771_v55  ;;  %3327 = vmatpush3.msra.mxu1 %v2827_v54  ;;  %v3999_v54 = vld [vmem:[#allocation2 + $0x88] sm:$0xff] }
  0x3c   : > { %3360 = vmatprep.subr.mxu0 %v2864_v56  ;;  %3271 = vmatprep.mubr.msk.f32.mxu1 %vm396_vm0, %v3769_v57  ;;  %v4003_v55 = vld [vmem:[#allocation2 + $0x8f] sm:$0xff] }
  0x3d   : > { %3361 = vmatpush3.msra.mxu0 %v2864_v56  ;;  %3272 = vmatmul.mubr.msk.f32.gmra.mxu1 %vm396_vm0, %v3772_v58  ;;  %v4009_v56 = vld [vmem:[#allocation2 + $0x90] sm:$0xff] }
  0x3e   : > { %3305 = vmatprep.mubr.msk.f32.mxu0 %vm396_vm0, %v3775_v59  ;;  %3274 = vmatprep.mubr.msk.f32.mxu1 %vm396_vm0, %v3777_v60 }
  0x3f   : > { %3306 = vmatmul.mubr.msk.f32.gmra.mxu0 %vm396_vm0, %v3781_v61  ;;  %3328 = vmatprep.subr.mxu1 %v2826_v62 }
  0x40   : > { %3308 = vmatprep.mubr.msk.f32.mxu0 %vm396_vm0, %v3788_v63  ;;  %3329 = vmatpush3.msra.mxu1 %v2826_v62  ;;  %v3009_v62 = vld [vmem:[%s4454_s1 + $0x148] sm:$0xff] }
  0x41   : > { %3275 = vmatmul.mubr.msk.f32.gmra.mxu1 %vm396_vm0, %v3794_v0  ;;  %3362 = vmatprep.subr.mxu0 %v2863_v1 }
  0x42   : > { %3363 = vmatpush3.msra.mxu0 %v2863_v1  ;;  %3277 = vmatprep.mubr.msk.f32.mxu1 %vm396_vm0, %v3801_v2  ;;  %v3008_v1 = vld [vmem:[%s4454_s1 + $0x140] sm:$0xff] }
  0x43   : > { %3309 = vmatmul.mubr.msk.f32.gmra.mxu0 %vm396_vm0, %v3805_v3  ;;  %3330 = vmatprep.subr.mxu1 %v2825_v4 }
  0x44   : > { %3311 = vmatprep.mubr.msk.f32.mxu0 %vm396_vm0, %v3812_v5  ;;  %3331 = vmatpush3.msra.mxu1 %v2825_v4  ;;  %v2932_v4 = vld [vmem:[#allocation2 + $0x97] sm:$0xff] }
  0x45   : > { %3278 = vmatmul.mubr.msk.f32.gmra.mxu1 %vm396_vm0, %v3816_v6  ;;  %3364 = vmatprep.subr.mxu0 %v2862_v7 }
  0x46   : > { %3280 = vmatprep.mubr.msk.f32.mxu1 %vm396_vm0, %v3823_v8  ;;  %3365 = vmatpush3.msra.mxu0 %v2862_v7  ;;  %v2933_v7 = vld [vmem:[#allocation2 + $0x9f] sm:$0xff] }
  0x47   : > { %3312 = vmatmul.mubr.msk.f32.gmra.mxu0 %vm396_vm0, %v3827_v9  ;;  %3332 = vmatprep.subr.mxu1 %v2824_v10 }
  0x48   : > { %3314 = vmatprep.mubr.msk.f32.mxu0 %vm396_vm0, %v3834_v11  ;;  %3333 = vmatpush3.msra.mxu1 %v2824_v10 }
  0x49   : > { %3281 = vmatmul.mubr.msk.f32.gmra.mxu1 %vm396_vm0, %v3838_v12  ;;  %3366 = vmatprep.subr.mxu0 %v2861_v13 }
  0x4a   : > { %3283 = vmatprep.mubr.msk.f32.mxu1 %vm396_vm0, %v3845_v14  ;;  %3367 = vmatpush3.msra.mxu0 %v2861_v13 }
  0x4b   : > { %3315 = vmatmul.mubr.msk.f32.gmra.mxu0 %vm396_vm0, %v3849_v15  ;;  %3334 = vmatprep.subr.mxu1 %v2823_v16 }
  0x4c   : > { %3317 = vmatprep.mubr.msk.f32.mxu0 %vm396_vm0, %v3856_v17  ;;  %3335 = vmatpush3.msra.mxu1 %v2823_v16 }
  0x4d   : > { %3284 = vmatmul.mubr.msk.f32.gmra.mxu1 %vm396_vm0, %v3860_v18  ;;  %3368 = vmatprep.subr.mxu0 %v2860_v19 }
  0x4e   : > { %3286 = vmatprep.mubr.msk.f32.mxu1 %vm396_vm0, %v3867_v20  ;;  %3369 = vmatpush3.msra.mxu0 %v2860_v19 }
  0x4f   : > { %3318 = vmatmul.mubr.msk.f32.gmra.mxu0 %vm396_vm0, %v3871_v21  ;;  %3394 = vmatprep.subr.mxu1 %v2901_v22 }
  0x50   : > { %3320 = vmatprep.mubr.msk.f32.mxu0 %vm396_vm0, %v3878_v23  ;;  %3428 = vmatprep.subr.mxu0 %v2938_v24 }
  0x51   : > { %3287 = vmatmul.mubr.msk.f32.gmra.mxu1 %vm396_vm0, %v3885_v26 }
  0x52   : > { %3289 = vmatprep.mubr.msk.f32.mxu1 %vm396_vm0, %v3889_v28 }
  0x53   : > { %3321 = vmatmul.mubr.msk.f32.gmra.mxu0 %vm396_vm0, %v3893_v29 }
  0x54   : > { %3323 = vmatprep.mubr.msk.f32.mxu0 %vm396_vm0, %v3897_v30 }
  0x55   : > { %3290 = vmatmul.mubr.msk.f32.gmra.mxu1 %vm396_vm0, %v3901_v34 }
  0x56   : > { %3336 = vmatprep.mubr.msk.f32.mxu1 %vm396_vm0, %v3769_v57  ;;  %v2974_v57 = vld [vmem:[%s4454_s1 + $0x130] sm:$0xff] }
  0x57   : > { %3324 = vmatmul.mubr.msk.f32.gmra.mxu0 %vm396_vm0, %v3907_v36 }
  0x58   : > { %3370 = vmatprep.mubr.msk.f32.mxu0 %vm396_vm0, %v3690_v32  ;;  %v2899_v32 = vld [vmem:[%s4454_s1 + $0xd8] sm:$0xff] }
  0x59   : > { %3337 = vmatmul.mubr.msk.f32.vlgmr.msra.gmra.mxu1 %vm396_vm0, %v3772_v58  ;;  %v3011_v58 = vld [vmem:[%s4454_s1 + $0x158] sm:$0xff] }
  0x5a   : > { %3395 = vmatpush3.msra.mxu1 %v2901_v22  ;;  %3339 = vmatprep.mubr.msk.f32.mxu1 %vm396_vm0, %v3777_v60 }
  0x5b   : > { %3371 = vmatmul.mubr.msk.f32.vlgmr.msra.gmra.mxu0 %vm396_vm0, %v3700_v35  ;;  %3396 = vmatprep.subr.mxu1 %v2900_v38  ;;  %v2936_v35 = vld [vmem:[%s4454_s1 + $0x100] sm:$0xff] }
  0x5c   : > { %3429 = vmatpush3.msra.mxu0 %v2938_v24  ;;  %3373 = vmatprep.mubr.msk.f32.mxu0 %vm396_vm0, %v3716_v39 }
  0x5d   : > { %3340 = vmatmul.mubr.msk.f32.gmra.mxu1 %vm396_vm0, %v3794_v0  ;;  %3430 = vmatprep.subr.mxu0 %v2937_v42 }
  0x5e   : > { %3342 = vmatprep.mubr.msk.f32.mxu1 %vm396_vm0, %v3801_v2  ;;  %3397 = vmatpush3.msra.mxu1 %v2900_v38 }
  0x5f   : > { %3374 = vmatmul.mubr.msk.f32.gmra.mxu0 %vm396_vm0, %v3722_v41  ;;  %3398 = vmatprep.subr.mxu1 %v2899_v32 }
  0x60   : > { %3376 = vmatprep.mubr.msk.f32.mxu0 %vm396_vm0, %v3738_v45  ;;  %3431 = vmatpush3.msra.mxu0 %v2937_v42 }
  0x61   : > { %3343 = vmatmul.mubr.msk.f32.gmra.mxu1 %vm396_vm0, %v3816_v6  ;;  %3432 = vmatprep.subr.mxu0 %v2936_v35 }
  0x62   : > { %3345 = vmatprep.mubr.msk.f32.mxu1 %vm396_vm0, %v3823_v8  ;;  %3399 = vmatpush3.msra.mxu1 %v2899_v32 }
  0x63   : > { %3377 = vmatmul.mubr.msk.f32.gmra.mxu0 %vm396_vm0, %v3747_v48  ;;  %3400 = vmatprep.subr.mxu1 %v2898_v43 }
  0x64   : > { %3379 = vmatprep.mubr.msk.f32.mxu0 %vm396_vm0, %v3673_v25  ;;  %3433 = vmatpush3.msra.mxu0 %v2936_v35 }
  0x65   : > { %3346 = vmatmul.mubr.msk.f32.gmra.mxu1 %vm396_vm0, %v3838_v12  ;;  %3434 = vmatprep.subr.mxu0 %v2935_v47 }
  0x66   : > { %3348 = vmatprep.mubr.msk.f32.mxu1 %vm396_vm0, %v3845_v14  ;;  %3401 = vmatpush3.msra.mxu1 %v2898_v43 }
  0x67   : > { %3380 = vmatmul.mubr.msk.f32.gmra.mxu0 %vm396_vm0, %v3675_v27  ;;  %3402 = vmatprep.subr.mxu1 %v2897_v49 }
  0x68   : > { %3382 = vmatprep.mubr.msk.f32.mxu0 %vm396_vm0, %v3686_v31  ;;  %3435 = vmatpush3.msra.mxu0 %v2935_v47 }
  0x69   : > { %3349 = vmatmul.mubr.msk.f32.gmra.mxu1 %vm396_vm0, %v3860_v18  ;;  %3436 = vmatprep.subr.mxu0 %v2934_v50 }
  0x6a   : > { %3351 = vmatprep.mubr.msk.f32.mxu1 %vm396_vm0, %v3867_v20  ;;  %3403 = vmatpush3.msra.mxu1 %v2897_v49 }
  0x6b   : > { %3383 = vmatmul.mubr.msk.f32.gmra.mxu0 %vm396_vm0, %v3693_v33  ;;  %3462 = vmatprep.subr.mxu1 %v2975_v51 }
  0x6c   : > { %3385 = vmatprep.mubr.msk.f32.mxu0 %vm396_vm0, %v3707_v37  ;;  %3437 = vmatpush3.msra.mxu0 %v2934_v50 }
  0x6d   : > { %3352 = vmatmul.mubr.msk.f32.gmra.mxu1 %vm396_vm0, %v3885_v26  ;;  %3496 = vmatprep.subr.mxu0 %v3012_v52 }
  0x6e   : > { %3354 = vmatprep.mubr.msk.f32.mxu1 %vm396_vm0, %v3889_v28 }
  0x6f   : > { %3386 = vmatmul.mubr.msk.f32.gmra.mxu0 %vm396_vm0, %v3718_v40 }
  0x70   : > { %3388 = vmatprep.mubr.msk.f32.mxu0 %vm396_vm0, %v3734_v44 }
  0x71   : > { %3355 = vmatmul.mubr.msk.f32.gmra.mxu1 %vm396_vm0, %v3901_v34 }
  0x72   : > { %3357 = vmatprep.mubr.msk.f32.mxu1 %vm396_vm0, %v3993_v53 }
  0x73   : > { %3389 = vmatmul.mubr.msk.f32.gmra.mxu0 %vm396_vm0, %v3740_v46 }
  0x74   : > { %3391 = vmatprep.mubr.msk.f32.mxu0 %vm396_vm0, %v3999_v54 }
  0x75   : > { %3358 = vmatmul.mubr.msk.f32.gmra.mxu1 %vm396_vm0, %v4003_v55 }
  0x76   : > { %3404 = vmatprep.mubr.msk.f32.mxu1 %vm396_vm0, %v3775_v59  ;;  %v2973_v59 = vld [vmem:[%s4454_s1 + $0x128] sm:$0xff] }
  0x77   : > { %3392 = vmatmul.mubr.msk.f32.gmra.mxu0 %vm396_vm0, %v4009_v56 }
  0x78   : > { %3438 = vmatprep.mubr.msk.f32.mxu0 %vm396_vm0, %v3777_v60  ;;  %v3010_v60 = vld [vmem:[%s4454_s1 + $0x150] sm:$0xff] }
  0x79   : > { %3405 = vmatmul.mubr.msk.f32.vlgmr.msra.gmra.mxu1 %vm396_vm0, %v3781_v61  ;;  %v2972_v61 = vld [vmem:[%s4454_s1 + $0x120] sm:$0xff] }
  0x7a   : > { %3463 = vmatpush3.msra.mxu1 %v2975_v51  ;;  %3407 = vmatprep.mubr.msk.f32.mxu1 %vm396_vm0, %v3788_v63 }
  0x7b   : > { %3439 = vmatmul.mubr.msk.f32.vlgmr.msra.gmra.mxu0 %vm396_vm0, %v3794_v0  ;;  %3464 = vmatprep.subr.mxu1 %v2974_v57  ;;  %v2971_v0 = vld [vmem:[%s4454_s1 + $0x118] sm:$0xff] }
  0x7c   : > { %3497 = vmatpush3.msra.mxu0 %v3012_v52  ;;  %3441 = vmatprep.mubr.msk.f32.mxu0 %vm396_vm0, %v3801_v2  ;;  %v2895_v2 = vld [vmem:[#allocation2 + $0x89] sm:$0xff] }
  0x7d   : > { %3408 = vmatmul.mubr.msk.f32.gmra.mxu1 %vm396_vm0, %v3805_v3  ;;  %3498 = vmatprep.subr.mxu0 %v3011_v58 }
  0x7e   : > { %3410 = vmatprep.mubr.msk.f32.mxu1 %vm396_vm0, %v3812_v5  ;;  %3465 = vmatpush3.msra.mxu1 %v2974_v57 }
  0x7f   : > { %3442 = vmatmul.mubr.msk.f32.gmra.mxu0 %vm396_vm0, %v3816_v6  ;;  %3466 = vmatprep.subr.mxu1 %v2973_v59  ;;  %v2896_v6 = vld [vmem:[#allocation2 + $0x91] sm:$0xff] }
  0x80   : > { %3444 = vmatprep.mubr.msk.f32.mxu0 %vm396_vm0, %v3823_v8  ;;  %3499 = vmatpush3.msra.mxu0 %v3011_v58 }
  0x81   : > { %3411 = vmatmul.mubr.msk.f32.gmra.mxu1 %vm396_vm0, %v3827_v9  ;;  %3500 = vmatprep.subr.mxu0 %v3010_v60 }
  0x82   : > { %3413 = vmatprep.mubr.msk.f32.mxu1 %vm396_vm0, %v3834_v11  ;;  %3467 = vmatpush3.msra.mxu1 %v2973_v59 }
  0x83   : > { %3445 = vmatmul.mubr.msk.f32.gmra.mxu0 %vm396_vm0, %v3838_v12  ;;  %3468 = vmatprep.subr.mxu1 %v2972_v61 }
  0x84   : > { %3447 = vmatprep.mubr.msk.f32.mxu0 %vm396_vm0, %v3845_v14  ;;  %3501 = vmatpush3.msra.mxu0 %v3010_v60 }
  0x85   : > { %3414 = vmatmul.mubr.msk.f32.gmra.mxu1 %vm396_vm0, %v3849_v15  ;;  %3502 = vmatprep.subr.mxu0 %v3009_v62 }
  0x86   : > { %3416 = vmatprep.mubr.msk.f32.mxu1 %vm396_vm0, %v3856_v17  ;;  %3469 = vmatpush3.msra.mxu1 %v2972_v61 }
  0x87   : > { %3448 = vmatmul.mubr.msk.f32.gmra.mxu0 %vm396_vm0, %v3860_v18  ;;  %3470 = vmatprep.subr.mxu1 %v2971_v0 }
  0x88   : > { %3450 = vmatprep.mubr.msk.f32.mxu0 %vm396_vm0, %v3867_v20  ;;  %3503 = vmatpush3.msra.mxu0 %v3009_v62 }
  0x89   : > { %3417 = vmatmul.mubr.msk.f32.gmra.mxu1 %vm396_vm0, %v3871_v21  ;;  %3504 = vmatprep.subr.mxu0 %v3008_v1 }
  0x8a   : > { %3419 = vmatprep.mubr.msk.f32.mxu1 %vm396_vm0, %v3878_v23  ;;  %3471 = vmatpush3.msra.mxu1 %v2971_v0 }
  0x8b   : > { %3451 = vmatmul.mubr.msk.f32.gmra.mxu0 %vm396_vm0, %v3885_v26 }
  0x8c   : > { %3453 = vmatprep.mubr.msk.f32.mxu0 %vm396_vm0, %v3889_v28  ;;  %3505 = vmatpush3.msra.mxu0 %v3008_v1 }
  0x8d   : > { %3420 = vmatmul.mubr.msk.f32.gmra.mxu1 %vm396_vm0, %v3893_v29 }
  0x8e   : > { %3422 = vmatprep.mubr.msk.f32.mxu1 %vm396_vm0, %v3897_v30 }
  0x8f   : > { %3454 = vmatmul.mubr.msk.f32.gmra.mxu0 %vm396_vm0, %v3901_v34 }
  0x90   : > { %3456 = vmatprep.mubr.msk.f32.mxu0 %vm396_vm0, %v3993_v53 }
  0x91   : > { %3423 = vmatmul.mubr.msk.f32.gmra.mxu1 %vm396_vm0, %v3907_v36 }
  0x92   : > { %3425 = vmatprep.mubr.msk.f32.mxu1 %vm396_vm0, %v2895_v2 }
  0x93   : > { %3457 = vmatmul.mubr.msk.f32.gmra.mxu0 %vm396_vm0, %v4003_v55 }
  0x94   : > { %3459 = vmatprep.mubr.msk.f32.mxu0 %vm396_vm0, %v2932_v4 }
  0x95   : > { %3426 = vmatmul.mubr.msk.f32.gmra.mxu1 %vm396_vm0, %v2896_v6 }
  0x96   : > { %3472 = vmatprep.mubr.msk.f32.mxu1 %vm396_vm0, %v3716_v39 }
  0x97   : > { %3460 = vmatmul.mubr.msk.f32.gmra.mxu0 %vm396_vm0, %v2933_v7 }
  0x98   : > { %3506 = vmatprep.mubr.msk.f32.mxu0 %vm396_vm0, %v3788_v63 }
  0x99   : > { %3473 = vmatmul.mubr.msk.f32.vlgmr.msra.gmra.mxu1 %vm396_vm0, %v3722_v41 }
  0x9a   : > { %3475 = vmatprep.mubr.msk.f32.mxu1 %vm396_vm0, %v3738_v45 }
  0x9b   : > { %3507 = vmatmul.mubr.msk.f32.vlgmr.msra.gmra.mxu0 %vm396_vm0, %v3805_v3 }
  0x9c   : > { %3509 = vmatprep.mubr.msk.f32.mxu0 %vm396_vm0, %v3812_v5 }
  0x9d   : > { %3476 = vmatmul.mubr.msk.f32.gmra.mxu1 %vm396_vm0, %v3747_v48 }
  0x9e   : > { %3478 = vmatprep.mubr.msk.f32.mxu1 %vm396_vm0, %v3673_v25  ;;  %v2969_v25 = vld [vmem:[#allocation2 + $0x98] sm:$0xff] }
  0x9f   : > { %3510 = vmatmul.mubr.msk.f32.gmra.mxu0 %vm396_vm0, %v3827_v9 }
  0xa0   : > { %3512 = vmatprep.mubr.msk.f32.mxu0 %vm396_vm0, %v3834_v11 }
  0xa1   : > { %3479 = vmatmul.mubr.msk.f32.gmra.mxu1 %vm396_vm0, %v3675_v27  ;;  %v3006_v27 = vld [vmem:[#allocation2 + $0x99] sm:$0xff] }
  0xa2   : > { %3481 = vmatprep.mubr.msk.f32.mxu1 %vm396_vm0, %v3686_v31  ;;  %v2970_v31 = vld [vmem:[#allocation2 + $0xa0] sm:$0xff] }
  0xa3   : > { %3513 = vmatmul.mubr.msk.f32.gmra.mxu0 %vm396_vm0, %v3849_v15 }
  0xa4   : > { %3515 = vmatprep.mubr.msk.f32.mxu0 %vm396_vm0, %v3856_v17 }
  0xa5   : > { %3482 = vmatmul.mubr.msk.f32.gmra.mxu1 %vm396_vm0, %v3693_v33  ;;  %v3007_v33 = vld [vmem:[#allocation2 + $0xa1] sm:$0xff] }
  0xa6   : > { %3484 = vmatprep.mubr.msk.f32.mxu1 %vm396_vm0, %v3707_v37 }
  0xa7   : > { %3516 = vmatmul.mubr.msk.f32.gmra.mxu0 %vm396_vm0, %v3871_v21 }
  0xa8   : > { %3518 = vmatprep.mubr.msk.f32.mxu0 %vm396_vm0, %v3878_v23 }
  0xa9   : > { %3485 = vmatmul.mubr.msk.f32.gmra.mxu1 %vm396_vm0, %v3718_v40 }
  0xaa   : > { %3487 = vmatprep.mubr.msk.f32.mxu1 %vm396_vm0, %v3734_v44 }
  0xab   : > { %3519 = vmatmul.mubr.msk.f32.gmra.mxu0 %vm396_vm0, %v3893_v29 }
  0xac   : > { %3521 = vmatprep.mubr.msk.f32.mxu0 %vm396_vm0, %v3897_v30 }
  0xad   : > { %3488 = vmatmul.mubr.msk.f32.gmra.mxu1 %vm396_vm0, %v3740_v46 }
  0xae   : > { %3490 = vmatprep.mubr.msk.f32.mxu1 %vm396_vm0, %v3999_v54 }
  0xaf   : > { %3522 = vmatmul.mubr.msk.f32.gmra.mxu0 %vm396_vm0, %v3907_v36 }
  0xb0   : > { %3524 = vmatprep.mubr.msk.f32.mxu0 %vm396_vm0, %v2895_v2 }
  0xb1   : > { %3491 = vmatmul.mubr.msk.f32.gmra.mxu1 %vm396_vm0, %v4009_v56 }
  0xb2   : > { %3493 = vmatprep.mubr.msk.f32.mxu1 %vm396_vm0, %v2969_v25 }
  0xb3   : > { %3525 = vmatmul.mubr.msk.f32.gmra.mxu0 %vm396_vm0, %v2896_v6 }
  0xb4   : > { %3527 = vmatprep.mubr.msk.f32.mxu0 %vm396_vm0, %v3006_v27 }
  0xb5   : > { %3494 = vmatmul.mubr.msk.f32.gmra.mxu1 %vm396_vm0, %v2970_v31 }
  0xb7   : > { %3528 = vmatmul.mubr.msk.f32.gmra.mxu0 %vm396_vm0, %v3007_v33 }
  0xe8   : > { %v3248_v37 = vpop.f32.mrf.mxu1 }
  0xe9   : > { %v3236_v39 = vpop.f32.mrf.mxu0 }
  0xea   : > { %v551_v40 = vpop.f32.mrf.mxu1 }
  0xeb   : > { %v511_v41 = vpop.f32.mrf.mxu0 }
  0xec   : > { %v3251_v44 = vpop.f32.mrf.mxu1 }
  0xed   : > { %v3239_v45 = vpop.f32.mrf.mxu0 }
  0xee   : > { %v561_v46 = vpop.f32.mrf.mxu1 }
  0xef   : > { %v521_v48 = vpop.f32.mrf.mxu0 }
  0xf0   : > { %v3254_v63 = vpop.f32.mrf.mxu1 }
  0xf1   : > { %v3242_v3 = vpop.f32.mrf.mxu0 }
  0xf2   : > { %v571_v5 = vpop.f32.mrf.mxu1 }
  0xf3   : > { %v531_v8 = vpop.f32.mrf.mxu0 }
  0xf5   : > { %v3257_v9 = vpop.f32.mrf.mxu1 }
  0xf6   : > { %v3245_v10 = vpop.f32.mrf.mxu0 }
  0xf7   : > { %v4157_v11 = vpop.f32.mrf.mxu1 }
  0xf8   : > { %v541_v12 = vpop.f32.mrf.mxu0 }
  0xf9   : > { %v3270_v13 = vpop.f32.mrf.mxu1 }
  0xfa   : > { %v710_v14 = vadd.f32 %v3270_v13, %v3236_v39 }
  0xfb   : > { %v3304_v15 = vpop.f32.mrf.mxu0  ;;  %v704_v16 = vpop.f32.mrf.mxu1 }
  0xfc   : > { %v4159_v17 = vadd.f32 %v3304_v15, %v710_v14  ;;  %v705_v18 = vadd.f32 %v704_v16, %v511_v41 }
  0xfd   : > { %v921_v19 = vpop.f32.mrf.mxu0  ;;  %v3273_v20 = vpop.f32.mrf.mxu1 }
  0xfe   : > { %v4161_v21 = vadd.f32 %v921_v19, %v705_v18  ;;  %v720_v22 = vadd.f32 %v3273_v20, %v3239_v45 }
  0xff   : > { %v3307_v23 = vpop.f32.mrf.mxu0  ;;  %v714_v24 = vpop.f32.mrf.mxu1 }
 0x100   : > { %v4163_v26 = vadd.f32 %v3307_v23, %v720_v22  ;;  %v715_v28 = vadd.f32 %v714_v24, %v521_v48 }
 0x101   : > { %v931_v29 = vpop.f32.mrf.mxu0  ;;  %v3276_v30 = vpop.f32.mrf.mxu1 }
 0x102   : > { %v4165_v34 = vadd.f32 %v931_v29, %v715_v28  ;;  %v730_v36 = vadd.f32 %v3276_v30, %v3242_v3 }
 0x103   : > { %v3310_v38 = vpop.f32.mrf.mxu0  ;;  %v724_v42 = vpop.f32.mrf.mxu1 }
 0x104   : > { %v4167_v32 = vadd.f32 %v3310_v38, %v730_v36  ;;  %v725_v35 = vadd.f32 %v724_v42, %v531_v8 }
 0x105   : > { %v941_v43 = vpop.f32.mrf.mxu0  ;;  %v3279_v47 = vpop.f32.mrf.mxu1 }
 0x106   : > { %v4169_v49 = vadd.f32 %v941_v43, %v725_v35  ;;  %v740_v50 = vadd.f32 %v3279_v47, %v3245_v10 }
 0x107   : > { %v3313_v51 = vpop.f32.mrf.mxu0  ;;  %v734_v52 = vpop.f32.mrf.mxu1 }
 0x108   : > { %v4171_v53 = vadd.f32 %v3313_v51, %v740_v50  ;;  %v735_v54 = vadd.f32 %v734_v52, %v541_v12 }
 0x109   : > { %v951_v55 = vpop.f32.mrf.mxu0  ;;  %v3282_v56 = vpop.f32.mrf.mxu1 }
 0x10a   : > { %v4173_v57 = vadd.f32 %v951_v55, %v735_v54  ;;  %v750_v58 = vadd.f32 %v3282_v56, %v3248_v37 }
 0x10b   : > { %v3316_v59 = vpop.f32.mrf.mxu0  ;;  %v744_v60 = vpop.f32.mrf.mxu1 }
 0x10c   : > { %v4175_v61 = vadd.f32 %v3316_v59, %v750_v58  ;;  %v745_v62 = vadd.f32 %v744_v60, %v551_v40 }
 0x10d   : > { %v961_v0 = vpop.f32.mrf.mxu0  ;;  %v3285_v1 = vpop.f32.mrf.mxu1 }
 0x10e   : > { %v4177_v2 = vadd.f32 %v961_v0, %v745_v62  ;;  %v760_v4 = vadd.f32 %v3285_v1, %v3251_v44 }
 0x10f   : > { %v3319_v6 = vpop.f32.mrf.mxu0  ;;  %v754_v7 = vpop.f32.mrf.mxu1 }
 0x110   : > { %v4179_v25 = vadd.f32 %v3319_v6, %v760_v4  ;;  %v755_v27 = vadd.f32 %v754_v7, %v561_v46 }
 0x111   : > { %v971_v31 = vpop.f32.mrf.mxu0  ;;  %v3288_v33 = vpop.f32.mrf.mxu1 }
 0x112   : > { %v4181_v39 = vadd.f32 %v971_v31, %v755_v27  ;;  %v770_v37 = vadd.f32 %v3288_v33, %v3254_v63 }
 0x113   : > { %v3322_v41 = vpop.f32.mrf.mxu0  ;;  %v764_v45 = vpop.f32.mrf.mxu1 }
 0x114   : > { %v4183_v48 = vadd.f32 %v3322_v41, %v770_v37  ;;  %v765_v40 = vadd.f32 %v764_v45, %v571_v5 }
 0x115   : > { %v981_v3 = vpop.f32.mrf.mxu0  ;;  %v3291_v8 = vpop.f32.mrf.mxu1 }
 0x116   : > { %v4185_v10 = vadd.f32 %v981_v3, %v765_v40  ;;  %v780_v44 = vadd.f32 %v3291_v8, %v3257_v9 }
 0x117   : > { %v3325_v12 = vpop.f32.mrf.mxu0  ;;  %v774_v13 = vpop.f32.mrf.mxu1 }
 0x118   : > { %4457 = vst [vmem:[#allocation7_spill] sm:$0xff] %v4185_v10  ;;  %v4187_v14 = vadd.f32 %v3325_v12, %v780_v44  ;;  %v775_v46 = vadd.f32 %v774_v13, %v4157_v11  ;;  %v2437_v10 = vlaneseq }
 0x119   : > { %v991_v15 = vpop.f32.mrf.mxu0  ;;  %v3338_v16 = vpop.f32.mrf.mxu1 }
 0x11a   : > { %4458 = vst [vmem:[#allocation8_spill] sm:$0xff] %v4187_v14  ;;  %v4190_v18 = vadd.f32 %v991_v15, %v775_v46 }
 0x11b   : > { %v3372_v63 = vpop.f32.mrf.mxu0  ;;  %v1154_v19 = vpop.f32.mrf.mxu1 }
 0x11c   : > { %4459 = vst [vmem:[#allocation9_spill] sm:$0xff] %v4190_v18 }
 0x11d   : > { %v1387_v20 = vpop.f32.mrf.mxu0  ;;  %v3341_v22 = vpop.f32.mrf.mxu1 }
 0x11f   : > { %v4192_v5 = vpop.f32.mrf.mxu0  ;;  %v1164_v23 = vpop.f32.mrf.mxu1 }
 0x121   : > { %v4194_v24 = vpop.f32.mrf.mxu0  ;;  %v3344_v9 = vpop.f32.mrf.mxu1 }
 0x123   : > { %v4196_v28 = vpop.f32.mrf.mxu0  ;;  %v4198_v29 = vpop.f32.mrf.mxu1 }
 0x125   : > { %v4200_v30 = vpop.f32.mrf.mxu0  ;;  %v4202_v11 = vpop.f32.mrf.mxu1 }
 0x127   : > { %v4204_v36 = vpop.f32.mrf.mxu0  ;;  %v4206_v38 = vpop.f32.mrf.mxu1 }
 0x129   : > { %v4208_v42 = vpop.f32.mrf.mxu0  ;;  %v4210_v35 = vpop.f32.mrf.mxu1 }
 0x12b   : > { %v4212_v43 = vpop.f32.mrf.mxu0  ;;  %v4214_v47 = vpop.f32.mrf.mxu1 }
 0x12d   : > { %v4216_v50 = vpop.f32.mrf.mxu0  ;;  %v4218_v51 = vpop.f32.mrf.mxu1 }
 0x12f   : > { %v4220_v52 = vpop.f32.mrf.mxu0  ;;  %v4222_v54 = vpop.f32.mrf.mxu1 }
 0x131   : > { %v4224_v55 = vpop.f32.mrf.mxu0  ;;  %v4226_v56 = vpop.f32.mrf.mxu1 }
 0x132   : > { %4460 = vst [vmem:[#allocation10_spill] sm:$0xff] %v4224_v55  ;;  %4461 = vst [vmem:[#allocation11_spill] sm:$0xff] %v4226_v56 }
 0x133   : > { %v4228_v58 = vpop.f32.mrf.mxu0  ;;  %v4230_v59 = vpop.f32.mrf.mxu1 }
 0x134   : > { %4462 = vst [vmem:[#allocation12_spill] sm:$0xff] %v4228_v58  ;;  %4463 = vst [vmem:[#allocation13_spill] sm:$0xff] %v4230_v59  ;;  %v1233_v59 = vadd.f32 %v1154_v19, %v4161_v21  ;;  %v1238_v21 = vadd.f32 %v3344_v9, %v4167_v32 }
 0x135   : > { %v4232_v60 = vpop.f32.mrf.mxu0  ;;  %v4234_v62 = vpop.f32.mrf.mxu1 }
 0x136   : > { %4464 = vst [vmem:[#allocation14_spill] sm:$0xff] %v4232_v60  ;;  %4465 = vst [vmem:[#allocation15_spill] sm:$0xff] %v4234_v62  ;;  %v1234_v62 = vadd.f32 %v3338_v16, %v4159_v17  ;;  %v1235_v17 = vadd.f32 %v1164_v23, %v4165_v34  ;;  %v1471_v9 = vadd.f32 %v4196_v28, %v1238_v21  ;;  %v4311_v28 = vld [vmem:[%s4455_s2] ss:$0 sm:$0xff] }
 0x137   : > { %v4236_v0 = vpop.f32.mrf.mxu0  ;;  %v4238_v1 = vpop.f32.mrf.mxu1 }
 0x138   : > { %4466 = vst [vmem:[#allocation16_spill] sm:$0xff] %v4236_v0  ;;  %4467 = vst [vmem:[#allocation17_spill] sm:$0xff] %v4238_v1  ;;  %v1468_v34 = vadd.f32 %v4194_v24, %v1235_v17  ;;  %v1239_v24 = vadd.f32 %v4206_v38, %v4173_v57 }
 0x139   : > { %v4240_v4 = vpop.f32.mrf.mxu0  ;;  %v3406_v6 = vpop.f32.mrf.mxu1 }
 0x13a   : > { %4468 = vst [vmem:[#allocation18_spill] sm:$0xff] %v4240_v4  ;;  %v1472_v21 = vadd.f32 %v4208_v42, %v1239_v24  ;;  %v1244_v42 = vadd.f32 %v4218_v51, %v4179_v25  ;;  %v1243_v25 = vadd.f32 %v4222_v54, %v4181_v39  ;;  %v4476_v39 = vld [vmem:[#allocation11_spill] sm:$0xff] }
 0x13b   : > { %v3440_v7 = vpop.f32.mrf.mxu0  ;;  %v1620_v27 = vpop.f32.mrf.mxu1  ;;  %v1246_v54 = vadd.f32 %v4476_v39, %v4183_v48  ;;  %v4481_v48 = vld [vmem:[#allocation13_spill] sm:$0xff] }
 0x13d   : > { %v1853_v31 = vpop.f32.mrf.mxu0  ;;  %v3409_v33 = vpop.f32.mrf.mxu1 }
 0x13f   : > { %v3443_v37 = vpop.f32.mrf.mxu0  ;;  %v1630_v41 = vpop.f32.mrf.mxu1 }
 0x141   : > { %v4242_v45 = vpop.f32.mrf.mxu0  ;;  %v3412_v40 = vpop.f32.mrf.mxu1 }
 0x143   : > { %v4244_v3 = vpop.f32.mrf.mxu0  ;;  %v1640_v8 = vpop.f32.mrf.mxu1 }
 0x145   : > { %v4246_v44 = vpop.f32.mrf.mxu0  ;;  %v4248_v12 = vpop.f32.mrf.mxu1 }
 0x147   : > { %v4250_v13 = vpop.f32.mrf.mxu0  ;;  %v4252_v46 = vpop.f32.mrf.mxu1 }
 0x149   : > { %v4254_v15 = vpop.f32.mrf.mxu0  ;;  %v4256_v4 = vpop.f32.mrf.mxu1 }
 0x14a   : > { %4469 = vst [vmem:[#allocation19_spill] sm:$0xff] %v4254_v15 }
 0x14b   : > { %v4258_v0 = vpop.f32.mrf.mxu0  ;;  %v4260_v1 = vpop.f32.mrf.mxu1 }
 0x14c   : > { %4470 = vst [vmem:[#allocation20_spill] sm:$0xff] %v4258_v0  ;;  %4471 = vst [vmem:[#allocation21_spill] sm:$0xff] %v4260_v1  ;;  %v1467_v0 = vadd.f32 %v3372_v63, %v1234_v62  ;;  %v1236_v1 = vadd.f32 %v3341_v22, %v4163_v26  ;;  %v1237_v26 = vadd.f32 %v4198_v29, %v4169_v49 }
 0x14d   : > { %v4262_v18 = vpop.f32.mrf.mxu0  ;;  %v4264_v60 = vpop.f32.mrf.mxu1  ;;  %v1701_v29 = vadd.f32 %v1630_v41, %v1468_v34 }
 0x14e   : > { %4472 = vst [vmem:[#allocation22_spill] sm:$0xff] %v4262_v18  ;;  %4473 = vst [vmem:[#allocation23_spill] sm:$0xff] %v4264_v60  ;;  %v1466_v60 = vadd.f32 %v1387_v20, %v1233_v59  ;;  %v1700_v16 = vadd.f32 %v3406_v6, %v1467_v0  ;;  %v1469_v63 = vadd.f32 %v4192_v5, %v1236_v1 }
 0x14f   : > { %v4267_v14 = vpop.f32.mrf.mxu0  ;;  %v4269_v58 = vpop.f32.mrf.mxu1  ;;  %v1240_v5 = vadd.f32 %v4202_v11, %v4171_v53  ;;  %v1470_v1 = vadd.f32 %v4200_v30, %v1237_v26  ;;  %v1704_v6 = vadd.f32 %v3412_v40, %v1471_v9  ;;  %v1242_v30 = vadd.f32 %v4210_v35, %v4175_v61 }
 0x150   : > { %4474 = vst [vmem:[#allocation24_spill] sm:$0xff] %v4267_v14  ;;  %v4282_v14 = vshrl.u32 %v2437_v10, 7  ;;  %v1699_v62 = vadd.f32 %v1620_v27, %v1466_v60  ;;  %v1933_v10 = vadd.f32 %v3440_v7, %v1700_v16  ;;  %v1702_v23 = vadd.f32 %v3409_v33, %v1469_v63 }
 0x151   : > { %v4272_v55 = vpop.f32.mrf.mxu0  ;;  %v4274_v15 = vpop.f32.mrf.mxu1  ;;  %v1473_v33 = vadd.f32 %v4204_v36, %v1240_v5  ;;  %v1703_v41 = vadd.f32 %v1640_v8, %v1470_v1  ;;  %v1934_v40 = vadd.f32 %v4242_v45, %v1701_v29  ;;  %v1241_v36 = vadd.f32 %v4214_v47, %v4177_v2 }
 0x152   : > { %4475 = vst [vmem:[#allocation25_spill] sm:$0xff] %v4272_v55  ;;  %v4298_v32 = vadd.s32 8, %v4282_v14  ;;  %v1932_v49 = vadd.f32 %v1853_v31, %v1699_v62  ;;  %v1935_v53 = vadd.f32 %v3443_v37, %v1702_v23  ;;  %vm2440_vm2 = vcmp.ge.s32.totalorder %v4282_v14, 1 }
 0x153   : > { %v4277_v56 = vpop.f32.mrf.mxu0  ;;  %v4279_v18 = vpop.f32.mrf.mxu1  ;;  %v1937_v63 = vadd.f32 %v4244_v3, %v1704_v6  ;;  %v1706_v61 = vadd.f32 %v4248_v12, %v1473_v33  ;;  %v1936_v2 = vadd.f32 %v4246_v44, %v1703_v41  ;;  %v1705_v47 = vadd.f32 %v4252_v46, %v1472_v21  ;;  %v4479_v41 = vld [vmem:[#allocation10_spill] sm:$0xff] }
 0x154   : > { %vm2443_vm1 = vcmp.le.s32.totalorder %v4298_v32, 8 }
 0x155   : > { %v4285_v19 = vpop.f32.mrf.mxu0  ;;  %v4287_v55 = vpop.f32.mrf.mxu1  ;;  %v1939_v51 = vadd.f32 %v4250_v13, %v1706_v61  ;;  %v4477_v13 = vld [vmem:[#allocation19_spill] sm:$0xff] }
 0x156   : > { %v1938_v6 = vadd.f32 %v4477_v13, %v1705_v47  ;;  %v4492_v13 = vld [vmem:[#allocation16_spill] sm:$0xff] }
 0x157   : > { %v4292_v22 = vpop.f32.mrf.mxu0  ;;  %v4294_v20 = vpop.f32.mrf.mxu1 }
 0x159   : > { %v4303_v59 = vpop.f32.mrf.mxu0  ;;  %v3474_v60 = vpop.f32.mrf.mxu1 }
 0x15a   : > { %v2166_v0 = vadd.f32 %v3474_v60, %v1933_v10  ;;  %v1475_v10 = vadd.f32 %v4212_v43, %v1242_v30  ;;  %v1474_v43 = vadd.f32 %v4216_v50, %v1241_v36  ;;  %v1477_v50 = vadd.f32 %v4220_v52, %v1244_v42  ;;  %v4487_v42 = vld [vmem:[#allocation22_spill] sm:$0xff] }
 0x15b   : > { %v3508_v7 = vpop.f32.mrf.mxu0  ;;  %v2086_v27 = vpop.f32.mrf.mxu1  ;;  %v1476_v52 = vadd.f32 %v4479_v41, %v1243_v25  ;;  %v4494_v41 = vld [vmem:[#allocation18_spill] sm:$0xff] }
 0x15c   : > { %v2399_v11 = vadd.f32 %v3508_v7, %v2166_v0  ;;  %v2165_v31 = vadd.f32 %v2086_v27, %v1932_v49  ;;  %v1708_v44 = vadd.f32 %v4256_v4, %v1475_v10  ;;  %v4478_v4 = vld [vmem:[#allocation21_spill] sm:$0xff] }
 0x15d   : > { %v2319_v57 = vpop.f32.mrf.mxu0  ;;  %v3477_v38 = vpop.f32.mrf.mxu1  ;;  %v1707_v7 = vadd.f32 %v4478_v4, %v1474_v43  ;;  %v1709_v47 = vadd.f32 %v4269_v58, %v1476_v52  ;;  %v4488_v43 = vld [vmem:[#allocation14_spill] sm:$0xff]  ;;  %v4493_v4 = vld [vmem:[#allocation25_spill] sm:$0xff] }
 0x15e   : > { %v2422_v17 = vadd.f32 %v4311_v28, %v2399_v11  ;;  %v2398_v16 = vadd.f32 %v2319_v57, %v2165_v31  ;;  %v2168_v37 = vadd.f32 %v3477_v38, %v1935_v53  ;;  %v4480_v57 = vld [vmem:[#allocation7_spill] sm:$0xff] }
 0x15f   : > { %v3511_v35 = vpop.f32.mrf.mxu0  ;;  %v2096_v8 = vpop.f32.mrf.mxu1  ;;  %v1245_v38 = vadd.f32 %v4481_v48, %v4480_v57 }
 0x160   : > { %v2451_v62 = vsel %vm2443_vm1, %v2422_v17, 0.0  ;;  %v2421_v45 = vadd.f32 %v4311_v28, %v2398_v16  ;;  %v2401_v26 = vadd.f32 %v3511_v35, %v2168_v37  ;;  %v2167_v34 = vadd.f32 %v2096_v8, %v1934_v40  ;;  %v4482_v40 = vld [vmem:[#allocation20_spill] sm:$0xff]  ;;  %v4483_v16 = vld [vmem:[#allocation23_spill] sm:$0xff] }
 0x161   : > { %2467 = vst.msk [vmem:[%s3639_s23 + $0x8] sm:$0xff] %vm396_vm0, %v2451_v62  ;;  %v2329_v3 = vpop.f32.mrf.mxu0  ;;  %v3480_v12 = vpop.f32.mrf.mxu1  ;;  %v1941_v17 = vadd.f32 %v4482_v40, %v1708_v44  ;;  %v1710_v37 = vadd.f32 %v4483_v16, %v1477_v50  ;;  %v4484_v62 = vld [vmem:[#allocation12_spill] sm:$0xff]  ;;  %v1478_v25 = vadd.f32 %v4488_v43, %v1245_v38  ;;  %v4490_v44 = vld [vmem:[#allocation17_spill] sm:$0xff] }
 0x162   : > { %v2450_v23 = vsel %vm2440_vm2, %v2421_v45, 0.0  ;;  %v2424_v9 = vadd.f32 %v4311_v28, %v2401_v26  ;;  %v2400_v5 = vadd.f32 %v2329_v3, %v2167_v34  ;;  %v2170_v60 = vadd.f32 %v3480_v12, %v1937_v63  ;;  %v4485_v26 = vld [vmem:[#allocation8_spill] sm:$0xff]  ;;  %v4486_v34 = vld [vmem:[#allocation15_spill] sm:$0xff] }
 0x163   : > { %2466 = vst.msk [vmem:[%s3639_s23] sm:$0xff] %vm396_vm0, %v2450_v23  ;;  %v3514_v46 = vpop.f32.mrf.mxu0  ;;  %v2106_v49 = vpop.f32.mrf.mxu1  ;;  %v1479_v45 = vadd.f32 %v4484_v62, %v1246_v54  ;;  %v1248_v10 = vadd.f32 %v4486_v34, %v4485_v26 }
 0x164   : > { %v2453_v29 = vsel %vm2443_vm1, %v2424_v9, 0.0  ;;  %v2423_v0 = vadd.f32 %v4311_v28, %v2400_v5  ;;  %v2403_v1 = vadd.f32 %v3514_v46, %v2170_v60  ;;  %v2169_v24 = vadd.f32 %v2106_v49, %v1936_v2  ;;  %v4491_v49 = vld [vmem:[#allocation24_spill] sm:$0xff] }
 0x165   : > { %2469 = vst.msk [vmem:[%s3639_s23 + $0x18] sm:$0xff] %vm396_vm0, %v2453_v29  ;;  %v2339_v27 = vpop.f32.mrf.mxu0  ;;  %v3483_v53 = vpop.f32.mrf.mxu1  ;;  %v1940_v2 = vadd.f32 %v4487_v42, %v1707_v7  ;;  %v1943_v29 = vadd.f32 %v4491_v49, %v1710_v37  ;;  %v1712_v58 = vadd.f32 %v4274_v15, %v1479_v45  ;;  %v1942_v7 = vadd.f32 %v4493_v4, %v1709_v47 }
 0x166   : > { %v2452_v11 = vsel %vm2440_vm2, %v2423_v0, 0.0  ;;  %v2426_v31 = vadd.f32 %v4311_v28, %v2403_v1  ;;  %v2402_v33 = vadd.f32 %v2339_v27, %v2169_v24  ;;  %v2172_v30 = vadd.f32 %v3483_v53, %v1939_v51  ;;  %v4489_v51 = vld [vmem:[#allocation9_spill] sm:$0xff] }
 0x167   : > { %2468 = vst.msk [vmem:[%s3639_s23 + $0x10] sm:$0xff] %vm396_vm0, %v2452_v11  ;;  %v3517_v21 = vpop.f32.mrf.mxu0  ;;  %v2116_v36 = vpop.f32.mrf.mxu1  ;;  %v1247_v46 = vadd.f32 %v4490_v44, %v4489_v51  ;;  %v1711_v27 = vadd.f32 %v4279_v18, %v1478_v25  ;;  %v1945_v57 = vadd.f32 %v4277_v56, %v1712_v58 }
 0x168   : > { %v2455_v63 = vsel %vm2443_vm1, %v2426_v31, 0.0  ;;  %v2425_v61 = vadd.f32 %v4311_v28, %v2402_v33  ;;  %v2405_v35 = vadd.f32 %v3517_v21, %v2172_v30  ;;  %v2171_v8 = vadd.f32 %v2116_v36, %v1938_v6 }
 0x169   : > { %2471 = vst.msk [vmem:[%s3639_s23 + $0x28] sm:$0xff] %vm396_vm0, %v2455_v63  ;;  %v2349_v3 = vpop.f32.mrf.mxu0  ;;  %v3486_v12 = vpop.f32.mrf.mxu1  ;;  %v1481_v6 = vadd.f32 %v4492_v13, %v1248_v10  ;;  %v1480_v52 = vadd.f32 %v4494_v41, %v1247_v46  ;;  %v1944_v21 = vadd.f32 %v4285_v19, %v1711_v27 }
 0x16a   : > { %v2454_v23 = vsel %vm2440_vm2, %v2425_v61, 0.0  ;;  %v2428_v9 = vadd.f32 %v4311_v28, %v2405_v35  ;;  %v2404_v5 = vadd.f32 %v2349_v3, %v2171_v8  ;;  %v2174_v60 = vadd.f32 %v3486_v12, %v1941_v17 }
 0x16b   : > { %2470 = vst.msk [vmem:[%s3639_s23 + $0x20] sm:$0xff] %vm396_vm0, %v2454_v23  ;;  %v3520_v0 = vpop.f32.mrf.mxu0  ;;  %v2126_v1 = vpop.f32.mrf.mxu1  ;;  %v1714_v48 = vadd.f32 %v4287_v55, %v1481_v6  ;;  %v1713_v36 = vadd.f32 %v4294_v20, %v1480_v52 }
 0x16c   : > { %v2457_v24 = vsel %vm2443_vm1, %v2428_v9, 0.0  ;;  %v2427_v50 = vadd.f32 %v4311_v28, %v2404_v5  ;;  %v2407_v39 = vadd.f32 %v3520_v0, %v2174_v60  ;;  %v2173_v54 = vadd.f32 %v2126_v1, %v1940_v2 }
 0x16d   : > { %2473 = vst.msk [vmem:[%s3639_s23 + $0x38] sm:$0xff] %vm396_vm0, %v2457_v24  ;;  %v2359_v15 = vpop.f32.mrf.mxu0  ;;  %v3489_v53 = vpop.f32.mrf.mxu1  ;;  %v1947_v62 = vadd.f32 %v4292_v22, %v1714_v48  ;;  %v1946_v42 = vadd.f32 %v4303_v59, %v1713_v36 }
 0x16e   : > { %v2456_v11 = vsel %vm2440_vm2, %v2427_v50, 0.0  ;;  %v2430_v31 = vadd.f32 %v4311_v28, %v2407_v39  ;;  %v2406_v33 = vadd.f32 %v2359_v15, %v2173_v54  ;;  %v2176_v30 = vadd.f32 %v3489_v53, %v1943_v29 }
 0x16f   : > { %2472 = vst.msk [vmem:[%s3639_s23 + $0x30] sm:$0xff] %vm396_vm0, %v2456_v11  ;;  %v3523_v18 = vpop.f32.mrf.mxu0  ;;  %v2136_v38 = vpop.f32.mrf.mxu1 }
 0x170   : > { %v2459_v40 = vsel %vm2443_vm1, %v2430_v31, 0.0  ;;  %v2429_v17 = vadd.f32 %v4311_v28, %v2406_v33  ;;  %v2409_v16 = vadd.f32 %v3523_v18, %v2176_v30  ;;  %v2175_v37 = vadd.f32 %v2136_v38, %v1942_v7 }
 0x171   : > { %2475 = vst.msk [vmem:[%s3639_s23 + $0x48] sm:$0xff] %vm396_vm0, %v2459_v40  ;;  %v2369_v55 = vpop.f32.mrf.mxu0  ;;  %v3492_v56 = vpop.f32.mrf.mxu1 }
 0x172   : > { %v2458_v63 = vsel %vm2440_vm2, %v2429_v17, 0.0  ;;  %v2432_v61 = vadd.f32 %v4311_v28, %v2409_v16  ;;  %v2408_v35 = vadd.f32 %v2369_v55, %v2175_v37  ;;  %v2178_v8 = vadd.f32 %v3492_v56, %v1945_v57 }
 0x173   : > { %2474 = vst.msk [vmem:[%s3639_s23 + $0x40] sm:$0xff] %vm396_vm0, %v2458_v63  ;;  %v3526_v19 = vpop.f32.mrf.mxu0  ;;  %v2146_v45 = vpop.f32.mrf.mxu1 }
 0x174   : > { %v2461_v20 = vsel %vm2443_vm1, %v2432_v61, 0.0  ;;  %v2431_v26 = vadd.f32 %v4311_v28, %v2408_v35  ;;  %v2411_v34 = vadd.f32 %v3526_v19, %v2178_v8  ;;  %v2177_v10 = vadd.f32 %v2146_v45, %v1944_v21 }
 0x175   : > { %2477 = vst.msk [vmem:[%s3639_s23 + $0x58] sm:$0xff] %vm396_vm0, %v2461_v20  ;;  %v2379_v2 = vpop.f32.mrf.mxu0  ;;  %v3495_v47 = vpop.f32.mrf.mxu1 }
 0x176   : > { %v2460_v22 = vsel %vm2440_vm2, %v2431_v26, 0.0  ;;  %v2434_v3 = vadd.f32 %v4311_v28, %v2411_v34  ;;  %v2410_v12 = vadd.f32 %v2379_v2, %v2177_v10  ;;  %v2180_v23 = vadd.f32 %v3495_v47, %v1947_v62 }
 0x177   : > { %2476 = vst.msk [vmem:[%s3639_s23 + $0x50] sm:$0xff] %vm396_vm0, %v2460_v22  ;;  %v3529_v9 = vpop.f32.mrf.mxu0  ;;  %v2156_v5 = vpop.f32.mrf.mxu1 }
 0x178   : > { %v2463_v59 = vsel %vm2443_vm1, %v2434_v3, 0.0  ;;  %v2433_v60 = vadd.f32 %v4311_v28, %v2410_v12  ;;  %v2413_v43 = vadd.f32 %v3529_v9, %v2180_v23  ;;  %v2179_v25 = vadd.f32 %v2156_v5, %v1946_v42 }
 0x179   : > { %2479 = vst.msk [vmem:[%s3639_s23 + $0x68] sm:$0xff] %vm396_vm0, %v2463_v59  ;;  %v2389_v51 = vpop.f32.mrf.mxu0 }
 0x17a   : > { %v2462_v44 = vsel %vm2440_vm2, %v2433_v60, 0.0  ;;  %v2436_v46 = vadd.f32 %v4311_v28, %v2413_v43  ;;  %v2412_v49 = vadd.f32 %v2389_v51, %v2179_v25 }
 0x17b   : > { %2478 = vst.msk [vmem:[%s3639_s23 + $0x60] sm:$0xff] %vm396_vm0, %v2462_v44 }
 0x17c   : > { %v2465_v29 = vsel %vm2443_vm1, %v2436_v46, 0.0  ;;  %v2435_v58 = vadd.f32 %v4311_v28, %v2412_v49 }
 0x17d   : > { %2481 = vst.msk [vmem:[%s3639_s23 + $0x78] sm:$0xff] %vm396_vm0, %v2465_v29 }
 0x17e   : > { %v2464_v0 = vsel %vm2440_vm2, %v2435_v58, 0.0 }
 0x17f   : > { %2480 = vst.msk [vmem:[%s3639_s23 + $0x70] sm:$0xff] %vm396_vm0, %v2464_v0 }
 0x180 PF: > { %s13_s14 = sadd.s32 1, %s3588_s14   ;;  %s4495_s12 = smov %s3584_s13 }
 0x181   : > { %p10_p5 = scmp.ge.s32.totalorder %s13_s14, 4   ;;  %s4496_s13 = smov %s4498_s15 }
 0x183   :  { %12 = sbr.rel (!%p10_p5) target bundleno = 2 (0x2), region = 172 }
 0x188   :  { %2514 = vsyncmov [#allocation3] }
 0x18b   :  { %s2515_s24 = vpop.sfrf %2514 }
 0x18c   :  { %p3032_p6 = scmp.ne.s32.totalorder %s2515_s24, 0 }
 0x18e   :  { %2519 = shalt.err (%p3032_p6)  }
 0x18f   :  { %2521 = vsyncmov [#allocation3 + $0x1] }
 0x192   :  { %s2522_s25 = vpop.sfrf %2521 }
 0x193   :  { %p3033_p7 = scmp.ne.s32.totalorder %s2522_s25, 0 }
 0x195   :  { %2526 = shalt.err (%p3033_p7)  }

</bundles_post_ra>
